<compile_context>
chip_gen: v6e
topology: v6e:2x2x1
jax: 0.10.0
libtpu: 0.0.40
codegen_flags: <defaults>
</compile_context>

<pallas_src>
import functools

import jax
import jax.numpy as jnp
from jax import lax
from jax.experimental import pallas as pl
from jax.experimental.pallas import tpu as pltpu


# --------------------- fused conv5x5 (stride 1, pad 2) + bias + ReLU ---------------------

def _conv_kernel(x_ref, w_ref, b_ref, o_ref, *, H, W, Cin, Cout, KS):
    # x_ref: (1, H+KS-1, W+KS-1, Cin) padded image (one grid step per image)
    # w_ref: (KS*KS, Cin, Cout)   b_ref: (1, Cout)   o_ref: (1, H, W, Cout)
    bias = b_ref[...].astype(jnp.float32)                       # (1, Cout)

    def row_body(h, carry):
        acc = jnp.zeros((W, Cout), jnp.float32)
        for kh in range(KS):
            for kw in range(KS):
                xs = x_ref[0, h + kh, kw:kw + W, :]             # (W, Cin)
                wk = w_ref[kh * KS + kw]                        # (Cin, Cout)
                if Cin == 1:
                    # K=1 "matmul" is just a broadcasted multiply (VPU).
                    acc = acc + xs * wk
                else:
                    acc = acc + jnp.dot(xs, wk,
                                        preferred_element_type=jnp.float32)
        y = jnp.maximum(acc + bias, 0.0)
        o_ref[0, h, :, :] = y.astype(o_ref.dtype)
        return carry

    lax.fori_loop(0, H, row_body, 0)


def conv5x5_same_relu(x_nhwc, w_k, b):
    """5x5 / stride 1 / pad 2 conv + bias + ReLU.  w_k is (25, Cin, Cout), i.e.
    PyTorch (Cout,Cin,5,5) permuted to (KH,KW,Cin,Cout) and reshaped (one-time)."""
    B, H, W, Cin = x_nhwc.shape
    KS, P = 5, 2
    Cout = w_k.shape[-1]
    xp = jnp.pad(x_nhwc, ((0, 0), (P, P), (P, P), (0, 0)))
    b2 = b.reshape(1, Cout).astype(jnp.float32)
    kernel = functools.partial(_conv_kernel, H=H, W=W, Cin=Cin, Cout=Cout, KS=KS)
    return pl.pallas_call(
        kernel,
        out_shape=jax.ShapeDtypeStruct((B, H, W, Cout), jnp.float32),
        grid=(B,),
        in_specs=[
            pl.BlockSpec((1, H + 2 * P, W + 2 * P, Cin), lambda bb: (bb, 0, 0, 0)),
            pl.BlockSpec((KS * KS, Cin, Cout), lambda bb: (0, 0, 0)),
            pl.BlockSpec((1, Cout), lambda bb: (0, 0)),
        ],
        out_specs=pl.BlockSpec((1, H, W, Cout), lambda bb: (bb, 0, 0, 0)),
        compiler_params=pltpu.CompilerParams(
            dimension_semantics=("parallel",),
            vmem_limit_bytes=32 * 1024 * 1024),
    )(xp, w_k, b2)


# ----------------------------- 2x2 max-pool (whole batch, one call) -----------------------------

def _maxpool_kernel(x_ref, o_ref, *, C):
    # x_ref: (B, Ho, 2, Wo, 2*C)  ->  o_ref: (B, Ho, Wo, C)
    top = x_ref[:, :, 0, :, :]                        # (B, Ho, Wo, 2C)
    bot = x_ref[:, :, 1, :, :]
    m = jnp.maximum(top, bot)                         # pool along H
    o_ref[...] = jnp.maximum(m[..., :C], m[..., C:])  # pool along W via lane slices


def maxpool2x2(x):
    B, H, W, C = x.shape
    assert H % 2 == 0 and W % 2 == 0, "2x2/2 max-pool requires even H and W"
    Ho, Wo = H // 2, W // 2
    x5 = x.reshape(B, Ho, 2, Wo, 2 * C)   # flat-order-preserving view (no data movement)
    return pl.pallas_call(
        functools.partial(_maxpool_kernel, C=C),
        out_shape=jax.ShapeDtypeStruct((B, Ho, Wo, C), x.dtype),
        compiler_params=pltpu.CompilerParams(vmem_limit_bytes=32 * 1024 * 1024),
    )(x5)


# ----------------------------- GEMM (+bias, +relu) for the fc layers -----------------------------

def _gemm_single_kernel(lhs_ref, rhs_ref, bias_ref, out_ref, *, relu):
    y = jnp.dot(lhs_ref[...], rhs_ref[...], preferred_element_type=jnp.float32)
    y = y + bias_ref[...]
    if relu:
        y = jnp.maximum(y, 0.0)
    out_ref[...] = y.astype(out_ref.dtype)


def _gemm_acc_kernel(lhs_ref, rhs_ref, bias_ref, out_ref, acc_ref, *, relu):
    k = pl.program_id(1)

    @pl.when(k == 0)
    def _():
        acc_ref[...] = jnp.zeros_like(acc_ref)

    acc_ref[...] += jnp.dot(lhs_ref[...], rhs_ref[...],
                            preferred_element_type=jnp.float32)

    @pl.when(k == pl.num_programs(1) - 1)
    def _():
        y = acc_ref[...] + bias_ref[...]
        if relu:
            y = jnp.maximum(y, 0.0)
        out_ref[...] = y.astype(out_ref.dtype)


def gemm_bias_act(lhs, rhs, bias, *, relu, taps=1, tm=256):
    """act(lhs @ rhs + bias) in f32.  bf16 MXU inputs with f32 accumulation.
    Grid = (M tiles ["parallel"], K taps ["arbitrary"]); N padded lane-dense."""
    M, K = lhs.shape
    K2, N = rhs.shape
    assert K == K2
    lhs = lhs.astype(jnp.bfloat16)
    rhs = rhs.astype(jnp.bfloat16)
    bias = bias.astype(jnp.float32)

    # Lane-dense output: pad N to a multiple of 128 (sliced off on return).
    Np = pl.cdiv(N, 128) * 128
    if Np != N:
        rhs = jnp.pad(rhs, ((0, 0), (0, Np - N)))
        bias = jnp.pad(bias, (0, Np - N))

    # K taps: each K block must be a multiple of 128 lanes (zero-pad contributes 0).
    if taps > 1:
        unit = 128 * taps
        Kp = pl.cdiv(K, unit) * unit
        if Kp != K:
            lhs = jnp.pad(lhs, ((0, 0), (0, Kp - K)))
            rhs = jnp.pad(rhs, ((0, Kp - K), (0, 0)))
        K = Kp
    Kt = K // taps

    # M tiles: full M for small batches, otherwise fixed tiles (multiple of 8).
    if M <= tm:
        TM, Mp = M, M
    else:
        TM = tm
        Mp = pl.cdiv(M, TM) * TM
        if Mp != M:
            lhs = jnp.pad(lhs, ((0, Mp - M), (0, 0)))
    bias2 = bias.reshape(1, Np)

    cp = pltpu.CompilerParams(
        dimension_semantics=("parallel",) if taps == 1 else ("parallel", "arbitrary"),
        vmem_limit_bytes=32 * 1024 * 1024)

    if taps == 1:
        out = pl.pallas_call(
            functools.partial(_gemm_single_kernel, relu=relu),
            out_shape=jax.ShapeDtypeStruct((Mp, Np), jnp.float32),
            grid=(Mp // TM,),
            in_specs=[pl.BlockSpec((TM, K), lambda m: (m, 0)),
                      pl.BlockSpec((K, Np), lambda m: (0, 0)),
                      pl.BlockSpec((1, Np), lambda m: (0, 0))],
            out_specs=pl.BlockSpec((TM, Np), lambda m: (m, 0)),
            compiler_params=cp,
        )(lhs, rhs, bias2)
    else:
        out = pl.pallas_call(
            functools.partial(_gemm_acc_kernel, relu=relu),
            out_shape=jax.ShapeDtypeStruct((Mp, Np), jnp.float32),
            grid=(Mp // TM, taps),
            in_specs=[pl.BlockSpec((TM, Kt), lambda m, k: (m, k)),
                      pl.BlockSpec((Kt, Np), lambda m, k: (k, 0)),
                      pl.BlockSpec((1, Np), lambda m, k: (0, 0))],
            out_specs=pl.BlockSpec((TM, Np), lambda m, k: (m, 0)),
            scratch_shapes=[pltpu.VMEM((TM, Np), jnp.float32)],
            compiler_params=cp,
        )(lhs, rhs, bias2)
    return out[:M, :N]


# ----------------------------- model -----------------------------

def init_params(key):
    ks = jax.random.split(key, 8)
    return {
        # Conv weights stored as (KH*KW, Cin, Cout): PyTorch (Cout,Cin,5,5)
        # permuted to (KH,KW,Cin,Cout) and reshaped — a one-time permutation.
        "conv1_w": 0.05 * jax.random.normal(ks[0], (25, 1, 32), jnp.float32),
        "conv1_b": 0.05 * jax.random.normal(ks[1], (32,), jnp.float32),
        "conv2_w": 0.05 * jax.random.normal(ks[2], (25, 32, 64), jnp.float32),
        "conv2_b": 0.05 * jax.random.normal(ks[3], (64,), jnp.float32),
        # fc weights stored (in, out).  fc1's "in" rows are ordered (h, w, c) so the
        # forward can flatten NHWC directly: PyTorch's NCHW view(-1, 7*7*64) is folded
        # into this one-time row permutation of the weight (no activation transpose).
        "fc1_w": 0.02 * jax.random.normal(ks[4], (7 * 7 * 64, 1024), jnp.float32),
        "fc1_b": 0.02 * jax.random.normal(ks[5], (1024,), jnp.float32),
        "fc2_w": 0.02 * jax.random.normal(ks[6], (1024, 10), jnp.float32),
        "fc2_b": 0.02 * jax.random.normal(ks[7], (10,), jnp.float32),
    }


@jax.jit
def lenet_forward(x_nchw, params):
    B, C, H, W = x_nchw.shape
    # NCHW with C=1 -> NHWC is a pure reshape (no data movement).
    x = x_nchw.reshape(B, H, W, 1)
    x = conv5x5_same_relu(x, params["conv1_w"], params["conv1_b"])   # (B,28,28,32)
    x = maxpool2x2(x)                                                # (B,14,14,32)
    x = conv5x5_same_relu(x, params["conv2_w"], params["conv2_b"])   # (B,14,14,64)
    x = maxpool2x2(x)                                                # (B, 7, 7,64)
    x = x.reshape(B, 7 * 7 * 64)          # NHWC flatten (matches fc1_w row order)
    x = gemm_bias_act(x, params["fc1_w"], params["fc1_b"], relu=True, taps=5)
    x = gemm_bias_act(x, params["fc2_w"], params["fc2_b"], relu=False, taps=1)
    return x


if __name__ == "__main__":
    key = jax.random.PRNGKey(0)
    pkey, xkey = jax.random.split(key)
    params = init_params(pkey)
    # LeNet's fc1 (7*7*64) implies 28x28 spatial inputs; keep the batch small.
    x = jax.random.normal(xkey, (2, 1, 28, 28), jnp.float32)
    out = lenet_forward(x, params)
    jax.block_until_ready(out)
    assert out.shape == (2, 10)
    assert bool(jnp.all(jnp.isfinite(out)))
    print("KERNEL_OK")
</pallas_src>

<mosaic_0001>
module attributes {stable_mosaic.version = 11 : i64} {
  func.func @_conv_kernel(%arg0: i32, %arg1: memref<1x32x32x1xf32, #tpu.memory_space<vmem>>, %arg2: memref<25x1x32xf32, #tpu.memory_space<vmem>>, %arg3: memref<1x32xf32, #tpu.memory_space<vmem>>, %arg4: memref<1x28x28x32xf32, #tpu.memory_space<vmem>>) attributes {dimension_semantics = [#tpu.dimension_semantics<parallel>], iteration_bounds = array<i64: 2>, scalar_prefetch = 0 : i64, scratch_operands = 0 : i64, tpu.core_type = #tpu.core_type<tc>, window_params = [{transform_indices = @transform_0, window_bounds = array<i64: 1, 32, 32, 1>}, {pipeline_mode = #tpu.pipeline_mode<synchronous>, transform_indices = @transform_1, window_bounds = array<i64: 25, 1, 32>}, {pipeline_mode = #tpu.pipeline_mode<synchronous>, transform_indices = @transform_2, window_bounds = array<i64: 1, 32>}, {transform_indices = @transform_3, window_bounds = array<i64: 1, 28, 28, 32>}]} {
    %c0 = arith.constant 0 : index
    %c0_0 = arith.constant 0 : index
    %0 = vector.load %arg3[%c0, %c0_0] : memref<1x32xf32, #tpu.memory_space<vmem>>, vector<1x32xf32>
    %c0_i32 = arith.constant 0 : i32
    %c28_i32 = arith.constant 28 : i32
    %1 = arith.addi %c0_i32, %c28_i32 : i32
    %c1_i32 = arith.constant 1 : i32
    scf.for %arg5 = %c0_i32 to %1 step %c1_i32  : i32 {
      %cst = arith.constant 0.000000e+00 : f32
      %2 = vector.broadcast %cst : f32 to vector<28x32xf32>
      %c0_i32_2 = arith.constant 0 : i32
      %3 = arith.addi %arg5, %c0_i32_2 : i32
      %c0_3 = arith.constant 0 : index
      %4 = arith.index_cast %3 : i32 to index
      %c0_4 = arith.constant 0 : index
      %c0_5 = arith.constant 0 : index
      %5 = vector.load %arg1[%c0_3, %4, %c0_4, %c0_5] : memref<1x32x32x1xf32, #tpu.memory_space<vmem>>, vector<1x1x28x1xf32>
      %6 = vector.shape_cast %5 : vector<1x1x28x1xf32> to vector<28x1xf32>
      %c0_6 = arith.constant 0 : index
      %c0_7 = arith.constant 0 : index
      %c0_8 = arith.constant 0 : index
      %7 = vector.load %arg2[%c0_6, %c0_7, %c0_8] : memref<25x1x32xf32, #tpu.memory_space<vmem>>, vector<1x1x32xf32>
      %8 = vector.shape_cast %7 : vector<1x1x32xf32> to vector<1x32xf32>
      %9 = vector.broadcast %6 : vector<28x1xf32> to vector<28x32xf32>
      %10 = vector.broadcast %8 : vector<1x32xf32> to vector<28x32xf32>
      %11 = arith.mulf %9, %10 : vector<28x32xf32>
      %12 = arith.addf %2, %11 : vector<28x32xf32>
      %c0_i32_9 = arith.constant 0 : i32
      %13 = arith.addi %arg5, %c0_i32_9 : i32
      %c0_10 = arith.constant 0 : index
      %14 = arith.index_cast %13 : i32 to index
      %c1 = arith.constant 1 : index
      %c0_11 = arith.constant 0 : index
      %15 = vector.load %arg1[%c0_10, %14, %c1, %c0_11] : memref<1x32x32x1xf32, #tpu.memory_space<vmem>>, vector<1x1x28x1xf32>
      %16 = vector.shape_cast %15 : vector<1x1x28x1xf32> to vector<28x1xf32>
      %c1_12 = arith.constant 1 : index
      %c0_13 = arith.constant 0 : index
      %c0_14 = arith.constant 0 : index
      %17 = vector.load %arg2[%c1_12, %c0_13, %c0_14] : memref<25x1x32xf32, #tpu.memory_space<vmem>>, vector<1x1x32xf32>
      %18 = vector.shape_cast %17 : vector<1x1x32xf32> to vector<1x32xf32>
      %19 = vector.broadcast %16 : vector<28x1xf32> to vector<28x32xf32>
      %20 = vector.broadcast %18 : vector<1x32xf32> to vector<28x32xf32>
      %21 = arith.mulf %19, %20 : vector<28x32xf32>
      %22 = arith.addf %12, %21 : vector<28x32xf32>
      %c0_i32_15 = arith.constant 0 : i32
      %23 = arith.addi %arg5, %c0_i32_15 : i32
      %c0_16 = arith.constant 0 : index
      %24 = arith.index_cast %23 : i32 to index
      %c2 = arith.constant 2 : index
      %c0_17 = arith.constant 0 : index
      %25 = vector.load %arg1[%c0_16, %24, %c2, %c0_17] : memref<1x32x32x1xf32, #tpu.memory_space<vmem>>, vector<1x1x28x1xf32>
      %26 = vector.shape_cast %25 : vector<1x1x28x1xf32> to vector<28x1xf32>
      %c2_18 = arith.constant 2 : index
      %c0_19 = arith.constant 0 : index
      %c0_20 = arith.constant 0 : index
      %27 = vector.load %arg2[%c2_18, %c0_19, %c0_20] : memref<25x1x32xf32, #tpu.memory_space<vmem>>, vector<1x1x32xf32>
      %28 = vector.shape_cast %27 : vector<1x1x32xf32> to vector<1x32xf32>
      %29 = vector.broadcast %26 : vector<28x1xf32> to vector<28x32xf32>
      %30 = vector.broadcast %28 : vector<1x32xf32> to vector<28x32xf32>
      %31 = arith.mulf %29, %30 : vector<28x32xf32>
      %32 = arith.addf %22, %31 : vector<28x32xf32>
      %c0_i32_21 = arith.constant 0 : i32
      %33 = arith.addi %arg5, %c0_i32_21 : i32
      %c0_22 = arith.constant 0 : index
      %34 = arith.index_cast %33 : i32 to index
      %c3 = arith.constant 3 : index
      %c0_23 = arith.constant 0 : index
      %35 = vector.load %arg1[%c0_22, %34, %c3, %c0_23] : memref<1x32x32x1xf32, #tpu.memory_space<vmem>>, vector<1x1x28x1xf32>
      %36 = vector.shape_cast %35 : vector<1x1x28x1xf32> to vector<28x1xf32>
      %c3_24 = arith.constant 3 : index
      %c0_25 = arith.constant 0 : index
      %c0_26 = arith.constant 0 : index
      %37 = vector.load %arg2[%c3_24, %c0_25, %c0_26] : memref<25x1x32xf32, #tpu.memory_space<vmem>>, vector<1x1x32xf32>
      %38 = vector.shape_cast %37 : vector<1x1x32xf32> to vector<1x32xf32>
      %39 = vector.broadcast %36 : vector<28x1xf32> to vector<28x32xf32>
      %40 = vector.broadcast %38 : vector<1x32xf32> to vector<28x32xf32>
      %41 = arith.mulf %39, %40 : vector<28x32xf32>
      %42 = arith.addf %32, %41 : vector<28x32xf32>
      %c0_i32_27 = arith.constant 0 : i32
      %43 = arith.addi %arg5, %c0_i32_27 : i32
      %c0_28 = arith.constant 0 : index
      %44 = arith.index_cast %43 : i32 to index
      %c4 = arith.constant 4 : index
      %c0_29 = arith.constant 0 : index
      %45 = vector.load %arg1[%c0_28, %44, %c4, %c0_29] : memref<1x32x32x1xf32, #tpu.memory_space<vmem>>, vector<1x1x28x1xf32>
      %46 = vector.shape_cast %45 : vector<1x1x28x1xf32> to vector<28x1xf32>
      %c4_30 = arith.constant 4 : index
      %c0_31 = arith.constant 0 : index
      %c0_32 = arith.constant 0 : index
      %47 = vector.load %arg2[%c4_30, %c0_31, %c0_32] : memref<25x1x32xf32, #tpu.memory_space<vmem>>, vector<1x1x32xf32>
      %48 = vector.shape_cast %47 : vector<1x1x32xf32> to vector<1x32xf32>
      %49 = vector.broadcast %46 : vector<28x1xf32> to vector<28x32xf32>
      %50 = vector.broadcast %48 : vector<1x32xf32> to vector<28x32xf32>
      %51 = arith.mulf %49, %50 : vector<28x32xf32>
      %52 = arith.addf %42, %51 : vector<28x32xf32>
      %c1_i32_33 = arith.constant 1 : i32
      %53 = arith.addi %arg5, %c1_i32_33 : i32
      %c0_34 = arith.constant 0 : index
      %54 = arith.index_cast %53 : i32 to index
      %c0_35 = arith.constant 0 : index
      %c0_36 = arith.constant 0 : index
      %55 = vector.load %arg1[%c0_34, %54, %c0_35, %c0_36] : memref<1x32x32x1xf32, #tpu.memory_space<vmem>>, vector<1x1x28x1xf32>
      %56 = vector.shape_cast %55 : vector<1x1x28x1xf32> to vector<28x1xf32>
      %c5 = arith.constant 5 : index
      %c0_37 = arith.constant 0 : index
      %c0_38 = arith.constant 0 : index
      %57 = vector.load %arg2[%c5, %c0_37, %c0_38] : memref<25x1x32xf32, #tpu.memory_space<vmem>>, vector<1x1x32xf32>
      %58 = vector.shape_cast %57 : vector<1x1x32xf32> to vector<1x32xf32>
      %59 = vector.broadcast %56 : vector<28x1xf32> to vector<28x32xf32>
      %60 = vector.broadcast %58 : vector<1x32xf32> to vector<28x32xf32>
      %61 = arith.mulf %59, %60 : vector<28x32xf32>
      %62 = arith.addf %52, %61 : vector<28x32xf32>
      %c1_i32_39 = arith.constant 1 : i32
      %63 = arith.addi %arg5, %c1_i32_39 : i32
      %c0_40 = arith.constant 0 : index
      %64 = arith.index_cast %63 : i32 to index
      %c1_41 = arith.constant 1 : index
      %c0_42 = arith.constant 0 : index
      %65 = vector.load %arg1[%c0_40, %64, %c1_41, %c0_42] : memref<1x32x32x1xf32, #tpu.memory_space<vmem>>, vector<1x1x28x1xf32>
      %66 = vector.shape_cast %65 : vector<1x1x28x1xf32> to vector<28x1xf32>
      %c6 = arith.constant 6 : index
      %c0_43 = arith.constant 0 : index
      %c0_44 = arith.constant 0 : index
      %67 = vector.load %arg2[%c6, %c0_43, %c0_44] : memref<25x1x32xf32, #tpu.memory_space<vmem>>, vector<1x1x32xf32>
      %68 = vector.shape_cast %67 : vector<1x1x32xf32> to vector<1x32xf32>
      %69 = vector.broadcast %66 : vector<28x1xf32> to vector<28x32xf32>
      %70 = vector.broadcast %68 : vector<1x32xf32> to vector<28x32xf32>
      %71 = arith.mulf %69, %70 : vector<28x32xf32>
      %72 = arith.addf %62, %71 : vector<28x32xf32>
      %c1_i32_45 = arith.constant 1 : i32
      %73 = arith.addi %arg5, %c1_i32_45 : i32
      %c0_46 = arith.constant 0 : index
      %74 = arith.index_cast %73 : i32 to index
      %c2_47 = arith.constant 2 : index
      %c0_48 = arith.constant 0 : index
      %75 = vector.load %arg1[%c0_46, %74, %c2_47, %c0_48] : memref<1x32x32x1xf32, #tpu.memory_space<vmem>>, vector<1x1x28x1xf32>
      %76 = vector.shape_cast %75 : vector<1x1x28x1xf32> to vector<28x1xf32>
      %c7 = arith.constant 7 : index
      %c0_49 = arith.constant 0 : index
      %c0_50 = arith.constant 0 : index
      %77 = vector.load %arg2[%c7, %c0_49, %c0_50] : memref<25x1x32xf32, #tpu.memory_space<vmem>>, vector<1x1x32xf32>
      %78 = vector.shape_cast %77 : vector<1x1x32xf32> to vector<1x32xf32>
      %79 = vector.broadcast %76 : vector<28x1xf32> to vector<28x32xf32>
      %80 = vector.broadcast %78 : vector<1x32xf32> to vector<28x32xf32>
      %81 = arith.mulf %79, %80 : vector<28x32xf32>
      %82 = arith.addf %72, %81 : vector<28x32xf32>
      %c1_i32_51 = arith.constant 1 : i32
      %83 = arith.addi %arg5, %c1_i32_51 : i32
      %c0_52 = arith.constant 0 : index
      %84 = arith.index_cast %83 : i32 to index
      %c3_53 = arith.constant 3 : index
      %c0_54 = arith.constant 0 : index
      %85 = vector.load %arg1[%c0_52, %84, %c3_53, %c0_54] : memref<1x32x32x1xf32, #tpu.memory_space<vmem>>, vector<1x1x28x1xf32>
      %86 = vector.shape_cast %85 : vector<1x1x28x1xf32> to vector<28x1xf32>
      %c8 = arith.constant 8 : index
      %c0_55 = arith.constant 0 : index
      %c0_56 = arith.constant 0 : index
      %87 = vector.load %arg2[%c8, %c0_55, %c0_56] : memref<25x1x32xf32, #tpu.memory_space<vmem>>, vector<1x1x32xf32>
      %88 = vector.shape_cast %87 : vector<1x1x32xf32> to vector<1x32xf32>
      %89 = vector.broadcast %86 : vector<28x1xf32> to vector<28x32xf32>
      %90 = vector.broadcast %88 : vector<1x32xf32> to vector<28x32xf32>
      %91 = arith.mulf %89, %90 : vector<28x32xf32>
      %92 = arith.addf %82, %91 : vector<28x32xf32>
      %c1_i32_57 = arith.constant 1 : i32
      %93 = arith.addi %arg5, %c1_i32_57 : i32
      %c0_58 = arith.constant 0 : index
      %94 = arith.index_cast %93 : i32 to index
      %c4_59 = arith.constant 4 : index
      %c0_60 = arith.constant 0 : index
      %95 = vector.load %arg1[%c0_58, %94, %c4_59, %c0_60] : memref<1x32x32x1xf32, #tpu.memory_space<vmem>>, vector<1x1x28x1xf32>
      %96 = vector.shape_cast %95 : vector<1x1x28x1xf32> to vector<28x1xf32>
      %c9 = arith.constant 9 : index
      %c0_61 = arith.constant 0 : index
      %c0_62 = arith.constant 0 : index
      %97 = vector.load %arg2[%c9, %c0_61, %c0_62] : memref<25x1x32xf32, #tpu.memory_space<vmem>>, vector<1x1x32xf32>
      %98 = vector.shape_cast %97 : vector<1x1x32xf32> to vector<1x32xf32>
      %99 = vector.broadcast %96 : vector<28x1xf32> to vector<28x32xf32>
      %100 = vector.broadcast %98 : vector<1x32xf32> to vector<28x32xf32>
      %101 = arith.mulf %99, %100 : vector<28x32xf32>
      %102 = arith.addf %92, %101 : vector<28x32xf32>
      %c2_i32 = arith.constant 2 : i32
      %103 = arith.addi %arg5, %c2_i32 : i32
      %c0_63 = arith.constant 0 : index
      %104 = arith.index_cast %103 : i32 to index
      %c0_64 = arith.constant 0 : index
      %c0_65 = arith.constant 0 : index
      %105 = vector.load %arg1[%c0_63, %104, %c0_64, %c0_65] : memref<1x32x32x1xf32, #tpu.memory_space<vmem>>, vector<1x1x28x1xf32>
      %106 = vector.shape_cast %105 : vector<1x1x28x1xf32> to vector<28x1xf32>
      %c10 = arith.constant 10 : index
      %c0_66 = arith.constant 0 : index
      %c0_67 = arith.constant 0 : index
      %107 = vector.load %arg2[%c10, %c0_66, %c0_67] : memref<25x1x32xf32, #tpu.memory_space<vmem>>, vector<1x1x32xf32>
      %108 = vector.shape_cast %107 : vector<1x1x32xf32> to vector<1x32xf32>
      %109 = vector.broadcast %106 : vector<28x1xf32> to vector<28x32xf32>
      %110 = vector.broadcast %108 : vector<1x32xf32> to vector<28x32xf32>
      %111 = arith.mulf %109, %110 : vector<28x32xf32>
      %112 = arith.addf %102, %111 : vector<28x32xf32>
      %c2_i32_68 = arith.constant 2 : i32
      %113 = arith.addi %arg5, %c2_i32_68 : i32
      %c0_69 = arith.constant 0 : index
      %114 = arith.index_cast %113 : i32 to index
      %c1_70 = arith.constant 1 : index
      %c0_71 = arith.constant 0 : index
      %115 = vector.load %arg1[%c0_69, %114, %c1_70, %c0_71] : memref<1x32x32x1xf32, #tpu.memory_space<vmem>>, vector<1x1x28x1xf32>
      %116 = vector.shape_cast %115 : vector<1x1x28x1xf32> to vector<28x1xf32>
      %c11 = arith.constant 11 : index
      %c0_72 = arith.constant 0 : index
      %c0_73 = arith.constant 0 : index
      %117 = vector.load %arg2[%c11, %c0_72, %c0_73] : memref<25x1x32xf32, #tpu.memory_space<vmem>>, vector<1x1x32xf32>
      %118 = vector.shape_cast %117 : vector<1x1x32xf32> to vector<1x32xf32>
      %119 = vector.broadcast %116 : vector<28x1xf32> to vector<28x32xf32>
      %120 = vector.broadcast %118 : vector<1x32xf32> to vector<28x32xf32>
      %121 = arith.mulf %119, %120 : vector<28x32xf32>
      %122 = arith.addf %112, %121 : vector<28x32xf32>
      %c2_i32_74 = arith.constant 2 : i32
      %123 = arith.addi %arg5, %c2_i32_74 : i32
      %c0_75 = arith.constant 0 : index
      %124 = arith.index_cast %123 : i32 to index
      %c2_76 = arith.constant 2 : index
      %c0_77 = arith.constant 0 : index
      %125 = vector.load %arg1[%c0_75, %124, %c2_76, %c0_77] : memref<1x32x32x1xf32, #tpu.memory_space<vmem>>, vector<1x1x28x1xf32>
      %126 = vector.shape_cast %125 : vector<1x1x28x1xf32> to vector<28x1xf32>
      %c12 = arith.constant 12 : index
      %c0_78 = arith.constant 0 : index
      %c0_79 = arith.constant 0 : index
      %127 = vector.load %arg2[%c12, %c0_78, %c0_79] : memref<25x1x32xf32, #tpu.memory_space<vmem>>, vector<1x1x32xf32>
      %128 = vector.shape_cast %127 : vector<1x1x32xf32> to vector<1x32xf32>
      %129 = vector.broadcast %126 : vector<28x1xf32> to vector<28x32xf32>
      %130 = vector.broadcast %128 : vector<1x32xf32> to vector<28x32xf32>
      %131 = arith.mulf %129, %130 : vector<28x32xf32>
      %132 = arith.addf %122, %131 : vector<28x32xf32>
      %c2_i32_80 = arith.constant 2 : i32
      %133 = arith.addi %arg5, %c2_i32_80 : i32
      %c0_81 = arith.constant 0 : index
      %134 = arith.index_cast %133 : i32 to index
      %c3_82 = arith.constant 3 : index
      %c0_83 = arith.constant 0 : index
      %135 = vector.load %arg1[%c0_81, %134, %c3_82, %c0_83] : memref<1x32x32x1xf32, #tpu.memory_space<vmem>>, vector<1x1x28x1xf32>
      %136 = vector.shape_cast %135 : vector<1x1x28x1xf32> to vector<28x1xf32>
      %c13 = arith.constant 13 : index
      %c0_84 = arith.constant 0 : index
      %c0_85 = arith.constant 0 : index
      %137 = vector.load %arg2[%c13, %c0_84, %c0_85] : memref<25x1x32xf32, #tpu.memory_space<vmem>>, vector<1x1x32xf32>
      %138 = vector.shape_cast %137 : vector<1x1x32xf32> to vector<1x32xf32>
      %139 = vector.broadcast %136 : vector<28x1xf32> to vector<28x32xf32>
      %140 = vector.broadcast %138 : vector<1x32xf32> to vector<28x32xf32>
      %141 = arith.mulf %139, %140 : vector<28x32xf32>
      %142 = arith.addf %132, %141 : vector<28x32xf32>
      %c2_i32_86 = arith.constant 2 : i32
      %143 = arith.addi %arg5, %c2_i32_86 : i32
      %c0_87 = arith.constant 0 : index
      %144 = arith.index_cast %143 : i32 to index
      %c4_88 = arith.constant 4 : index
      %c0_89 = arith.constant 0 : index
      %145 = vector.load %arg1[%c0_87, %144, %c4_88, %c0_89] : memref<1x32x32x1xf32, #tpu.memory_space<vmem>>, vector<1x1x28x1xf32>
      %146 = vector.shape_cast %145 : vector<1x1x28x1xf32> to vector<28x1xf32>
      %c14 = arith.constant 14 : index
      %c0_90 = arith.constant 0 : index
      %c0_91 = arith.constant 0 : index
      %147 = vector.load %arg2[%c14, %c0_90, %c0_91] : memref<25x1x32xf32, #tpu.memory_space<vmem>>, vector<1x1x32xf32>
      %148 = vector.shape_cast %147 : vector<1x1x32xf32> to vector<1x32xf32>
      %149 = vector.broadcast %146 : vector<28x1xf32> to vector<28x32xf32>
      %150 = vector.broadcast %148 : vector<1x32xf32> to vector<28x32xf32>
      %151 = arith.mulf %149, %150 : vector<28x32xf32>
      %152 = arith.addf %142, %151 : vector<28x32xf32>
      %c3_i32 = arith.constant 3 : i32
      %153 = arith.addi %arg5, %c3_i32 : i32
      %c0_92 = arith.constant 0 : index
      %154 = arith.index_cast %153 : i32 to index
      %c0_93 = arith.constant 0 : index
      %c0_94 = arith.constant 0 : index
      %155 = vector.load %arg1[%c0_92, %154, %c0_93, %c0_94] : memref<1x32x32x1xf32, #tpu.memory_space<vmem>>, vector<1x1x28x1xf32>
      %156 = vector.shape_cast %155 : vector<1x1x28x1xf32> to vector<28x1xf32>
      %c15 = arith.constant 15 : index
      %c0_95 = arith.constant 0 : index
      %c0_96 = arith.constant 0 : index
      %157 = vector.load %arg2[%c15, %c0_95, %c0_96] : memref<25x1x32xf32, #tpu.memory_space<vmem>>, vector<1x1x32xf32>
      %158 = vector.shape_cast %157 : vector<1x1x32xf32> to vector<1x32xf32>
      %159 = vector.broadcast %156 : vector<28x1xf32> to vector<28x32xf32>
      %160 = vector.broadcast %158 : vector<1x32xf32> to vector<28x32xf32>
      %161 = arith.mulf %159, %160 : vector<28x32xf32>
      %162 = arith.addf %152, %161 : vector<28x32xf32>
      %c3_i32_97 = arith.constant 3 : i32
      %163 = arith.addi %arg5, %c3_i32_97 : i32
      %c0_98 = arith.constant 0 : index
      %164 = arith.index_cast %163 : i32 to index
      %c1_99 = arith.constant 1 : index
      %c0_100 = arith.constant 0 : index
      %165 = vector.load %arg1[%c0_98, %164, %c1_99, %c0_100] : memref<1x32x32x1xf32, #tpu.memory_space<vmem>>, vector<1x1x28x1xf32>
      %166 = vector.shape_cast %165 : vector<1x1x28x1xf32> to vector<28x1xf32>
      %c16 = arith.constant 16 : index
      %c0_101 = arith.constant 0 : index
      %c0_102 = arith.constant 0 : index
      %167 = vector.load %arg2[%c16, %c0_101, %c0_102] : memref<25x1x32xf32, #tpu.memory_space<vmem>>, vector<1x1x32xf32>
      %168 = vector.shape_cast %167 : vector<1x1x32xf32> to vector<1x32xf32>
      %169 = vector.broadcast %166 : vector<28x1xf32> to vector<28x32xf32>
      %170 = vector.broadcast %168 : vector<1x32xf32> to vector<28x32xf32>
      %171 = arith.mulf %169, %170 : vector<28x32xf32>
      %172 = arith.addf %162, %171 : vector<28x32xf32>
      %c3_i32_103 = arith.constant 3 : i32
      %173 = arith.addi %arg5, %c3_i32_103 : i32
      %c0_104 = arith.constant 0 : index
      %174 = arith.index_cast %173 : i32 to index
      %c2_105 = arith.constant 2 : index
      %c0_106 = arith.constant 0 : index
      %175 = vector.load %arg1[%c0_104, %174, %c2_105, %c0_106] : memref<1x32x32x1xf32, #tpu.memory_space<vmem>>, vector<1x1x28x1xf32>
      %176 = vector.shape_cast %175 : vector<1x1x28x1xf32> to vector<28x1xf32>
      %c17 = arith.constant 17 : index
      %c0_107 = arith.constant 0 : index
      %c0_108 = arith.constant 0 : index
      %177 = vector.load %arg2[%c17, %c0_107, %c0_108] : memref<25x1x32xf32, #tpu.memory_space<vmem>>, vector<1x1x32xf32>
      %178 = vector.shape_cast %177 : vector<1x1x32xf32> to vector<1x32xf32>
      %179 = vector.broadcast %176 : vector<28x1xf32> to vector<28x32xf32>
      %180 = vector.broadcast %178 : vector<1x32xf32> to vector<28x32xf32>
      %181 = arith.mulf %179, %180 : vector<28x32xf32>
      %182 = arith.addf %172, %181 : vector<28x32xf32>
      %c3_i32_109 = arith.constant 3 : i32
      %183 = arith.addi %arg5, %c3_i32_109 : i32
      %c0_110 = arith.constant 0 : index
      %184 = arith.index_cast %183 : i32 to index
      %c3_111 = arith.constant 3 : index
      %c0_112 = arith.constant 0 : index
      %185 = vector.load %arg1[%c0_110, %184, %c3_111, %c0_112] : memref<1x32x32x1xf32, #tpu.memory_space<vmem>>, vector<1x1x28x1xf32>
      %186 = vector.shape_cast %185 : vector<1x1x28x1xf32> to vector<28x1xf32>
      %c18 = arith.constant 18 : index
      %c0_113 = arith.constant 0 : index
      %c0_114 = arith.constant 0 : index
      %187 = vector.load %arg2[%c18, %c0_113, %c0_114] : memref<25x1x32xf32, #tpu.memory_space<vmem>>, vector<1x1x32xf32>
      %188 = vector.shape_cast %187 : vector<1x1x32xf32> to vector<1x32xf32>
      %189 = vector.broadcast %186 : vector<28x1xf32> to vector<28x32xf32>
      %190 = vector.broadcast %188 : vector<1x32xf32> to vector<28x32xf32>
      %191 = arith.mulf %189, %190 : vector<28x32xf32>
      %192 = arith.addf %182, %191 : vector<28x32xf32>
      %c3_i32_115 = arith.constant 3 : i32
      %193 = arith.addi %arg5, %c3_i32_115 : i32
      %c0_116 = arith.constant 0 : index
      %194 = arith.index_cast %193 : i32 to index
      %c4_117 = arith.constant 4 : index
      %c0_118 = arith.constant 0 : index
      %195 = vector.load %arg1[%c0_116, %194, %c4_117, %c0_118] : memref<1x32x32x1xf32, #tpu.memory_space<vmem>>, vector<1x1x28x1xf32>
      %196 = vector.shape_cast %195 : vector<1x1x28x1xf32> to vector<28x1xf32>
      %c19 = arith.constant 19 : index
      %c0_119 = arith.constant 0 : index
      %c0_120 = arith.constant 0 : index
      %197 = vector.load %arg2[%c19, %c0_119, %c0_120] : memref<25x1x32xf32, #tpu.memory_space<vmem>>, vector<1x1x32xf32>
      %198 = vector.shape_cast %197 : vector<1x1x32xf32> to vector<1x32xf32>
      %199 = vector.broadcast %196 : vector<28x1xf32> to vector<28x32xf32>
      %200 = vector.broadcast %198 : vector<1x32xf32> to vector<28x32xf32>
      %201 = arith.mulf %199, %200 : vector<28x32xf32>
      %202 = arith.addf %192, %201 : vector<28x32xf32>
      %c4_i32 = arith.constant 4 : i32
      %203 = arith.addi %arg5, %c4_i32 : i32
      %c0_121 = arith.constant 0 : index
      %204 = arith.index_cast %203 : i32 to index
      %c0_122 = arith.constant 0 : index
      %c0_123 = arith.constant 0 : index
      %205 = vector.load %arg1[%c0_121, %204, %c0_122, %c0_123] : memref<1x32x32x1xf32, #tpu.memory_space<vmem>>, vector<1x1x28x1xf32>
      %206 = vector.shape_cast %205 : vector<1x1x28x1xf32> to vector<28x1xf32>
      %c20 = arith.constant 20 : index
      %c0_124 = arith.constant 0 : index
      %c0_125 = arith.constant 0 : index
      %207 = vector.load %arg2[%c20, %c0_124, %c0_125] : memref<25x1x32xf32, #tpu.memory_space<vmem>>, vector<1x1x32xf32>
      %208 = vector.shape_cast %207 : vector<1x1x32xf32> to vector<1x32xf32>
      %209 = vector.broadcast %206 : vector<28x1xf32> to vector<28x32xf32>
      %210 = vector.broadcast %208 : vector<1x32xf32> to vector<28x32xf32>
      %211 = arith.mulf %209, %210 : vector<28x32xf32>
      %212 = arith.addf %202, %211 : vector<28x32xf32>
      %c4_i32_126 = arith.constant 4 : i32
      %213 = arith.addi %arg5, %c4_i32_126 : i32
      %c0_127 = arith.constant 0 : index
      %214 = arith.index_cast %213 : i32 to index
      %c1_128 = arith.constant 1 : index
      %c0_129 = arith.constant 0 : index
      %215 = vector.load %arg1[%c0_127, %214, %c1_128, %c0_129] : memref<1x32x32x1xf32, #tpu.memory_space<vmem>>, vector<1x1x28x1xf32>
      %216 = vector.shape_cast %215 : vector<1x1x28x1xf32> to vector<28x1xf32>
      %c21 = arith.constant 21 : index
      %c0_130 = arith.constant 0 : index
      %c0_131 = arith.constant 0 : index
      %217 = vector.load %arg2[%c21, %c0_130, %c0_131] : memref<25x1x32xf32, #tpu.memory_space<vmem>>, vector<1x1x32xf32>
      %218 = vector.shape_cast %217 : vector<1x1x32xf32> to vector<1x32xf32>
      %219 = vector.broadcast %216 : vector<28x1xf32> to vector<28x32xf32>
      %220 = vector.broadcast %218 : vector<1x32xf32> to vector<28x32xf32>
      %221 = arith.mulf %219, %220 : vector<28x32xf32>
      %222 = arith.addf %212, %221 : vector<28x32xf32>
      %c4_i32_132 = arith.constant 4 : i32
      %223 = arith.addi %arg5, %c4_i32_132 : i32
      %c0_133 = arith.constant 0 : index
      %224 = arith.index_cast %223 : i32 to index
      %c2_134 = arith.constant 2 : index
      %c0_135 = arith.constant 0 : index
      %225 = vector.load %arg1[%c0_133, %224, %c2_134, %c0_135] : memref<1x32x32x1xf32, #tpu.memory_space<vmem>>, vector<1x1x28x1xf32>
      %226 = vector.shape_cast %225 : vector<1x1x28x1xf32> to vector<28x1xf32>
      %c22 = arith.constant 22 : index
      %c0_136 = arith.constant 0 : index
      %c0_137 = arith.constant 0 : index
      %227 = vector.load %arg2[%c22, %c0_136, %c0_137] : memref<25x1x32xf32, #tpu.memory_space<vmem>>, vector<1x1x32xf32>
      %228 = vector.shape_cast %227 : vector<1x1x32xf32> to vector<1x32xf32>
      %229 = vector.broadcast %226 : vector<28x1xf32> to vector<28x32xf32>
      %230 = vector.broadcast %228 : vector<1x32xf32> to vector<28x32xf32>
      %231 = arith.mulf %229, %230 : vector<28x32xf32>
      %232 = arith.addf %222, %231 : vector<28x32xf32>
      %c4_i32_138 = arith.constant 4 : i32
      %233 = arith.addi %arg5, %c4_i32_138 : i32
      %c0_139 = arith.constant 0 : index
      %234 = arith.index_cast %233 : i32 to index
      %c3_140 = arith.constant 3 : index
      %c0_141 = arith.constant 0 : index
      %235 = vector.load %arg1[%c0_139, %234, %c3_140, %c0_141] : memref<1x32x32x1xf32, #tpu.memory_space<vmem>>, vector<1x1x28x1xf32>
      %236 = vector.shape_cast %235 : vector<1x1x28x1xf32> to vector<28x1xf32>
      %c23 = arith.constant 23 : index
      %c0_142 = arith.constant 0 : index
      %c0_143 = arith.constant 0 : index
      %237 = vector.load %arg2[%c23, %c0_142, %c0_143] : memref<25x1x32xf32, #tpu.memory_space<vmem>>, vector<1x1x32xf32>
      %238 = vector.shape_cast %237 : vector<1x1x32xf32> to vector<1x32xf32>
      %239 = vector.broadcast %236 : vector<28x1xf32> to vector<28x32xf32>
      %240 = vector.broadcast %238 : vector<1x32xf32> to vector<28x32xf32>
      %241 = arith.mulf %239, %240 : vector<28x32xf32>
      %242 = arith.addf %232, %241 : vector<28x32xf32>
      %c4_i32_144 = arith.constant 4 : i32
      %243 = arith.addi %arg5, %c4_i32_144 : i32
      %c0_145 = arith.constant 0 : index
      %244 = arith.index_cast %243 : i32 to index
      %c4_146 = arith.constant 4 : index
      %c0_147 = arith.constant 0 : index
      %245 = vector.load %arg1[%c0_145, %244, %c4_146, %c0_147] : memref<1x32x32x1xf32, #tpu.memory_space<vmem>>, vector<1x1x28x1xf32>
      %246 = vector.shape_cast %245 : vector<1x1x28x1xf32> to vector<28x1xf32>
      %c24 = arith.constant 24 : index
      %c0_148 = arith.constant 0 : index
      %c0_149 = arith.constant 0 : index
      %247 = vector.load %arg2[%c24, %c0_148, %c0_149] : memref<25x1x32xf32, #tpu.memory_space<vmem>>, vector<1x1x32xf32>
      %248 = vector.shape_cast %247 : vector<1x1x32xf32> to vector<1x32xf32>
      %249 = vector.broadcast %246 : vector<28x1xf32> to vector<28x32xf32>
      %250 = vector.broadcast %248 : vector<1x32xf32> to vector<28x32xf32>
      %251 = arith.mulf %249, %250 : vector<28x32xf32>
      %252 = arith.addf %242, %251 : vector<28x32xf32>
      %253 = vector.broadcast %0 : vector<1x32xf32> to vector<28x32xf32>
      %254 = arith.addf %252, %253 : vector<28x32xf32>
      %cst_150 = arith.constant 0.000000e+00 : f32
      %255 = vector.broadcast %cst_150 : f32 to vector<28x32xf32>
      %256 = arith.maximumf %254, %255 : vector<28x32xf32>
      %c0_151 = arith.constant 0 : index
      %257 = arith.index_cast %arg5 : i32 to index
      %c0_152 = arith.constant 0 : index
      %c0_153 = arith.constant 0 : index
      %258 = vector.load %arg4[%c0_151, %257, %c0_152, %c0_153] : memref<1x28x28x32xf32, #tpu.memory_space<vmem>>, vector<1x1x28x32xf32>
      %259 = vector.shape_cast %258 : vector<1x1x28x32xf32> to vector<28x32xf32>
      %260 = vector.shape_cast %256 : vector<28x32xf32> to vector<1x1x28x32xf32>
      tpu.vector_store %arg4[%c0_151, %257, %c0_152, %c0_153], %260 {strides = array<i32>} : memref<1x28x28x32xf32, #tpu.memory_space<vmem>>, vector<1x1x28x32xf32>,
    }
    %c28_i32_1 = arith.constant 28 : i32
    return
  }
  func.func @transform_0(%arg0: i32) -> (i32, i32, i32, i32) {
    %c0_i32 = arith.constant 0 : i32
    %c0_i32_0 = arith.constant 0 : i32
    %c0_i32_1 = arith.constant 0 : i32
    %c0_i32_2 = arith.constant 0 : i32
    return %arg0, %c0_i32, %c0_i32_0, %c0_i32_1 : i32, i32, i32, i32
  }
  func.func @transform_1(%arg0: i32) -> (i32, i32, i32) {
    %c0_i32 = arith.constant 0 : i32
    %c0_i32_0 = arith.constant 0 : i32
    %c0_i32_1 = arith.constant 0 : i32
    %c0_i32_2 = arith.constant 0 : i32
    return %c0_i32, %c0_i32_0, %c0_i32_1 : i32, i32, i32
  }
  func.func @transform_2(%arg0: i32) -> (i32, i32) {
    %c0_i32 = arith.constant 0 : i32
    %c0_i32_0 = arith.constant 0 : i32
    %c0_i32_1 = arith.constant 0 : i32
    return %c0_i32, %c0_i32_0 : i32, i32
  }
  func.func @transform_3(%arg0: i32) -> (i32, i32, i32, i32) {
    %c0_i32 = arith.constant 0 : i32
    %c0_i32_0 = arith.constant 0 : i32
    %c0_i32_1 = arith.constant 0 : i32
    %c0_i32_2 = arith.constant 0 : i32
    return %arg0, %c0_i32, %c0_i32_0, %c0_i32_1 : i32, i32, i32, i32
  }
}

module attributes {stable_mosaic.version = 11 : i64} {
  func.func @_maxpool_kernel(%arg0: memref<2x14x2x14x64xf32, #tpu.memory_space<vmem>>, %arg1: memref<2x14x14x32xf32, #tpu.memory_space<vmem>>) attributes {dimension_semantics = [], scalar_prefetch = 0 : i64, scratch_operands = 0 : i64, tpu.core_type = #tpu.core_type<tc>} {
    %c0 = arith.constant 0 : index
    %c0_0 = arith.constant 0 : index
    %c0_1 = arith.constant 0 : index
    %c0_2 = arith.constant 0 : index
    %c0_3 = arith.constant 0 : index
    %0 = vector.load %arg0[%c0, %c0_0, %c0_1, %c0_2, %c0_3] : memref<2x14x2x14x64xf32, #tpu.memory_space<vmem>>, vector<2x14x1x14x64xf32>
    %1 = vector.shape_cast %0 : vector<2x14x1x14x64xf32> to vector<2x14x14x64xf32>
    %c0_4 = arith.constant 0 : index
    %c0_5 = arith.constant 0 : index
    %c1 = arith.constant 1 : index
    %c0_6 = arith.constant 0 : index
    %c0_7 = arith.constant 0 : index
    %2 = vector.load %arg0[%c0_4, %c0_5, %c1, %c0_6, %c0_7] : memref<2x14x2x14x64xf32, #tpu.memory_space<vmem>>, vector<2x14x1x14x64xf32>
    %3 = vector.shape_cast %2 : vector<2x14x1x14x64xf32> to vector<2x14x14x64xf32>
    %4 = arith.maximumf %1, %3 : vector<2x14x14x64xf32>
    %5 = vector.extract_strided_slice %4 {offsets = [0, 0, 0, 0], sizes = [2, 14, 14, 32], strides = [1, 1, 1, 1]} : vector<2x14x14x64xf32> to vector<2x14x14x32xf32>
    %6 = vector.extract_strided_slice %4 {offsets = [0, 0, 0, 32], sizes = [2, 14, 14, 32], strides = [1, 1, 1, 1]} : vector<2x14x14x64xf32> to vector<2x14x14x32xf32>
    %7 = arith.maximumf %5, %6 : vector<2x14x14x32xf32>
    %c0_8 = arith.constant 0 : index
    %c0_9 = arith.constant 0 : index
    %c0_10 = arith.constant 0 : index
    %c0_11 = arith.constant 0 : index
    %8 = vector.load %arg1[%c0_8, %c0_9, %c0_10, %c0_11] : memref<2x14x14x32xf32, #tpu.memory_space<vmem>>, vector<2x14x14x32xf32>
    tpu.vector_store %arg1[%c0_8, %c0_9, %c0_10, %c0_11], %7 {strides = array<i32>} : memref<2x14x14x32xf32, #tpu.memory_space<vmem>>, vector<2x14x14x32xf32>,
    return
  }
}

module attributes {stable_mosaic.version = 11 : i64} {
  func.func @_conv_kernel(%arg0: i32, %arg1: memref<1x18x18x32xf32, #tpu.memory_space<vmem>>, %arg2: memref<25x32x64xf32, #tpu.memory_space<vmem>>, %arg3: memref<1x64xf32, #tpu.memory_space<vmem>>, %arg4: memref<1x14x14x64xf32, #tpu.memory_space<vmem>>) attributes {dimension_semantics = [#tpu.dimension_semantics<parallel>], iteration_bounds = array<i64: 2>, scalar_prefetch = 0 : i64, scratch_operands = 0 : i64, tpu.core_type = #tpu.core_type<tc>, window_params = [{transform_indices = @transform_0, window_bounds = array<i64: 1, 18, 18, 32>}, {pipeline_mode = #tpu.pipeline_mode<synchronous>, transform_indices = @transform_1, window_bounds = array<i64: 25, 32, 64>}, {pipeline_mode = #tpu.pipeline_mode<synchronous>, transform_indices = @transform_2, window_bounds = array<i64: 1, 64>}, {transform_indices = @transform_3, window_bounds = array<i64: 1, 14, 14, 64>}]} {
    %c0 = arith.constant 0 : index
    %c0_0 = arith.constant 0 : index
    %0 = vector.load %arg3[%c0, %c0_0] : memref<1x64xf32, #tpu.memory_space<vmem>>, vector<1x64xf32>
    %c0_i32 = arith.constant 0 : i32
    %c14_i32 = arith.constant 14 : i32
    %1 = arith.addi %c0_i32, %c14_i32 : i32
    %c1_i32 = arith.constant 1 : i32
    scf.for %arg5 = %c0_i32 to %1 step %c1_i32  : i32 {
      %cst = arith.constant 0.000000e+00 : f32
      %2 = vector.broadcast %cst : f32 to vector<14x64xf32>
      %c0_i32_2 = arith.constant 0 : i32
      %3 = arith.addi %arg5, %c0_i32_2 : i32
      %c0_3 = arith.constant 0 : index
      %4 = arith.index_cast %3 : i32 to index
      %c0_4 = arith.constant 0 : index
      %c0_5 = arith.constant 0 : index
      %5 = vector.load %arg1[%c0_3, %4, %c0_4, %c0_5] : memref<1x18x18x32xf32, #tpu.memory_space<vmem>>, vector<1x1x14x32xf32>
      %6 = vector.shape_cast %5 : vector<1x1x14x32xf32> to vector<14x32xf32>
      %c0_6 = arith.constant 0 : index
      %c0_7 = arith.constant 0 : index
      %c0_8 = arith.constant 0 : index
      %7 = vector.load %arg2[%c0_6, %c0_7, %c0_8] : memref<25x32x64xf32, #tpu.memory_space<vmem>>, vector<1x32x64xf32>
      %8 = vector.shape_cast %7 : vector<1x32x64xf32> to vector<32x64xf32>
      %cst_9 = arith.constant dense<0.000000e+00> : vector<14x64xf32>
      %9 = tpu.matmul %6, %8, %cst_9 {dimension_numbers = #tpu.dot_dimension_numbers<[1], [0], [0], [1], [0, 0, 1, 1], [], []>} : vector<14x32xf32>, vector<32x64xf32>, vector<14x64xf32> -> vector<14x64xf32>
      %10 = arith.addf %2, %9 : vector<14x64xf32>
      %c0_i32_10 = arith.constant 0 : i32
      %11 = arith.addi %arg5, %c0_i32_10 : i32
      %c0_11 = arith.constant 0 : index
      %12 = arith.index_cast %11 : i32 to index
      %c1 = arith.constant 1 : index
      %c0_12 = arith.constant 0 : index
      %13 = vector.load %arg1[%c0_11, %12, %c1, %c0_12] : memref<1x18x18x32xf32, #tpu.memory_space<vmem>>, vector<1x1x14x32xf32>
      %14 = vector.shape_cast %13 : vector<1x1x14x32xf32> to vector<14x32xf32>
      %c1_13 = arith.constant 1 : index
      %c0_14 = arith.constant 0 : index
      %c0_15 = arith.constant 0 : index
      %15 = vector.load %arg2[%c1_13, %c0_14, %c0_15] : memref<25x32x64xf32, #tpu.memory_space<vmem>>, vector<1x32x64xf32>
      %16 = vector.shape_cast %15 : vector<1x32x64xf32> to vector<32x64xf32>
      %cst_16 = arith.constant dense<0.000000e+00> : vector<14x64xf32>
      %17 = tpu.matmul %14, %16, %cst_16 {dimension_numbers = #tpu.dot_dimension_numbers<[1], [0], [0], [1], [0, 0, 1, 1], [], []>} : vector<14x32xf32>, vector<32x64xf32>, vector<14x64xf32> -> vector<14x64xf32>
      %18 = arith.addf %10, %17 : vector<14x64xf32>
      %c0_i32_17 = arith.constant 0 : i32
      %19 = arith.addi %arg5, %c0_i32_17 : i32
      %c0_18 = arith.constant 0 : index
      %20 = arith.index_cast %19 : i32 to index
      %c2 = arith.constant 2 : index
      %c0_19 = arith.constant 0 : index
      %21 = vector.load %arg1[%c0_18, %20, %c2, %c0_19] : memref<1x18x18x32xf32, #tpu.memory_space<vmem>>, vector<1x1x14x32xf32>
      %22 = vector.shape_cast %21 : vector<1x1x14x32xf32> to vector<14x32xf32>
      %c2_20 = arith.constant 2 : index
      %c0_21 = arith.constant 0 : index
      %c0_22 = arith.constant 0 : index
      %23 = vector.load %arg2[%c2_20, %c0_21, %c0_22] : memref<25x32x64xf32, #tpu.memory_space<vmem>>, vector<1x32x64xf32>
      %24 = vector.shape_cast %23 : vector<1x32x64xf32> to vector<32x64xf32>
      %cst_23 = arith.constant dense<0.000000e+00> : vector<14x64xf32>
      %25 = tpu.matmul %22, %24, %cst_23 {dimension_numbers = #tpu.dot_dimension_numbers<[1], [0], [0], [1], [0, 0, 1, 1], [], []>} : vector<14x32xf32>, vector<32x64xf32>, vector<14x64xf32> -> vector<14x64xf32>
      %26 = arith.addf %18, %25 : vector<14x64xf32>
      %c0_i32_24 = arith.constant 0 : i32
      %27 = arith.addi %arg5, %c0_i32_24 : i32
      %c0_25 = arith.constant 0 : index
      %28 = arith.index_cast %27 : i32 to index
      %c3 = arith.constant 3 : index
      %c0_26 = arith.constant 0 : index
      %29 = vector.load %arg1[%c0_25, %28, %c3, %c0_26] : memref<1x18x18x32xf32, #tpu.memory_space<vmem>>, vector<1x1x14x32xf32>
      %30 = vector.shape_cast %29 : vector<1x1x14x32xf32> to vector<14x32xf32>
      %c3_27 = arith.constant 3 : index
      %c0_28 = arith.constant 0 : index
      %c0_29 = arith.constant 0 : index
      %31 = vector.load %arg2[%c3_27, %c0_28, %c0_29] : memref<25x32x64xf32, #tpu.memory_space<vmem>>, vector<1x32x64xf32>
      %32 = vector.shape_cast %31 : vector<1x32x64xf32> to vector<32x64xf32>
      %cst_30 = arith.constant dense<0.000000e+00> : vector<14x64xf32>
      %33 = tpu.matmul %30, %32, %cst_30 {dimension_numbers = #tpu.dot_dimension_numbers<[1], [0], [0], [1], [0, 0, 1, 1], [], []>} : vector<14x32xf32>, vector<32x64xf32>, vector<14x64xf32> -> vector<14x64xf32>
      %34 = arith.addf %26, %33 : vector<14x64xf32>
      %c0_i32_31 = arith.constant 0 : i32
      %35 = arith.addi %arg5, %c0_i32_31 : i32
      %c0_32 = arith.constant 0 : index
      %36 = arith.index_cast %35 : i32 to index
      %c4 = arith.constant 4 : index
      %c0_33 = arith.constant 0 : index
      %37 = vector.load %arg1[%c0_32, %36, %c4, %c0_33] : memref<1x18x18x32xf32, #tpu.memory_space<vmem>>, vector<1x1x14x32xf32>
      %38 = vector.shape_cast %37 : vector<1x1x14x32xf32> to vector<14x32xf32>
      %c4_34 = arith.constant 4 : index
      %c0_35 = arith.constant 0 : index
      %c0_36 = arith.constant 0 : index
      %39 = vector.load %arg2[%c4_34, %c0_35, %c0_36] : memref<25x32x64xf32, #tpu.memory_space<vmem>>, vector<1x32x64xf32>
      %40 = vector.shape_cast %39 : vector<1x32x64xf32> to vector<32x64xf32>
      %cst_37 = arith.constant dense<0.000000e+00> : vector<14x64xf32>
      %41 = tpu.matmul %38, %40, %cst_37 {dimension_numbers = #tpu.dot_dimension_numbers<[1], [0], [0], [1], [0, 0, 1, 1], [], []>} : vector<14x32xf32>, vector<32x64xf32>, vector<14x64xf32> -> vector<14x64xf32>
      %42 = arith.addf %34, %41 : vector<14x64xf32>
      %c1_i32_38 = arith.constant 1 : i32
      %43 = arith.addi %arg5, %c1_i32_38 : i32
      %c0_39 = arith.constant 0 : index
      %44 = arith.index_cast %43 : i32 to index
      %c0_40 = arith.constant 0 : index
      %c0_41 = arith.constant 0 : index
      %45 = vector.load %arg1[%c0_39, %44, %c0_40, %c0_41] : memref<1x18x18x32xf32, #tpu.memory_space<vmem>>, vector<1x1x14x32xf32>
      %46 = vector.shape_cast %45 : vector<1x1x14x32xf32> to vector<14x32xf32>
      %c5 = arith.constant 5 : index
      %c0_42 = arith.constant 0 : index
      %c0_43 = arith.constant 0 : index
      %47 = vector.load %arg2[%c5, %c0_42, %c0_43] : memref<25x32x64xf32, #tpu.memory_space<vmem>>, vector<1x32x64xf32>
      %48 = vector.shape_cast %47 : vector<1x32x64xf32> to vector<32x64xf32>
      %cst_44 = arith.constant dense<0.000000e+00> : vector<14x64xf32>
      %49 = tpu.matmul %46, %48, %cst_44 {dimension_numbers = #tpu.dot_dimension_numbers<[1], [0], [0], [1], [0, 0, 1, 1], [], []>} : vector<14x32xf32>, vector<32x64xf32>, vector<14x64xf32> -> vector<14x64xf32>
      %50 = arith.addf %42, %49 : vector<14x64xf32>
      %c1_i32_45 = arith.constant 1 : i32
      %51 = arith.addi %arg5, %c1_i32_45 : i32
      %c0_46 = arith.constant 0 : index
      %52 = arith.index_cast %51 : i32 to index
      %c1_47 = arith.constant 1 : index
      %c0_48 = arith.constant 0 : index
      %53 = vector.load %arg1[%c0_46, %52, %c1_47, %c0_48] : memref<1x18x18x32xf32, #tpu.memory_space<vmem>>, vector<1x1x14x32xf32>
      %54 = vector.shape_cast %53 : vector<1x1x14x32xf32> to vector<14x32xf32>
      %c6 = arith.constant 6 : index
      %c0_49 = arith.constant 0 : index
      %c0_50 = arith.constant 0 : index
      %55 = vector.load %arg2[%c6, %c0_49, %c0_50] : memref<25x32x64xf32, #tpu.memory_space<vmem>>, vector<1x32x64xf32>
      %56 = vector.shape_cast %55 : vector<1x32x64xf32> to vector<32x64xf32>
      %cst_51 = arith.constant dense<0.000000e+00> : vector<14x64xf32>
      %57 = tpu.matmul %54, %56, %cst_51 {dimension_numbers = #tpu.dot_dimension_numbers<[1], [0], [0], [1], [0, 0, 1, 1], [], []>} : vector<14x32xf32>, vector<32x64xf32>, vector<14x64xf32> -> vector<14x64xf32>
      %58 = arith.addf %50, %57 : vector<14x64xf32>
      %c1_i32_52 = arith.constant 1 : i32
      %59 = arith.addi %arg5, %c1_i32_52 : i32
      %c0_53 = arith.constant 0 : index
      %60 = arith.index_cast %59 : i32 to index
      %c2_54 = arith.constant 2 : index
      %c0_55 = arith.constant 0 : index
      %61 = vector.load %arg1[%c0_53, %60, %c2_54, %c0_55] : memref<1x18x18x32xf32, #tpu.memory_space<vmem>>, vector<1x1x14x32xf32>
      %62 = vector.shape_cast %61 : vector<1x1x14x32xf32> to vector<14x32xf32>
      %c7 = arith.constant 7 : index
      %c0_56 = arith.constant 0 : index
      %c0_57 = arith.constant 0 : index
      %63 = vector.load %arg2[%c7, %c0_56, %c0_57] : memref<25x32x64xf32, #tpu.memory_space<vmem>>, vector<1x32x64xf32>
      %64 = vector.shape_cast %63 : vector<1x32x64xf32> to vector<32x64xf32>
      %cst_58 = arith.constant dense<0.000000e+00> : vector<14x64xf32>
      %65 = tpu.matmul %62, %64, %cst_58 {dimension_numbers = #tpu.dot_dimension_numbers<[1], [0], [0], [1], [0, 0, 1, 1], [], []>} : vector<14x32xf32>, vector<32x64xf32>, vector<14x64xf32> -> vector<14x64xf32>
      %66 = arith.addf %58, %65 : vector<14x64xf32>
      %c1_i32_59 = arith.constant 1 : i32
      %67 = arith.addi %arg5, %c1_i32_59 : i32
      %c0_60 = arith.constant 0 : index
      %68 = arith.index_cast %67 : i32 to index
      %c3_61 = arith.constant 3 : index
      %c0_62 = arith.constant 0 : index
      %69 = vector.load %arg1[%c0_60, %68, %c3_61, %c0_62] : memref<1x18x18x32xf32, #tpu.memory_space<vmem>>, vector<1x1x14x32xf32>
      %70 = vector.shape_cast %69 : vector<1x1x14x32xf32> to vector<14x32xf32>
      %c8 = arith.constant 8 : index
      %c0_63 = arith.constant 0 : index
      %c0_64 = arith.constant 0 : index
      %71 = vector.load %arg2[%c8, %c0_63, %c0_64] : memref<25x32x64xf32, #tpu.memory_space<vmem>>, vector<1x32x64xf32>
      %72 = vector.shape_cast %71 : vector<1x32x64xf32> to vector<32x64xf32>
      %cst_65 = arith.constant dense<0.000000e+00> : vector<14x64xf32>
      %73 = tpu.matmul %70, %72, %cst_65 {dimension_numbers = #tpu.dot_dimension_numbers<[1], [0], [0], [1], [0, 0, 1, 1], [], []>} : vector<14x32xf32>, vector<32x64xf32>, vector<14x64xf32> -> vector<14x64xf32>
      %74 = arith.addf %66, %73 : vector<14x64xf32>
      %c1_i32_66 = arith.constant 1 : i32
      %75 = arith.addi %arg5, %c1_i32_66 : i32
      %c0_67 = arith.constant 0 : index
      %76 = arith.index_cast %75 : i32 to index
      %c4_68 = arith.constant 4 : index
      %c0_69 = arith.constant 0 : index
      %77 = vector.load %arg1[%c0_67, %76, %c4_68, %c0_69] : memref<1x18x18x32xf32, #tpu.memory_space<vmem>>, vector<1x1x14x32xf32>
      %78 = vector.shape_cast %77 : vector<1x1x14x32xf32> to vector<14x32xf32>
      %c9 = arith.constant 9 : index
      %c0_70 = arith.constant 0 : index
      %c0_71 = arith.constant 0 : index
      %79 = vector.load %arg2[%c9, %c0_70, %c0_71] : memref<25x32x64xf32, #tpu.memory_space<vmem>>, vector<1x32x64xf32>
      %80 = vector.shape_cast %79 : vector<1x32x64xf32> to vector<32x64xf32>
      %cst_72 = arith.constant dense<0.000000e+00> : vector<14x64xf32>
      %81 = tpu.matmul %78, %80, %cst_72 {dimension_numbers = #tpu.dot_dimension_numbers<[1], [0], [0], [1], [0, 0, 1, 1], [], []>} : vector<14x32xf32>, vector<32x64xf32>, vector<14x64xf32> -> vector<14x64xf32>
      %82 = arith.addf %74, %81 : vector<14x64xf32>
      %c2_i32 = arith.constant 2 : i32
      %83 = arith.addi %arg5, %c2_i32 : i32
      %c0_73 = arith.constant 0 : index
      %84 = arith.index_cast %83 : i32 to index
      %c0_74 = arith.constant 0 : index
      %c0_75 = arith.constant 0 : index
      %85 = vector.load %arg1[%c0_73, %84, %c0_74, %c0_75] : memref<1x18x18x32xf32, #tpu.memory_space<vmem>>, vector<1x1x14x32xf32>
      %86 = vector.shape_cast %85 : vector<1x1x14x32xf32> to vector<14x32xf32>
      %c10 = arith.constant 10 : index
      %c0_76 = arith.constant 0 : index
      %c0_77 = arith.constant 0 : index
      %87 = vector.load %arg2[%c10, %c0_76, %c0_77] : memref<25x32x64xf32, #tpu.memory_space<vmem>>, vector<1x32x64xf32>
      %88 = vector.shape_cast %87 : vector<1x32x64xf32> to vector<32x64xf32>
      %cst_78 = arith.constant dense<0.000000e+00> : vector<14x64xf32>
      %89 = tpu.matmul %86, %88, %cst_78 {dimension_numbers = #tpu.dot_dimension_numbers<[1], [0], [0], [1], [0, 0, 1, 1], [], []>} : vector<14x32xf32>, vector<32x64xf32>, vector<14x64xf32> -> vector<14x64xf32>
      %90 = arith.addf %82, %89 : vector<14x64xf32>
      %c2_i32_79 = arith.constant 2 : i32
      %91 = arith.addi %arg5, %c2_i32_79 : i32
      %c0_80 = arith.constant 0 : index
      %92 = arith.index_cast %91 : i32 to index
      %c1_81 = arith.constant 1 : index
      %c0_82 = arith.constant 0 : index
      %93 = vector.load %arg1[%c0_80, %92, %c1_81, %c0_82] : memref<1x18x18x32xf32, #tpu.memory_space<vmem>>, vector<1x1x14x32xf32>
      %94 = vector.shape_cast %93 : vector<1x1x14x32xf32> to vector<14x32xf32>
      %c11 = arith.constant 11 : index
      %c0_83 = arith.constant 0 : index
      %c0_84 = arith.constant 0 : index
      %95 = vector.load %arg2[%c11, %c0_83, %c0_84] : memref<25x32x64xf32, #tpu.memory_space<vmem>>, vector<1x32x64xf32>
      %96 = vector.shape_cast %95 : vector<1x32x64xf32> to vector<32x64xf32>
      %cst_85 = arith.constant dense<0.000000e+00> : vector<14x64xf32>
      %97 = tpu.matmul %94, %96, %cst_85 {dimension_numbers = #tpu.dot_dimension_numbers<[1], [0], [0], [1], [0, 0, 1, 1], [], []>} : vector<14x32xf32>, vector<32x64xf32>, vector<14x64xf32> -> vector<14x64xf32>
      %98 = arith.addf %90, %97 : vector<14x64xf32>
      %c2_i32_86 = arith.constant 2 : i32
      %99 = arith.addi %arg5, %c2_i32_86 : i32
      %c0_87 = arith.constant 0 : index
      %100 = arith.index_cast %99 : i32 to index
      %c2_88 = arith.constant 2 : index
      %c0_89 = arith.constant 0 : index
      %101 = vector.load %arg1[%c0_87, %100, %c2_88, %c0_89] : memref<1x18x18x32xf32, #tpu.memory_space<vmem>>, vector<1x1x14x32xf32>
      %102 = vector.shape_cast %101 : vector<1x1x14x32xf32> to vector<14x32xf32>
      %c12 = arith.constant 12 : index
      %c0_90 = arith.constant 0 : index
      %c0_91 = arith.constant 0 : index
      %103 = vector.load %arg2[%c12, %c0_90, %c0_91] : memref<25x32x64xf32, #tpu.memory_space<vmem>>, vector<1x32x64xf32>
      %104 = vector.shape_cast %103 : vector<1x32x64xf32> to vector<32x64xf32>
      %cst_92 = arith.constant dense<0.000000e+00> : vector<14x64xf32>
      %105 = tpu.matmul %102, %104, %cst_92 {dimension_numbers = #tpu.dot_dimension_numbers<[1], [0], [0], [1], [0, 0, 1, 1], [], []>} : vector<14x32xf32>, vector<32x64xf32>, vector<14x64xf32> -> vector<14x64xf32>
      %106 = arith.addf %98, %105 : vector<14x64xf32>
      %c2_i32_93 = arith.constant 2 : i32
      %107 = arith.addi %arg5, %c2_i32_93 : i32
      %c0_94 = arith.constant 0 : index
      %108 = arith.index_cast %107 : i32 to index
      %c3_95 = arith.constant 3 : index
      %c0_96 = arith.constant 0 : index
      %109 = vector.load %arg1[%c0_94, %108, %c3_95, %c0_96] : memref<1x18x18x32xf32, #tpu.memory_space<vmem>>, vector<1x1x14x32xf32>
      %110 = vector.shape_cast %109 : vector<1x1x14x32xf32> to vector<14x32xf32>
      %c13 = arith.constant 13 : index
      %c0_97 = arith.constant 0 : index
      %c0_98 = arith.constant 0 : index
      %111 = vector.load %arg2[%c13, %c0_97, %c0_98] : memref<25x32x64xf32, #tpu.memory_space<vmem>>, vector<1x32x64xf32>
      %112 = vector.shape_cast %111 : vector<1x32x64xf32> to vector<32x64xf32>
      %cst_99 = arith.constant dense<0.000000e+00> : vector<14x64xf32>
      %113 = tpu.matmul %110, %112, %cst_99 {dimension_numbers = #tpu.dot_dimension_numbers<[1], [0], [0], [1], [0, 0, 1, 1], [], []>} : vector<14x32xf32>, vector<32x64xf32>, vector<14x64xf32> -> vector<14x64xf32>
      %114 = arith.addf %106, %113 : vector<14x64xf32>
      %c2_i32_100 = arith.constant 2 : i32
      %115 = arith.addi %arg5, %c2_i32_100 : i32
      %c0_101 = arith.constant 0 : index
      %116 = arith.index_cast %115 : i32 to index
      %c4_102 = arith.constant 4 : index
      %c0_103 = arith.constant 0 : index
      %117 = vector.load %arg1[%c0_101, %116, %c4_102, %c0_103] : memref<1x18x18x32xf32, #tpu.memory_space<vmem>>, vector<1x1x14x32xf32>
      %118 = vector.shape_cast %117 : vector<1x1x14x32xf32> to vector<14x32xf32>
      %c14 = arith.constant 14 : index
      %c0_104 = arith.constant 0 : index
      %c0_105 = arith.constant 0 : index
      %119 = vector.load %arg2[%c14, %c0_104, %c0_105] : memref<25x32x64xf32, #tpu.memory_space<vmem>>, vector<1x32x64xf32>
      %120 = vector.shape_cast %119 : vector<1x32x64xf32> to vector<32x64xf32>
      %cst_106 = arith.constant dense<0.000000e+00> : vector<14x64xf32>
      %121 = tpu.matmul %118, %120, %cst_106 {dimension_numbers = #tpu.dot_dimension_numbers<[1], [0], [0], [1], [0, 0, 1, 1], [], []>} : vector<14x32xf32>, vector<32x64xf32>, vector<14x64xf32> -> vector<14x64xf32>
      %122 = arith.addf %114, %121 : vector<14x64xf32>
      %c3_i32 = arith.constant 3 : i32
      %123 = arith.addi %arg5, %c3_i32 : i32
      %c0_107 = arith.constant 0 : index
      %124 = arith.index_cast %123 : i32 to index
      %c0_108 = arith.constant 0 : index
      %c0_109 = arith.constant 0 : index
      %125 = vector.load %arg1[%c0_107, %124, %c0_108, %c0_109] : memref<1x18x18x32xf32, #tpu.memory_space<vmem>>, vector<1x1x14x32xf32>
      %126 = vector.shape_cast %125 : vector<1x1x14x32xf32> to vector<14x32xf32>
      %c15 = arith.constant 15 : index
      %c0_110 = arith.constant 0 : index
      %c0_111 = arith.constant 0 : index
      %127 = vector.load %arg2[%c15, %c0_110, %c0_111] : memref<25x32x64xf32, #tpu.memory_space<vmem>>, vector<1x32x64xf32>
      %128 = vector.shape_cast %127 : vector<1x32x64xf32> to vector<32x64xf32>
      %cst_112 = arith.constant dense<0.000000e+00> : vector<14x64xf32>
      %129 = tpu.matmul %126, %128, %cst_112 {dimension_numbers = #tpu.dot_dimension_numbers<[1], [0], [0], [1], [0, 0, 1, 1], [], []>} : vector<14x32xf32>, vector<32x64xf32>, vector<14x64xf32> -> vector<14x64xf32>
      %130 = arith.addf %122, %129 : vector<14x64xf32>
      %c3_i32_113 = arith.constant 3 : i32
      %131 = arith.addi %arg5, %c3_i32_113 : i32
      %c0_114 = arith.constant 0 : index
      %132 = arith.index_cast %131 : i32 to index
      %c1_115 = arith.constant 1 : index
      %c0_116 = arith.constant 0 : index
      %133 = vector.load %arg1[%c0_114, %132, %c1_115, %c0_116] : memref<1x18x18x32xf32, #tpu.memory_space<vmem>>, vector<1x1x14x32xf32>
      %134 = vector.shape_cast %133 : vector<1x1x14x32xf32> to vector<14x32xf32>
      %c16 = arith.constant 16 : index
      %c0_117 = arith.constant 0 : index
      %c0_118 = arith.constant 0 : index
      %135 = vector.load %arg2[%c16, %c0_117, %c0_118] : memref<25x32x64xf32, #tpu.memory_space<vmem>>, vector<1x32x64xf32>
      %136 = vector.shape_cast %135 : vector<1x32x64xf32> to vector<32x64xf32>
      %cst_119 = arith.constant dense<0.000000e+00> : vector<14x64xf32>
      %137 = tpu.matmul %134, %136, %cst_119 {dimension_numbers = #tpu.dot_dimension_numbers<[1], [0], [0], [1], [0, 0, 1, 1], [], []>} : vector<14x32xf32>, vector<32x64xf32>, vector<14x64xf32> -> vector<14x64xf32>
      %138 = arith.addf %130, %137 : vector<14x64xf32>
      %c3_i32_120 = arith.constant 3 : i32
      %139 = arith.addi %arg5, %c3_i32_120 : i32
      %c0_121 = arith.constant 0 : index
      %140 = arith.index_cast %139 : i32 to index
      %c2_122 = arith.constant 2 : index
      %c0_123 = arith.constant 0 : index
      %141 = vector.load %arg1[%c0_121, %140, %c2_122, %c0_123] : memref<1x18x18x32xf32, #tpu.memory_space<vmem>>, vector<1x1x14x32xf32>
      %142 = vector.shape_cast %141 : vector<1x1x14x32xf32> to vector<14x32xf32>
      %c17 = arith.constant 17 : index
      %c0_124 = arith.constant 0 : index
      %c0_125 = arith.constant 0 : index
      %143 = vector.load %arg2[%c17, %c0_124, %c0_125] : memref<25x32x64xf32, #tpu.memory_space<vmem>>, vector<1x32x64xf32>
      %144 = vector.shape_cast %143 : vector<1x32x64xf32> to vector<32x64xf32>
      %cst_126 = arith.constant dense<0.000000e+00> : vector<14x64xf32>
      %145 = tpu.matmul %142, %144, %cst_126 {dimension_numbers = #tpu.dot_dimension_numbers<[1], [0], [0], [1], [0, 0, 1, 1], [], []>} : vector<14x32xf32>, vector<32x64xf32>, vector<14x64xf32> -> vector<14x64xf32>
      %146 = arith.addf %138, %145 : vector<14x64xf32>
      %c3_i32_127 = arith.constant 3 : i32
      %147 = arith.addi %arg5, %c3_i32_127 : i32
      %c0_128 = arith.constant 0 : index
      %148 = arith.index_cast %147 : i32 to index
      %c3_129 = arith.constant 3 : index
      %c0_130 = arith.constant 0 : index
      %149 = vector.load %arg1[%c0_128, %148, %c3_129, %c0_130] : memref<1x18x18x32xf32, #tpu.memory_space<vmem>>, vector<1x1x14x32xf32>
      %150 = vector.shape_cast %149 : vector<1x1x14x32xf32> to vector<14x32xf32>
      %c18 = arith.constant 18 : index
      %c0_131 = arith.constant 0 : index
      %c0_132 = arith.constant 0 : index
      %151 = vector.load %arg2[%c18, %c0_131, %c0_132] : memref<25x32x64xf32, #tpu.memory_space<vmem>>, vector<1x32x64xf32>
      %152 = vector.shape_cast %151 : vector<1x32x64xf32> to vector<32x64xf32>
      %cst_133 = arith.constant dense<0.000000e+00> : vector<14x64xf32>
      %153 = tpu.matmul %150, %152, %cst_133 {dimension_numbers = #tpu.dot_dimension_numbers<[1], [0], [0], [1], [0, 0, 1, 1], [], []>} : vector<14x32xf32>, vector<32x64xf32>, vector<14x64xf32> -> vector<14x64xf32>
      %154 = arith.addf %146, %153 : vector<14x64xf32>
      %c3_i32_134 = arith.constant 3 : i32
      %155 = arith.addi %arg5, %c3_i32_134 : i32
      %c0_135 = arith.constant 0 : index
      %156 = arith.index_cast %155 : i32 to index
      %c4_136 = arith.constant 4 : index
      %c0_137 = arith.constant 0 : index
      %157 = vector.load %arg1[%c0_135, %156, %c4_136, %c0_137] : memref<1x18x18x32xf32, #tpu.memory_space<vmem>>, vector<1x1x14x32xf32>
      %158 = vector.shape_cast %157 : vector<1x1x14x32xf32> to vector<14x32xf32>
      %c19 = arith.constant 19 : index
      %c0_138 = arith.constant 0 : index
      %c0_139 = arith.constant 0 : index
      %159 = vector.load %arg2[%c19, %c0_138, %c0_139] : memref<25x32x64xf32, #tpu.memory_space<vmem>>, vector<1x32x64xf32>
      %160 = vector.shape_cast %159 : vector<1x32x64xf32> to vector<32x64xf32>
      %cst_140 = arith.constant dense<0.000000e+00> : vector<14x64xf32>
      %161 = tpu.matmul %158, %160, %cst_140 {dimension_numbers = #tpu.dot_dimension_numbers<[1], [0], [0], [1], [0, 0, 1, 1], [], []>} : vector<14x32xf32>, vector<32x64xf32>, vector<14x64xf32> -> vector<14x64xf32>
      %162 = arith.addf %154, %161 : vector<14x64xf32>
      %c4_i32 = arith.constant 4 : i32
      %163 = arith.addi %arg5, %c4_i32 : i32
      %c0_141 = arith.constant 0 : index
      %164 = arith.index_cast %163 : i32 to index
      %c0_142 = arith.constant 0 : index
      %c0_143 = arith.constant 0 : index
      %165 = vector.load %arg1[%c0_141, %164, %c0_142, %c0_143] : memref<1x18x18x32xf32, #tpu.memory_space<vmem>>, vector<1x1x14x32xf32>
      %166 = vector.shape_cast %165 : vector<1x1x14x32xf32> to vector<14x32xf32>
      %c20 = arith.constant 20 : index
      %c0_144 = arith.constant 0 : index
      %c0_145 = arith.constant 0 : index
      %167 = vector.load %arg2[%c20, %c0_144, %c0_145] : memref<25x32x64xf32, #tpu.memory_space<vmem>>, vector<1x32x64xf32>
      %168 = vector.shape_cast %167 : vector<1x32x64xf32> to vector<32x64xf32>
      %cst_146 = arith.constant dense<0.000000e+00> : vector<14x64xf32>
      %169 = tpu.matmul %166, %168, %cst_146 {dimension_numbers = #tpu.dot_dimension_numbers<[1], [0], [0], [1], [0, 0, 1, 1], [], []>} : vector<14x32xf32>, vector<32x64xf32>, vector<14x64xf32> -> vector<14x64xf32>
      %170 = arith.addf %162, %169 : vector<14x64xf32>
      %c4_i32_147 = arith.constant 4 : i32
      %171 = arith.addi %arg5, %c4_i32_147 : i32
      %c0_148 = arith.constant 0 : index
      %172 = arith.index_cast %171 : i32 to index
      %c1_149 = arith.constant 1 : index
      %c0_150 = arith.constant 0 : index
      %173 = vector.load %arg1[%c0_148, %172, %c1_149, %c0_150] : memref<1x18x18x32xf32, #tpu.memory_space<vmem>>, vector<1x1x14x32xf32>
      %174 = vector.shape_cast %173 : vector<1x1x14x32xf32> to vector<14x32xf32>
      %c21 = arith.constant 21 : index
      %c0_151 = arith.constant 0 : index
      %c0_152 = arith.constant 0 : index
      %175 = vector.load %arg2[%c21, %c0_151, %c0_152] : memref<25x32x64xf32, #tpu.memory_space<vmem>>, vector<1x32x64xf32>
      %176 = vector.shape_cast %175 : vector<1x32x64xf32> to vector<32x64xf32>
      %cst_153 = arith.constant dense<0.000000e+00> : vector<14x64xf32>
      %177 = tpu.matmul %174, %176, %cst_153 {dimension_numbers = #tpu.dot_dimension_numbers<[1], [0], [0], [1], [0, 0, 1, 1], [], []>} : vector<14x32xf32>, vector<32x64xf32>, vector<14x64xf32> -> vector<14x64xf32>
      %178 = arith.addf %170, %177 : vector<14x64xf32>
      %c4_i32_154 = arith.constant 4 : i32
      %179 = arith.addi %arg5, %c4_i32_154 : i32
      %c0_155 = arith.constant 0 : index
      %180 = arith.index_cast %179 : i32 to index
      %c2_156 = arith.constant 2 : index
      %c0_157 = arith.constant 0 : index
      %181 = vector.load %arg1[%c0_155, %180, %c2_156, %c0_157] : memref<1x18x18x32xf32, #tpu.memory_space<vmem>>, vector<1x1x14x32xf32>
      %182 = vector.shape_cast %181 : vector<1x1x14x32xf32> to vector<14x32xf32>
      %c22 = arith.constant 22 : index
      %c0_158 = arith.constant 0 : index
      %c0_159 = arith.constant 0 : index
      %183 = vector.load %arg2[%c22, %c0_158, %c0_159] : memref<25x32x64xf32, #tpu.memory_space<vmem>>, vector<1x32x64xf32>
      %184 = vector.shape_cast %183 : vector<1x32x64xf32> to vector<32x64xf32>
      %cst_160 = arith.constant dense<0.000000e+00> : vector<14x64xf32>
      %185 = tpu.matmul %182, %184, %cst_160 {dimension_numbers = #tpu.dot_dimension_numbers<[1], [0], [0], [1], [0, 0, 1, 1], [], []>} : vector<14x32xf32>, vector<32x64xf32>, vector<14x64xf32> -> vector<14x64xf32>
      %186 = arith.addf %178, %185 : vector<14x64xf32>
      %c4_i32_161 = arith.constant 4 : i32
      %187 = arith.addi %arg5, %c4_i32_161 : i32
      %c0_162 = arith.constant 0 : index
      %188 = arith.index_cast %187 : i32 to index
      %c3_163 = arith.constant 3 : index
      %c0_164 = arith.constant 0 : index
      %189 = vector.load %arg1[%c0_162, %188, %c3_163, %c0_164] : memref<1x18x18x32xf32, #tpu.memory_space<vmem>>, vector<1x1x14x32xf32>
      %190 = vector.shape_cast %189 : vector<1x1x14x32xf32> to vector<14x32xf32>
      %c23 = arith.constant 23 : index
      %c0_165 = arith.constant 0 : index
      %c0_166 = arith.constant 0 : index
      %191 = vector.load %arg2[%c23, %c0_165, %c0_166] : memref<25x32x64xf32, #tpu.memory_space<vmem>>, vector<1x32x64xf32>
      %192 = vector.shape_cast %191 : vector<1x32x64xf32> to vector<32x64xf32>
      %cst_167 = arith.constant dense<0.000000e+00> : vector<14x64xf32>
      %193 = tpu.matmul %190, %192, %cst_167 {dimension_numbers = #tpu.dot_dimension_numbers<[1], [0], [0], [1], [0, 0, 1, 1], [], []>} : vector<14x32xf32>, vector<32x64xf32>, vector<14x64xf32> -> vector<14x64xf32>
      %194 = arith.addf %186, %193 : vector<14x64xf32>
      %c4_i32_168 = arith.constant 4 : i32
      %195 = arith.addi %arg5, %c4_i32_168 : i32
      %c0_169 = arith.constant 0 : index
      %196 = arith.index_cast %195 : i32 to index
      %c4_170 = arith.constant 4 : index
      %c0_171 = arith.constant 0 : index
      %197 = vector.load %arg1[%c0_169, %196, %c4_170, %c0_171] : memref<1x18x18x32xf32, #tpu.memory_space<vmem>>, vector<1x1x14x32xf32>
      %198 = vector.shape_cast %197 : vector<1x1x14x32xf32> to vector<14x32xf32>
      %c24 = arith.constant 24 : index
      %c0_172 = arith.constant 0 : index
      %c0_173 = arith.constant 0 : index
      %199 = vector.load %arg2[%c24, %c0_172, %c0_173] : memref<25x32x64xf32, #tpu.memory_space<vmem>>, vector<1x32x64xf32>
      %200 = vector.shape_cast %199 : vector<1x32x64xf32> to vector<32x64xf32>
      %cst_174 = arith.constant dense<0.000000e+00> : vector<14x64xf32>
      %201 = tpu.matmul %198, %200, %cst_174 {dimension_numbers = #tpu.dot_dimension_numbers<[1], [0], [0], [1], [0, 0, 1, 1], [], []>} : vector<14x32xf32>, vector<32x64xf32>, vector<14x64xf32> -> vector<14x64xf32>
      %202 = arith.addf %194, %201 : vector<14x64xf32>
      %203 = vector.broadcast %0 : vector<1x64xf32> to vector<14x64xf32>
      %204 = arith.addf %202, %203 : vector<14x64xf32>
      %cst_175 = arith.constant 0.000000e+00 : f32
      %205 = vector.broadcast %cst_175 : f32 to vector<14x64xf32>
      %206 = arith.maximumf %204, %205 : vector<14x64xf32>
      %c0_176 = arith.constant 0 : index
      %207 = arith.index_cast %arg5 : i32 to index
      %c0_177 = arith.constant 0 : index
      %c0_178 = arith.constant 0 : index
      %208 = vector.load %arg4[%c0_176, %207, %c0_177, %c0_178] : memref<1x14x14x64xf32, #tpu.memory_space<vmem>>, vector<1x1x14x64xf32>
      %209 = vector.shape_cast %208 : vector<1x1x14x64xf32> to vector<14x64xf32>
      %210 = vector.shape_cast %206 : vector<14x64xf32> to vector<1x1x14x64xf32>
      tpu.vector_store %arg4[%c0_176, %207, %c0_177, %c0_178], %210 {strides = array<i32>} : memref<1x14x14x64xf32, #tpu.memory_space<vmem>>, vector<1x1x14x64xf32>,
    }
    %c14_i32_1 = arith.constant 14 : i32
    return
  }
  func.func @transform_0(%arg0: i32) -> (i32, i32, i32, i32) {
    %c0_i32 = arith.constant 0 : i32
    %c0_i32_0 = arith.constant 0 : i32
    %c0_i32_1 = arith.constant 0 : i32
    %c0_i32_2 = arith.constant 0 : i32
    return %arg0, %c0_i32, %c0_i32_0, %c0_i32_1 : i32, i32, i32, i32
  }
  func.func @transform_1(%arg0: i32) -> (i32, i32, i32) {
    %c0_i32 = arith.constant 0 : i32
    %c0_i32_0 = arith.constant 0 : i32
    %c0_i32_1 = arith.constant 0 : i32
    %c0_i32_2 = arith.constant 0 : i32
    return %c0_i32, %c0_i32_0, %c0_i32_1 : i32, i32, i32
  }
  func.func @transform_2(%arg0: i32) -> (i32, i32) {
    %c0_i32 = arith.constant 0 : i32
    %c0_i32_0 = arith.constant 0 : i32
    %c0_i32_1 = arith.constant 0 : i32
    return %c0_i32, %c0_i32_0 : i32, i32
  }
  func.func @transform_3(%arg0: i32) -> (i32, i32, i32, i32) {
    %c0_i32 = arith.constant 0 : i32
    %c0_i32_0 = arith.constant 0 : i32
    %c0_i32_1 = arith.constant 0 : i32
    %c0_i32_2 = arith.constant 0 : i32
    return %arg0, %c0_i32, %c0_i32_0, %c0_i32_1 : i32, i32, i32, i32
  }
}

module attributes {stable_mosaic.version = 11 : i64} {
  func.func @_maxpool_kernel(%arg0: memref<2x7x2x7x128xf32, #tpu.memory_space<vmem>>, %arg1: memref<2x7x7x64xf32, #tpu.memory_space<vmem>>) attributes {dimension_semantics = [], scalar_prefetch = 0 : i64, scratch_operands = 0 : i64, tpu.core_type = #tpu.core_type<tc>} {
    %c0 = arith.constant 0 : index
    %c0_0 = arith.constant 0 : index
    %c0_1 = arith.constant 0 : index
    %c0_2 = arith.constant 0 : index
    %c0_3 = arith.constant 0 : index
    %0 = vector.load %arg0[%c0, %c0_0, %c0_1, %c0_2, %c0_3] : memref<2x7x2x7x128xf32, #tpu.memory_space<vmem>>, vector<2x7x1x7x128xf32>
    %1 = vector.shape_cast %0 : vector<2x7x1x7x128xf32> to vector<2x7x7x128xf32>
    %c0_4 = arith.constant 0 : index
    %c0_5 = arith.constant 0 : index
    %c1 = arith.constant 1 : index
    %c0_6 = arith.constant 0 : index
    %c0_7 = arith.constant 0 : index
    %2 = vector.load %arg0[%c0_4, %c0_5, %c1, %c0_6, %c0_7] : memref<2x7x2x7x128xf32, #tpu.memory_space<vmem>>, vector<2x7x1x7x128xf32>
    %3 = vector.shape_cast %2 : vector<2x7x1x7x128xf32> to vector<2x7x7x128xf32>
    %4 = arith.maximumf %1, %3 : vector<2x7x7x128xf32>
    %5 = vector.extract_strided_slice %4 {offsets = [0, 0, 0, 0], sizes = [2, 7, 7, 64], strides = [1, 1, 1, 1]} : vector<2x7x7x128xf32> to vector<2x7x7x64xf32>
    %6 = vector.extract_strided_slice %4 {offsets = [0, 0, 0, 64], sizes = [2, 7, 7, 64], strides = [1, 1, 1, 1]} : vector<2x7x7x128xf32> to vector<2x7x7x64xf32>
    %7 = arith.maximumf %5, %6 : vector<2x7x7x64xf32>
    %c0_8 = arith.constant 0 : index
    %c0_9 = arith.constant 0 : index
    %c0_10 = arith.constant 0 : index
    %c0_11 = arith.constant 0 : index
    %8 = vector.load %arg1[%c0_8, %c0_9, %c0_10, %c0_11] : memref<2x7x7x64xf32, #tpu.memory_space<vmem>>, vector<2x7x7x64xf32>
    tpu.vector_store %arg1[%c0_8, %c0_9, %c0_10, %c0_11], %7 {strides = array<i32>} : memref<2x7x7x64xf32, #tpu.memory_space<vmem>>, vector<2x7x7x64xf32>,
    return
  }
}

module attributes {stable_mosaic.version = 11 : i64} {
  func.func @_gemm_acc_kernel(%arg0: i32, %arg1: i32, %arg2: memref<2x640xbf16, #tpu.memory_space<vmem>>, %arg3: memref<640x1024xbf16, #tpu.memory_space<vmem>>, %arg4: memref<1x1024xf32, #tpu.memory_space<vmem>>, %arg5: memref<2x1024xf32, #tpu.memory_space<vmem>>, %arg6: memref<2x1024xf32, #tpu.memory_space<vmem>>) attributes {dimension_semantics = [#tpu.dimension_semantics<parallel>, #tpu.dimension_semantics<arbitrary>], iteration_bounds = array<i64: 1, 5>, scalar_prefetch = 0 : i64, scratch_operands = 1 : i64, tpu.core_type = #tpu.core_type<tc>, window_params = [{transform_indices = @transform_0, window_bounds = array<i64: 2, 640>}, {transform_indices = @transform_1, window_bounds = array<i64: 640, 1024>}, {pipeline_mode = #tpu.pipeline_mode<synchronous>, transform_indices = @transform_2, window_bounds = array<i64: 1, 1024>}, {transform_indices = @transform_3, window_bounds = array<i64: 2, 1024>}]} {
    %c0_i32 = arith.constant 0 : i32
    %0 = arith.cmpi eq, %arg1, %c0_i32 : i32
    %1 = arith.extui %0 : i1 to i32
    %c0_i32_0 = arith.constant 0 : i32
    %2 = arith.cmpi ne, %1, %c0_i32_0 : i32
    scf.if %2 {
      %cst_9 = arith.constant 0.000000e+00 : f32
      %12 = vector.broadcast %cst_9 : f32 to vector<2x1024xf32>
      %c0_10 = arith.constant 0 : index
      %c0_11 = arith.constant 0 : index
      %13 = vector.load %arg6[%c0_10, %c0_11] : memref<2x1024xf32, #tpu.memory_space<vmem>>, vector<2x1024xf32>
      tpu.vector_store %arg6[%c0_10, %c0_11], %12 {strides = array<i32>} : memref<2x1024xf32, #tpu.memory_space<vmem>>, vector<2x1024xf32>,
    } else {
    }
    %c0 = arith.constant 0 : index
    %c0_1 = arith.constant 0 : index
    %3 = vector.load %arg6[%c0, %c0_1] : memref<2x1024xf32, #tpu.memory_space<vmem>>, vector<2x1024xf32>
    %c0_2 = arith.constant 0 : index
    %c0_3 = arith.constant 0 : index
    %4 = vector.load %arg2[%c0_2, %c0_3] : memref<2x640xbf16, #tpu.memory_space<vmem>>, vector<2x640xbf16>
    %c0_4 = arith.constant 0 : index
    %c0_5 = arith.constant 0 : index
    %5 = vector.load %arg3[%c0_4, %c0_5] : memref<640x1024xbf16, #tpu.memory_space<vmem>>, vector<640x1024xbf16>
    %cst = arith.constant dense<0.000000e+00> : vector<2x1024xf32>
    %6 = tpu.matmul %4, %5, %cst {dimension_numbers = #tpu.dot_dimension_numbers<[1], [0], [0], [1], [0, 0, 1, 1], [], []>} : vector<2x640xbf16>, vector<640x1024xbf16>, vector<2x1024xf32> -> vector<2x1024xf32>
    %7 = arith.addf %3, %6 : vector<2x1024xf32>
    %c0_6 = arith.constant 0 : index
    %c0_7 = arith.constant 0 : index
    %8 = vector.load %arg6[%c0_6, %c0_7] : memref<2x1024xf32, #tpu.memory_space<vmem>>, vector<2x1024xf32>
    tpu.vector_store %arg6[%c0_6, %c0_7], %7 {strides = array<i32>} : memref<2x1024xf32, #tpu.memory_space<vmem>>, vector<2x1024xf32>,
    %c4_i32 = arith.constant 4 : i32
    %9 = arith.cmpi eq, %arg1, %c4_i32 : i32
    %10 = arith.extui %9 : i1 to i32
    %c0_i32_8 = arith.constant 0 : i32
    %11 = arith.cmpi ne, %10, %c0_i32_8 : i32
    scf.if %11 {
      %c0_9 = arith.constant 0 : index
      %c0_10 = arith.constant 0 : index
      %12 = vector.load %arg6[%c0_9, %c0_10] : memref<2x1024xf32, #tpu.memory_space<vmem>>, vector<2x1024xf32>
      %c0_11 = arith.constant 0 : index
      %c0_12 = arith.constant 0 : index
      %13 = vector.load %arg4[%c0_11, %c0_12] : memref<1x1024xf32, #tpu.memory_space<vmem>>, vector<1x1024xf32>
      %14 = vector.broadcast %13 : vector<1x1024xf32> to vector<2x1024xf32>
      %15 = arith.addf %12, %14 : vector<2x1024xf32>
      %cst_13 = arith.constant 0.000000e+00 : f32
      %16 = vector.broadcast %cst_13 : f32 to vector<2x1024xf32>
      %17 = arith.maximumf %15, %16 : vector<2x1024xf32>
      %c0_14 = arith.constant 0 : index
      %c0_15 = arith.constant 0 : index
      %18 = vector.load %arg5[%c0_14, %c0_15] : memref<2x1024xf32, #tpu.memory_space<vmem>>, vector<2x1024xf32>
      tpu.vector_store %arg5[%c0_14, %c0_15], %17 {strides = array<i32>} : memref<2x1024xf32, #tpu.memory_space<vmem>>, vector<2x1024xf32>,
    } else {
    }
    return
  }
  func.func @transform_0(%arg0: i32, %arg1: i32) -> (i32, i32) {
    %c0_i32 = arith.constant 0 : i32
    return %arg0, %arg1 : i32, i32
  }
  func.func @transform_1(%arg0: i32, %arg1: i32) -> (i32, i32) {
    %c0_i32 = arith.constant 0 : i32
    %c0_i32_0 = arith.constant 0 : i32
    return %arg1, %c0_i32 : i32, i32
  }
  func.func @transform_2(%arg0: i32, %arg1: i32) -> (i32, i32) {
    %c0_i32 = arith.constant 0 : i32
    %c0_i32_0 = arith.constant 0 : i32
    %c0_i32_1 = arith.constant 0 : i32
    return %c0_i32, %c0_i32_0 : i32, i32
  }
  func.func @transform_3(%arg0: i32, %arg1: i32) -> (i32, i32) {
    %c0_i32 = arith.constant 0 : i32
    %c0_i32_0 = arith.constant 0 : i32
    return %arg0, %c0_i32 : i32, i32
  }
}

module attributes {stable_mosaic.version = 11 : i64} {
  func.func @_gemm_single_kernel(%arg0: i32, %arg1: memref<2x1024xbf16, #tpu.memory_space<vmem>>, %arg2: memref<1024x128xbf16, #tpu.memory_space<vmem>>, %arg3: memref<1x128xf32, #tpu.memory_space<vmem>>, %arg4: memref<2x128xf32, #tpu.memory_space<vmem>>) attributes {dimension_semantics = [#tpu.dimension_semantics<parallel>], iteration_bounds = array<i64: 1>, scalar_prefetch = 0 : i64, scratch_operands = 0 : i64, tpu.core_type = #tpu.core_type<tc>, window_params = [{transform_indices = @transform_0, window_bounds = array<i64: 2, 1024>}, {pipeline_mode = #tpu.pipeline_mode<synchronous>, transform_indices = @transform_1, window_bounds = array<i64: 1024, 128>}, {pipeline_mode = #tpu.pipeline_mode<synchronous>, transform_indices = @transform_2, window_bounds = array<i64: 1, 128>}, {transform_indices = @transform_3, window_bounds = array<i64: 2, 128>}]} {
    %c0 = arith.constant 0 : index
    %c0_0 = arith.constant 0 : index
    %0 = vector.load %arg1[%c0, %c0_0] : memref<2x1024xbf16, #tpu.memory_space<vmem>>, vector<2x1024xbf16>
    %c0_1 = arith.constant 0 : index
    %c0_2 = arith.constant 0 : index
    %1 = vector.load %arg2[%c0_1, %c0_2] : memref<1024x128xbf16, #tpu.memory_space<vmem>>, vector<1024x128xbf16>
    %cst = arith.constant dense<0.000000e+00> : vector<2x128xf32>
    %2 = tpu.matmul %0, %1, %cst {dimension_numbers = #tpu.dot_dimension_numbers<[1], [0], [0], [1], [0, 0, 1, 1], [], []>} : vector<2x1024xbf16>, vector<1024x128xbf16>, vector<2x128xf32> -> vector<2x128xf32>
    %c0_3 = arith.constant 0 : index
    %c0_4 = arith.constant 0 : index
    %3 = vector.load %arg3[%c0_3, %c0_4] : memref<1x128xf32, #tpu.memory_space<vmem>>, vector<1x128xf32>
    %4 = vector.broadcast %3 : vector<1x128xf32> to vector<2x128xf32>
    %5 = arith.addf %2, %4 : vector<2x128xf32>
    %c0_5 = arith.constant 0 : index
    %c0_6 = arith.constant 0 : index
    %6 = vector.load %arg4[%c0_5, %c0_6] : memref<2x128xf32, #tpu.memory_space<vmem>>, vector<2x128xf32>
    tpu.vector_store %arg4[%c0_5, %c0_6], %5 {strides = array<i32>} : memref<2x128xf32, #tpu.memory_space<vmem>>, vector<2x128xf32>,
    return
  }
  func.func @transform_0(%arg0: i32) -> (i32, i32) {
    %c0_i32 = arith.constant 0 : i32
    %c0_i32_0 = arith.constant 0 : i32
    return %arg0, %c0_i32 : i32, i32
  }
  func.func @transform_1(%arg0: i32) -> (i32, i32) {
    %c0_i32 = arith.constant 0 : i32
    %c0_i32_0 = arith.constant 0 : i32
    %c0_i32_1 = arith.constant 0 : i32
    return %c0_i32, %c0_i32_0 : i32, i32
  }
  func.func @transform_2(%arg0: i32) -> (i32, i32) {
    %c0_i32 = arith.constant 0 : i32
    %c0_i32_0 = arith.constant 0 : i32
    %c0_i32_1 = arith.constant 0 : i32
    return %c0_i32, %c0_i32_0 : i32, i32
  }
  func.func @transform_3(%arg0: i32) -> (i32, i32) {
    %c0_i32 = arith.constant 0 : i32
    %c0_i32_0 = arith.constant 0 : i32
    return %arg0, %c0_i32 : i32, i32
  }
}

</mosaic_0001>

<bundles_post_ra>
// kernel: lenet_forward.7
= control target key start
LH: loop header
LB: loop body
LE: loop exit
PB: predicated region body
PF: predicated region fallthrough
CT: control target
= control target key end

     0   :  { %s576_s22 = smov 96   ;;  %vm457_vm0 = vcmask 261120   ;;  %vm459_vm1 = vcmask 259072   ;;  %s1427_s0 = inlined_call_operand.vmem [shape: f32[2,14,2,14,64], index: 0, kind: input, shape index: {}]   ;;  %s1428_s1 = inlined_call_operand.vmem [shape: f32[2,14,14,32], index: 1, kind: output, shape index: {}]  }
   0x1   :  { %v10_v0 = vld [vmem:[%s1427_s0 + $0x20] sm:$0xff]  ;;  %v521_v1 = vld [vmem:[%s1427_s0 + $0x30] sm:$0xff]  ;;  %v11_v5 = vld [vmem:[%s1427_s0 + $0x28] sm:$0x3f] }
   0x2   :  { %v8_v2 = vld [vmem:[%s1427_s0] sm:$0xff]  ;;  %v596_v3 = vmax.f32 %v10_v0, %v521_v1  ;;  %v519_v4 = vld [vmem:[%s1427_s0 + $0x10] sm:$0xff]  ;;  %v522_v6 = vld [vmem:[%s1427_s0 + $0x38] sm:$0x3f] }
   0x3   :  { %v607_v7 = vmax.f32 %v8_v2, %v519_v4  ;;  %v9_v8 = vld [vmem:[%s1427_s0 + $0x8] sm:$0x3f]  ;;  %v520_v9 = vld [vmem:[%s1427_s0 + $0x18] sm:$0x3f]  ;;  %v617_v10 = vmax.f32 %v11_v5, %v522_v6  ;;  %v12_v14 = vld [vmem:[%s1427_s0 + $0x40] sm:$0xff] }
   0x4   :  { %237 = vrot.lane.b32.xlu1 %v596_v3, %s576_s22  ;;  %v621_v11 = vmax.f32 %v9_v8, %v520_v9  ;;  %v13_v12 = vld [vmem:[%s1427_s0 + $0x48] sm:$0x3f]  ;;  %v524_v13 = vld [vmem:[%s1427_s0 + $0x58] sm:$0x3f]  ;;  %v523_v15 = vld [vmem:[%s1427_s0 + $0x50] sm:$0xff] }
   0x5   :  { %233 = vrot.lane.b32.xlu0 %v607_v7, %s576_s22  ;;  %v637_v16 = vmax.f32 %v13_v12, %v524_v13  ;;  %v641_v17 = vmax.f32 %v12_v14, %v523_v15  ;;  %v15_v18 = vld [vmem:[%s1427_s0 + $0x68] sm:$0x3f]  ;;  %v526_v19 = vld [vmem:[%s1427_s0 + $0x78] sm:$0x3f]  ;;  %v14_v20 = vld [vmem:[%s1427_s0 + $0x60] sm:$0xff] }
   0x6   :  { %v525_v21 = vld [vmem:[%s1427_s0 + $0x70] sm:$0xff]  ;;  %v657_v22 = vmax.f32 %v15_v18, %v526_v19  ;;  %v17_v24 = vld [vmem:[%s1427_s0 + $0x88] sm:$0x3f]  ;;  %v528_v25 = vld [vmem:[%s1427_s0 + $0x98] sm:$0x3f] }
   0x7   :  { %v661_v23 = vmax.f32 %v14_v20, %v525_v21  ;;  %v16_v26 = vld [vmem:[%s1427_s0 + $0x80] sm:$0xff]  ;;  %v527_v27 = vld [vmem:[%s1427_s0 + $0x90] sm:$0xff]  ;;  %v677_v28 = vmax.f32 %v17_v24, %v528_v25  ;;  %v19_v30 = vld [vmem:[%s1427_s0 + $0xa8] sm:$0x3f] }
   0x8   :  { %239 = vrot.lane.b32.xlu1 %v617_v10, %s576_s22  ;;  %v681_v29 = vmax.f32 %v16_v26, %v527_v27  ;;  %v530_v31 = vld [vmem:[%s1427_s0 + $0xb8] sm:$0x3f]  ;;  %v18_v32 = vld [vmem:[%s1427_s0 + $0xa0] sm:$0xff]  ;;  %v529_v33 = vld [vmem:[%s1427_s0 + $0xb0] sm:$0xff] }
   0x9   :  { %235 = vrot.lane.b32.xlu0 %v621_v11, %s576_s22  ;;  %v697_v34 = vmax.f32 %v19_v30, %v530_v31  ;;  %v701_v35 = vmax.f32 %v18_v32, %v529_v33  ;;  %v21_v36 = vld [vmem:[%s1427_s0 + $0xc8] sm:$0x3f]  ;;  %v532_v37 = vld [vmem:[%s1427_s0 + $0xd8] sm:$0x3f]  ;;  %v20_v38 = vld [vmem:[%s1427_s0 + $0xc0] sm:$0xff] }
   0xa   :  { %v531_v39 = vld [vmem:[%s1427_s0 + $0xd0] sm:$0xff]  ;;  %v717_v40 = vmax.f32 %v21_v36, %v532_v37  ;;  %v23_v42 = vld [vmem:[%s1427_s0 + $0xe8] sm:$0x3f]  ;;  %v534_v43 = vld [vmem:[%s1427_s0 + $0xf8] sm:$0x3f] }
   0xb   :  { %v721_v41 = vmax.f32 %v20_v38, %v531_v39  ;;  %v22_v44 = vld [vmem:[%s1427_s0 + $0xe0] sm:$0xff]  ;;  %v533_v45 = vld [vmem:[%s1427_s0 + $0xf0] sm:$0xff]  ;;  %v737_v46 = vmax.f32 %v23_v42, %v534_v43  ;;  %v25_v48 = vld [vmem:[%s1427_s0 + $0x108] sm:$0x3f] }
   0xc   :  { %243 = vrot.lane.b32.xlu1 %v637_v16, %s576_s22  ;;  %v741_v47 = vmax.f32 %v22_v44, %v533_v45  ;;  %v536_v49 = vld [vmem:[%s1427_s0 + $0x118] sm:$0x3f]  ;;  %v24_v50 = vld [vmem:[%s1427_s0 + $0x100] sm:$0xff]  ;;  %v535_v51 = vld [vmem:[%s1427_s0 + $0x110] sm:$0xff] }
   0xd   :  { %241 = vrot.lane.b32.xlu0 %v641_v17, %s576_s22  ;;  %v757_v52 = vmax.f32 %v25_v48, %v536_v49  ;;  %v761_v53 = vmax.f32 %v24_v50, %v535_v51  ;;  %v27_v54 = vld [vmem:[%s1427_s0 + $0x128] sm:$0x3f]  ;;  %v538_v55 = vld [vmem:[%s1427_s0 + $0x138] sm:$0x3f]  ;;  %v26_v56 = vld [vmem:[%s1427_s0 + $0x120] sm:$0xff] }
   0xe   :  { %v537_v57 = vld [vmem:[%s1427_s0 + $0x130] sm:$0xff]  ;;  %v777_v58 = vmax.f32 %v27_v54, %v538_v55  ;;  %v29_v60 = vld [vmem:[%s1427_s0 + $0x148] sm:$0x3f]  ;;  %v540_v61 = vld [vmem:[%s1427_s0 + $0x158] sm:$0x3f] }
   0xf   :  { %v781_v59 = vmax.f32 %v26_v56, %v537_v57  ;;  %v28_v62 = vld [vmem:[%s1427_s0 + $0x140] sm:$0xff]  ;;  %v539_v63 = vld [vmem:[%s1427_s0 + $0x150] sm:$0xff]  ;;  %v797_v0 = vmax.f32 %v29_v60, %v540_v61  ;;  %v31_v2 = vld [vmem:[%s1427_s0 + $0x168] sm:$0x3f] }
  0x10   :  { %247 = vrot.lane.b32.xlu1 %v657_v22, %s576_s22  ;;  %v801_v1 = vmax.f32 %v28_v62, %v539_v63  ;;  %v542_v4 = vld [vmem:[%s1427_s0 + $0x178] sm:$0x3f]  ;;  %v30_v5 = vld [vmem:[%s1427_s0 + $0x160] sm:$0xff]  ;;  %v541_v6 = vld [vmem:[%s1427_s0 + $0x170] sm:$0xff] }
  0x11   :  { %245 = vrot.lane.b32.xlu0 %v661_v23, %s576_s22  ;;  %v817_v8 = vmax.f32 %v31_v2, %v542_v4  ;;  %v821_v9 = vmax.f32 %v30_v5, %v541_v6  ;;  %v33_v12 = vld [vmem:[%s1427_s0 + $0x188] sm:$0x3f]  ;;  %v544_v13 = vld [vmem:[%s1427_s0 + $0x198] sm:$0x3f]  ;;  %v32_v14 = vld [vmem:[%s1427_s0 + $0x180] sm:$0xff] }
  0x12   :  { %v543_v15 = vld [vmem:[%s1427_s0 + $0x190] sm:$0xff]  ;;  %v837_v18 = vmax.f32 %v33_v12, %v544_v13  ;;  %v35_v20 = vld [vmem:[%s1427_s0 + $0x1a8] sm:$0x3f]  ;;  %v546_v21 = vld [vmem:[%s1427_s0 + $0x1b8] sm:$0x3f] }
  0x13   :  { %v841_v19 = vmax.f32 %v32_v14, %v543_v15  ;;  %v34_v24 = vld [vmem:[%s1427_s0 + $0x1a0] sm:$0xff]  ;;  %v545_v25 = vld [vmem:[%s1427_s0 + $0x1b0] sm:$0xff]  ;;  %v857_v26 = vmax.f32 %v35_v20, %v546_v21  ;;  %v37_v30 = vld [vmem:[%s1427_s0 + $0x1c8] sm:$0x3f] }
  0x14   :  { %251 = vrot.lane.b32.xlu1 %v677_v28, %s576_s22  ;;  %v861_v27 = vmax.f32 %v34_v24, %v545_v25  ;;  %v548_v31 = vld [vmem:[%s1427_s0 + $0x1d8] sm:$0x3f]  ;;  %v36_v32 = vld [vmem:[%s1427_s0 + $0x1c0] sm:$0xff]  ;;  %v547_v33 = vld [vmem:[%s1427_s0 + $0x1d0] sm:$0xff] }
  0x15   :  { %249 = vrot.lane.b32.xlu0 %v681_v29, %s576_s22  ;;  %v877_v36 = vmax.f32 %v37_v30, %v548_v31  ;;  %v881_v37 = vmax.f32 %v36_v32, %v547_v33  ;;  %v39_v38 = vld [vmem:[%s1427_s0 + $0x1e8] sm:$0x3f]  ;;  %v550_v39 = vld [vmem:[%s1427_s0 + $0x1f8] sm:$0x3f]  ;;  %v38_v42 = vld [vmem:[%s1427_s0 + $0x1e0] sm:$0xff] }
  0x16   :  { %v549_v43 = vld [vmem:[%s1427_s0 + $0x1f0] sm:$0xff]  ;;  %v897_v44 = vmax.f32 %v39_v38, %v550_v39  ;;  %v41_v48 = vld [vmem:[%s1427_s0 + $0x208] sm:$0x3f]  ;;  %v552_v49 = vld [vmem:[%s1427_s0 + $0x218] sm:$0x3f] }
  0x17   :  { %v901_v45 = vmax.f32 %v38_v42, %v549_v43  ;;  %v40_v50 = vld [vmem:[%s1427_s0 + $0x200] sm:$0xff]  ;;  %v551_v51 = vld [vmem:[%s1427_s0 + $0x210] sm:$0xff]  ;;  %v917_v54 = vmax.f32 %v41_v48, %v552_v49  ;;  %v43_v56 = vld [vmem:[%s1427_s0 + $0x228] sm:$0x3f] }
  0x18   :  { %255 = vrot.lane.b32.xlu1 %v697_v34, %s576_s22  ;;  %v921_v55 = vmax.f32 %v40_v50, %v551_v51  ;;  %v554_v57 = vld [vmem:[%s1427_s0 + $0x238] sm:$0x3f]  ;;  %v42_v60 = vld [vmem:[%s1427_s0 + $0x220] sm:$0xff]  ;;  %v553_v61 = vld [vmem:[%s1427_s0 + $0x230] sm:$0xff] }
  0x19   :  { %253 = vrot.lane.b32.xlu0 %v701_v35, %s576_s22  ;;  %v937_v62 = vmax.f32 %v43_v56, %v554_v57  ;;  %v941_v63 = vmax.f32 %v42_v60, %v553_v61  ;;  %v45_v2 = vld [vmem:[%s1427_s0 + $0x248] sm:$0x3f]  ;;  %v556_v4 = vld [vmem:[%s1427_s0 + $0x258] sm:$0x3f]  ;;  %v44_v5 = vld [vmem:[%s1427_s0 + $0x240] sm:$0xff] }
  0x1a   :  { %v555_v6 = vld [vmem:[%s1427_s0 + $0x250] sm:$0xff]  ;;  %v957_v12 = vmax.f32 %v45_v2, %v556_v4  ;;  %v47_v14 = vld [vmem:[%s1427_s0 + $0x268] sm:$0x3f]  ;;  %v558_v15 = vld [vmem:[%s1427_s0 + $0x278] sm:$0x3f] }
  0x1b   :  { %v961_v13 = vmax.f32 %v44_v5, %v555_v6  ;;  %v46_v20 = vld [vmem:[%s1427_s0 + $0x260] sm:$0xff]  ;;  %v557_v21 = vld [vmem:[%s1427_s0 + $0x270] sm:$0xff]  ;;  %v977_v24 = vmax.f32 %v47_v14, %v558_v15  ;;  %v49_v30 = vld [vmem:[%s1427_s0 + $0x288] sm:$0x3f] }
  0x1c   :  { %259 = vrot.lane.b32.xlu1 %v717_v40, %s576_s22  ;;  %v981_v25 = vmax.f32 %v46_v20, %v557_v21  ;;  %v560_v31 = vld [vmem:[%s1427_s0 + $0x298] sm:$0x3f]  ;;  %v48_v32 = vld [vmem:[%s1427_s0 + $0x280] sm:$0xff]  ;;  %v559_v33 = vld [vmem:[%s1427_s0 + $0x290] sm:$0xff] }
  0x1d   :  { %257 = vrot.lane.b32.xlu0 %v721_v41, %s576_s22  ;;  %v997_v38 = vmax.f32 %v49_v30, %v560_v31  ;;  %v1001_v39 = vmax.f32 %v48_v32, %v559_v33  ;;  %v51_v42 = vld [vmem:[%s1427_s0 + $0x2a8] sm:$0x3f]  ;;  %v562_v43 = vld [vmem:[%s1427_s0 + $0x2b8] sm:$0x3f]  ;;  %v50_v48 = vld [vmem:[%s1427_s0 + $0x2a0] sm:$0xff] }
  0x1e   :  { %v561_v49 = vld [vmem:[%s1427_s0 + $0x2b0] sm:$0xff]  ;;  %v1017_v50 = vmax.f32 %v51_v42, %v562_v43  ;;  %v53_v56 = vld [vmem:[%s1427_s0 + $0x2c8] sm:$0x3f]  ;;  %v564_v57 = vld [vmem:[%s1427_s0 + $0x2d8] sm:$0x3f] }
  0x1f   :  { %v1021_v51 = vmax.f32 %v50_v48, %v561_v49  ;;  %v52_v60 = vld [vmem:[%s1427_s0 + $0x2c0] sm:$0xff]  ;;  %v563_v61 = vld [vmem:[%s1427_s0 + $0x2d0] sm:$0xff]  ;;  %v1037_v2 = vmax.f32 %v53_v56, %v564_v57  ;;  %v55_v5 = vld [vmem:[%s1427_s0 + $0x2e8] sm:$0x3f] }
  0x20   :  { %263 = vrot.lane.b32.xlu1 %v737_v46, %s576_s22  ;;  %v1041_v4 = vmax.f32 %v52_v60, %v563_v61  ;;  %v566_v6 = vld [vmem:[%s1427_s0 + $0x2f8] sm:$0x3f]  ;;  %v54_v14 = vld [vmem:[%s1427_s0 + $0x2e0] sm:$0xff]  ;;  %v565_v15 = vld [vmem:[%s1427_s0 + $0x2f0] sm:$0xff] }
  0x21   :  { %261 = vrot.lane.b32.xlu0 %v741_v47, %s576_s22  ;;  %v1057_v20 = vmax.f32 %v55_v5, %v566_v6  ;;  %v1061_v21 = vmax.f32 %v54_v14, %v565_v15  ;;  %v57_v30 = vld [vmem:[%s1427_s0 + $0x308] sm:$0x3f]  ;;  %v568_v31 = vld [vmem:[%s1427_s0 + $0x318] sm:$0x3f]  ;;  %v56_v32 = vld [vmem:[%s1427_s0 + $0x300] sm:$0xff] }
  0x22   :  { %v567_v33 = vld [vmem:[%s1427_s0 + $0x310] sm:$0xff]  ;;  %v1077_v42 = vmax.f32 %v57_v30, %v568_v31  ;;  %v59_v48 = vld [vmem:[%s1427_s0 + $0x328] sm:$0x3f]  ;;  %v570_v49 = vld [vmem:[%s1427_s0 + $0x338] sm:$0x3f] }
  0x23   :  { %v1081_v43 = vmax.f32 %v56_v32, %v567_v33  ;;  %v58_v56 = vld [vmem:[%s1427_s0 + $0x320] sm:$0xff]  ;;  %v569_v57 = vld [vmem:[%s1427_s0 + $0x330] sm:$0xff]  ;;  %v1097_v60 = vmax.f32 %v59_v48, %v570_v49  ;;  %v61_v5 = vld [vmem:[%s1427_s0 + $0x348] sm:$0x3f] }
  0x24   :  { %267 = vrot.lane.b32.xlu1 %v757_v52, %s576_s22  ;;  %v1101_v61 = vmax.f32 %v58_v56, %v569_v57  ;;  %v572_v6 = vld [vmem:[%s1427_s0 + $0x358] sm:$0x3f]  ;;  %v60_v14 = vld [vmem:[%s1427_s0 + $0x340] sm:$0xff]  ;;  %v571_v15 = vld [vmem:[%s1427_s0 + $0x350] sm:$0xff] }
  0x25   :  { %265 = vrot.lane.b32.xlu0 %v761_v53, %s576_s22  ;;  %v1117_v30 = vmax.f32 %v61_v5, %v572_v6  ;;  %v1121_v31 = vmax.f32 %v60_v14, %v571_v15  ;;  %v63_v32 = vld [vmem:[%s1427_s0 + $0x368] sm:$0x3f]  ;;  %v574_v33 = vld [vmem:[%s1427_s0 + $0x378] sm:$0x3f]  ;;  %v62_v48 = vld [vmem:[%s1427_s0 + $0x360] sm:$0xff] }
  0x26   :  { %v573_v49 = vld [vmem:[%s1427_s0 + $0x370] sm:$0xff]  ;;  %v1137_v56 = vmax.f32 %v63_v32, %v574_v33 }
  0x27   :  { %v1141_v57 = vmax.f32 %v62_v48, %v573_v49 }
  0x28   :  { %271 = vrot.lane.b32.xlu1 %v777_v58, %s576_s22 }
  0x29   :  { %269 = vrot.lane.b32.xlu0 %v781_v59, %s576_s22 }
  0x2c   :  { %275 = vrot.lane.b32.xlu1 %v797_v0, %s576_s22 }
  0x2d   :  { %273 = vrot.lane.b32.xlu0 %v801_v1, %s576_s22 }
  0x30   :  { %279 = vrot.lane.b32.xlu1 %v817_v8, %s576_s22 }
  0x31   :  { %277 = vrot.lane.b32.xlu0 %v821_v9, %s576_s22 }
  0x34   :  { %283 = vrot.lane.b32.xlu1 %v837_v18, %s576_s22 }
  0x35   :  { %281 = vrot.lane.b32.xlu0 %v841_v19, %s576_s22 }
  0x38   :  { %287 = vrot.lane.b32.xlu1 %v857_v26, %s576_s22 }
  0x39   :  { %285 = vrot.lane.b32.xlu0 %v861_v27, %s576_s22 }
  0x3c   :  { %291 = vrot.lane.b32.xlu1 %v877_v36, %s576_s22 }
  0x3d   :  { %289 = vrot.lane.b32.xlu0 %v881_v37, %s576_s22 }
  0x40   :  { %295 = vrot.lane.b32.xlu1 %v897_v44, %s576_s22 }
  0x41   :  { %293 = vrot.lane.b32.xlu0 %v901_v45, %s576_s22 }
  0x44   :  { %299 = vrot.lane.b32.xlu1 %v917_v54, %s576_s22 }
  0x45   :  { %297 = vrot.lane.b32.xlu0 %v921_v55, %s576_s22 }
  0x48   :  { %303 = vrot.lane.b32.xlu1 %v937_v62, %s576_s22 }
  0x49   :  { %301 = vrot.lane.b32.xlu0 %v941_v63, %s576_s22 }
  0x4c   :  { %307 = vrot.lane.b32.xlu1 %v957_v12, %s576_s22 }
  0x4d   :  { %305 = vrot.lane.b32.xlu0 %v961_v13, %s576_s22 }
  0x50   :  { %311 = vrot.lane.b32.xlu1 %v977_v24, %s576_s22 }
  0x51   :  { %309 = vrot.lane.b32.xlu0 %v981_v25, %s576_s22 }
  0x54   :  { %315 = vrot.lane.b32.xlu1 %v997_v38, %s576_s22 }
  0x55   :  { %313 = vrot.lane.b32.xlu0 %v1001_v39, %s576_s22 }
  0x58   :  { %319 = vrot.lane.b32.xlu1 %v1017_v50, %s576_s22 }
  0x59   :  { %317 = vrot.lane.b32.xlu0 %v1021_v51, %s576_s22 }
  0x5c   :  { %323 = vrot.lane.b32.xlu1 %v1037_v2, %s576_s22 }
  0x5d   :  { %321 = vrot.lane.b32.xlu0 %v1041_v4, %s576_s22 }
  0x60   :  { %327 = vrot.lane.b32.xlu1 %v1057_v20, %s576_s22 }
  0x61   :  { %325 = vrot.lane.b32.xlu0 %v1061_v21, %s576_s22 }
  0x64   :  { %331 = vrot.lane.b32.xlu1 %v1077_v42, %s576_s22 }
  0x65   :  { %329 = vrot.lane.b32.xlu0 %v1081_v43, %s576_s22 }
  0x68   :  { %335 = vrot.lane.b32.xlu1 %v1097_v60, %s576_s22 }
  0x69   :  { %333 = vrot.lane.b32.xlu0 %v1101_v61, %s576_s22 }
  0x6c   :  { %339 = vrot.lane.b32.xlu1 %v1117_v30, %s576_s22 }
  0x6d   :  { %337 = vrot.lane.b32.xlu0 %v1121_v31, %s576_s22 }
  0x70   :  { %343 = vrot.lane.b32.xlu1 %v1137_v56, %s576_s22 }
  0x71   :  { %341 = vrot.lane.b32.xlu0 %v1141_v57, %s576_s22 }
  0x76   :  { %v238_v5 = vpop.permute.xlu1 %237 }
  0x77   :  { %v403_v6 = vmax.f32 %v596_v3, %v238_v5  ;;  %v234_v14 = vpop.permute.xlu0 %233 }
  0x78   :  { %v401_v15 = vmax.f32 %v607_v7, %v234_v14 }
  0x79   :  { %461 = vst.msk [vmem:[%s1428_s1 + $0x10] sm:$0xff] %vm457_vm0, %v403_v6 }
  0x7a   :  { %458 = vst.msk [vmem:[%s1428_s1] sm:$0xff] %vm457_vm0, %v401_v15  ;;  %v240_v32 = vpop.permute.xlu1 %239 }
  0x7b   :  { %v404_v33 = vmax.f32 %v617_v10, %v240_v32  ;;  %v236_v48 = vpop.permute.xlu0 %235 }
  0x7c   :  { %v402_v3 = vmax.f32 %v621_v11, %v236_v48 }
  0x7d   :  { %462 = vst.msk [vmem:[%s1428_s1 + $0x18] sm:$0x3f] %vm459_vm1, %v404_v33 }
  0x7e   :  { %460 = vst.msk [vmem:[%s1428_s1 + $0x8] sm:$0x3f] %vm459_vm1, %v402_v3  ;;  %v244_v7 = vpop.permute.xlu1 %243 }
  0x7f   :  { %v406_v49 = vmax.f32 %v637_v16, %v244_v7  ;;  %v242_v5 = vpop.permute.xlu0 %241 }
  0x80   :  { %v405_v6 = vmax.f32 %v641_v17, %v242_v5 }
  0x81   :  { %464 = vst.msk [vmem:[%s1428_s1 + $0x28] sm:$0x3f] %vm459_vm1, %v406_v49 }
  0x82   :  { %463 = vst.msk [vmem:[%s1428_s1 + $0x20] sm:$0xff] %vm457_vm0, %v405_v6  ;;  %v248_v10 = vpop.permute.xlu1 %247 }
  0x83   :  { %v408_v11 = vmax.f32 %v657_v22, %v248_v10  ;;  %v246_v14 = vpop.permute.xlu0 %245 }
  0x84   :  { %v407_v15 = vmax.f32 %v661_v23, %v246_v14 }
  0x85   :  { %466 = vst.msk [vmem:[%s1428_s1 + $0x38] sm:$0x3f] %vm459_vm1, %v408_v11 }
  0x86   :  { %465 = vst.msk [vmem:[%s1428_s1 + $0x30] sm:$0xff] %vm457_vm0, %v407_v15  ;;  %v252_v16 = vpop.permute.xlu1 %251 }
  0x87   :  { %v410_v17 = vmax.f32 %v677_v28, %v252_v16  ;;  %v250_v32 = vpop.permute.xlu0 %249 }
  0x88   :  { %v409_v33 = vmax.f32 %v681_v29, %v250_v32 }
  0x89   :  { %468 = vst.msk [vmem:[%s1428_s1 + $0x48] sm:$0x3f] %vm459_vm1, %v410_v17 }
  0x8a   :  { %467 = vst.msk [vmem:[%s1428_s1 + $0x40] sm:$0xff] %vm457_vm0, %v409_v33  ;;  %v256_v22 = vpop.permute.xlu1 %255 }
  0x8b   :  { %v412_v23 = vmax.f32 %v697_v34, %v256_v22  ;;  %v254_v48 = vpop.permute.xlu0 %253 }
  0x8c   :  { %v411_v3 = vmax.f32 %v701_v35, %v254_v48 }
  0x8d   :  { %470 = vst.msk [vmem:[%s1428_s1 + $0x58] sm:$0x3f] %vm459_vm1, %v412_v23 }
  0x8e   :  { %469 = vst.msk [vmem:[%s1428_s1 + $0x50] sm:$0xff] %vm457_vm0, %v411_v3  ;;  %v260_v28 = vpop.permute.xlu1 %259 }
  0x8f   :  { %v414_v29 = vmax.f32 %v717_v40, %v260_v28  ;;  %v258_v7 = vpop.permute.xlu0 %257 }
  0x90   :  { %v413_v49 = vmax.f32 %v721_v41, %v258_v7 }
  0x91   :  { %472 = vst.msk [vmem:[%s1428_s1 + $0x68] sm:$0x3f] %vm459_vm1, %v414_v29 }
  0x92   :  { %471 = vst.msk [vmem:[%s1428_s1 + $0x60] sm:$0xff] %vm457_vm0, %v413_v49  ;;  %v264_v34 = vpop.permute.xlu1 %263 }
  0x93   :  { %v416_v35 = vmax.f32 %v737_v46, %v264_v34  ;;  %v262_v5 = vpop.permute.xlu0 %261 }
  0x94   :  { %v415_v6 = vmax.f32 %v741_v47, %v262_v5 }
  0x95   :  { %474 = vst.msk [vmem:[%s1428_s1 + $0x78] sm:$0x3f] %vm459_vm1, %v416_v35 }
  0x96   :  { %473 = vst.msk [vmem:[%s1428_s1 + $0x70] sm:$0xff] %vm457_vm0, %v415_v6  ;;  %v268_v40 = vpop.permute.xlu1 %267 }
  0x97   :  { %v418_v41 = vmax.f32 %v757_v52, %v268_v40  ;;  %v266_v10 = vpop.permute.xlu0 %265 }
  0x98   :  { %v417_v11 = vmax.f32 %v761_v53, %v266_v10 }
  0x99   :  { %476 = vst.msk [vmem:[%s1428_s1 + $0x88] sm:$0x3f] %vm459_vm1, %v418_v41 }
  0x9a   :  { %475 = vst.msk [vmem:[%s1428_s1 + $0x80] sm:$0xff] %vm457_vm0, %v417_v11  ;;  %v272_v46 = vpop.permute.xlu1 %271 }
  0x9b   :  { %v420_v47 = vmax.f32 %v777_v58, %v272_v46  ;;  %v270_v14 = vpop.permute.xlu0 %269 }
  0x9c   :  { %v419_v15 = vmax.f32 %v781_v59, %v270_v14 }
  0x9d   :  { %478 = vst.msk [vmem:[%s1428_s1 + $0x98] sm:$0x3f] %vm459_vm1, %v420_v47 }
  0x9e   :  { %477 = vst.msk [vmem:[%s1428_s1 + $0x90] sm:$0xff] %vm457_vm0, %v419_v15  ;;  %v276_v52 = vpop.permute.xlu1 %275 }
  0x9f   :  { %v422_v53 = vmax.f32 %v797_v0, %v276_v52  ;;  %v274_v16 = vpop.permute.xlu0 %273 }
  0xa0   :  { %v421_v17 = vmax.f32 %v801_v1, %v274_v16 }
  0xa1   :  { %480 = vst.msk [vmem:[%s1428_s1 + $0xa8] sm:$0x3f] %vm459_vm1, %v422_v53 }
  0xa2   :  { %479 = vst.msk [vmem:[%s1428_s1 + $0xa0] sm:$0xff] %vm457_vm0, %v421_v17  ;;  %v280_v58 = vpop.permute.xlu1 %279 }
  0xa3   :  { %v424_v59 = vmax.f32 %v817_v8, %v280_v58  ;;  %v278_v32 = vpop.permute.xlu0 %277 }
  0xa4   :  { %v423_v33 = vmax.f32 %v821_v9, %v278_v32 }
  0xa5   :  { %482 = vst.msk [vmem:[%s1428_s1 + $0xb8] sm:$0x3f] %vm459_vm1, %v424_v59 }
  0xa6   :  { %481 = vst.msk [vmem:[%s1428_s1 + $0xb0] sm:$0xff] %vm457_vm0, %v423_v33  ;;  %v284_v0 = vpop.permute.xlu1 %283 }
  0xa7   :  { %v426_v1 = vmax.f32 %v837_v18, %v284_v0  ;;  %v282_v22 = vpop.permute.xlu0 %281 }
  0xa8   :  { %v425_v23 = vmax.f32 %v841_v19, %v282_v22 }
  0xa9   :  { %484 = vst.msk [vmem:[%s1428_s1 + $0xc8] sm:$0x3f] %vm459_vm1, %v426_v1 }
  0xaa   :  { %483 = vst.msk [vmem:[%s1428_s1 + $0xc0] sm:$0xff] %vm457_vm0, %v425_v23  ;;  %v288_v8 = vpop.permute.xlu1 %287 }
  0xab   :  { %v428_v9 = vmax.f32 %v857_v26, %v288_v8  ;;  %v286_v48 = vpop.permute.xlu0 %285 }
  0xac   :  { %v427_v3 = vmax.f32 %v861_v27, %v286_v48 }
  0xad   :  { %486 = vst.msk [vmem:[%s1428_s1 + $0xd8] sm:$0x3f] %vm459_vm1, %v428_v9 }
  0xae   :  { %485 = vst.msk [vmem:[%s1428_s1 + $0xd0] sm:$0xff] %vm457_vm0, %v427_v3  ;;  %v292_v18 = vpop.permute.xlu1 %291 }
  0xaf   :  { %v430_v19 = vmax.f32 %v877_v36, %v292_v18  ;;  %v290_v28 = vpop.permute.xlu0 %289 }
  0xb0   :  { %v429_v29 = vmax.f32 %v881_v37, %v290_v28 }
  0xb1   :  { %488 = vst.msk [vmem:[%s1428_s1 + $0xe8] sm:$0x3f] %vm459_vm1, %v430_v19 }
  0xb2   :  { %487 = vst.msk [vmem:[%s1428_s1 + $0xe0] sm:$0xff] %vm457_vm0, %v429_v29  ;;  %v296_v26 = vpop.permute.xlu1 %295 }
  0xb3   :  { %v432_v27 = vmax.f32 %v897_v44, %v296_v26  ;;  %v294_v7 = vpop.permute.xlu0 %293 }
  0xb4   :  { %v431_v49 = vmax.f32 %v901_v45, %v294_v7 }
  0xb5   :  { %490 = vst.msk [vmem:[%s1428_s1 + $0xf8] sm:$0x3f] %vm459_vm1, %v432_v27 }
  0xb6   :  { %489 = vst.msk [vmem:[%s1428_s1 + $0xf0] sm:$0xff] %vm457_vm0, %v431_v49  ;;  %v300_v36 = vpop.permute.xlu1 %299 }
  0xb7   :  { %v434_v37 = vmax.f32 %v917_v54, %v300_v36  ;;  %v298_v34 = vpop.permute.xlu0 %297 }
  0xb8   :  { %v433_v35 = vmax.f32 %v921_v55, %v298_v34 }
  0xb9   :  { %492 = vst.msk [vmem:[%s1428_s1 + $0x108] sm:$0x3f] %vm459_vm1, %v434_v37 }
  0xba   :  { %491 = vst.msk [vmem:[%s1428_s1 + $0x100] sm:$0xff] %vm457_vm0, %v433_v35  ;;  %v304_v44 = vpop.permute.xlu1 %303 }
  0xbb   :  { %v436_v45 = vmax.f32 %v937_v62, %v304_v44  ;;  %v302_v5 = vpop.permute.xlu0 %301 }
  0xbc   :  { %v435_v6 = vmax.f32 %v941_v63, %v302_v5 }
  0xbd   :  { %494 = vst.msk [vmem:[%s1428_s1 + $0x118] sm:$0x3f] %vm459_vm1, %v436_v45 }
  0xbe   :  { %493 = vst.msk [vmem:[%s1428_s1 + $0x110] sm:$0xff] %vm457_vm0, %v435_v6  ;;  %v308_v54 = vpop.permute.xlu1 %307 }
  0xbf   :  { %v438_v55 = vmax.f32 %v957_v12, %v308_v54  ;;  %v306_v40 = vpop.permute.xlu0 %305 }
  0xc0   :  { %v437_v41 = vmax.f32 %v961_v13, %v306_v40 }
  0xc1   :  { %496 = vst.msk [vmem:[%s1428_s1 + $0x128] sm:$0x3f] %vm459_vm1, %v438_v55 }
  0xc2   :  { %495 = vst.msk [vmem:[%s1428_s1 + $0x120] sm:$0xff] %vm457_vm0, %v437_v41  ;;  %v312_v62 = vpop.permute.xlu1 %311 }
  0xc3   :  { %v440_v63 = vmax.f32 %v977_v24, %v312_v62  ;;  %v310_v10 = vpop.permute.xlu0 %309 }
  0xc4   :  { %v439_v11 = vmax.f32 %v981_v25, %v310_v10 }
  0xc5   :  { %498 = vst.msk [vmem:[%s1428_s1 + $0x138] sm:$0x3f] %vm459_vm1, %v440_v63 }
  0xc6   :  { %497 = vst.msk [vmem:[%s1428_s1 + $0x130] sm:$0xff] %vm457_vm0, %v439_v11  ;;  %v316_v12 = vpop.permute.xlu1 %315 }
  0xc7   :  { %v442_v13 = vmax.f32 %v997_v38, %v316_v12  ;;  %v314_v46 = vpop.permute.xlu0 %313 }
  0xc8   :  { %v441_v47 = vmax.f32 %v1001_v39, %v314_v46 }
  0xc9   :  { %500 = vst.msk [vmem:[%s1428_s1 + $0x148] sm:$0x3f] %vm459_vm1, %v442_v13 }
  0xca   :  { %499 = vst.msk [vmem:[%s1428_s1 + $0x140] sm:$0xff] %vm457_vm0, %v441_v47  ;;  %v320_v24 = vpop.permute.xlu1 %319 }
  0xcb   :  { %v444_v25 = vmax.f32 %v1017_v50, %v320_v24  ;;  %v318_v14 = vpop.permute.xlu0 %317 }
  0xcc   :  { %v443_v15 = vmax.f32 %v1021_v51, %v318_v14 }
  0xcd   :  { %502 = vst.msk [vmem:[%s1428_s1 + $0x158] sm:$0x3f] %vm459_vm1, %v444_v25 }
  0xce   :  { %501 = vst.msk [vmem:[%s1428_s1 + $0x150] sm:$0xff] %vm457_vm0, %v443_v15  ;;  %v324_v38 = vpop.permute.xlu1 %323 }
  0xcf   :  { %v446_v39 = vmax.f32 %v1037_v2, %v324_v38  ;;  %v322_v52 = vpop.permute.xlu0 %321 }
  0xd0   :  { %v445_v53 = vmax.f32 %v1041_v4, %v322_v52 }
  0xd1   :  { %504 = vst.msk [vmem:[%s1428_s1 + $0x168] sm:$0x3f] %vm459_vm1, %v446_v39 }
  0xd2   :  { %503 = vst.msk [vmem:[%s1428_s1 + $0x160] sm:$0xff] %vm457_vm0, %v445_v53  ;;  %v328_v50 = vpop.permute.xlu1 %327 }
  0xd3   :  { %v448_v51 = vmax.f32 %v1057_v20, %v328_v50  ;;  %v326_v16 = vpop.permute.xlu0 %325 }
  0xd4   :  { %v447_v17 = vmax.f32 %v1061_v21, %v326_v16 }
  0xd5   :  { %506 = vst.msk [vmem:[%s1428_s1 + $0x178] sm:$0x3f] %vm459_vm1, %v448_v51 }
  0xd6   :  { %505 = vst.msk [vmem:[%s1428_s1 + $0x170] sm:$0xff] %vm457_vm0, %v447_v17  ;;  %v332_v2 = vpop.permute.xlu1 %331 }
  0xd7   :  { %v450_v4 = vmax.f32 %v1077_v42, %v332_v2  ;;  %v330_v58 = vpop.permute.xlu0 %329 }
  0xd8   :  { %v449_v59 = vmax.f32 %v1081_v43, %v330_v58 }
  0xd9   :  { %508 = vst.msk [vmem:[%s1428_s1 + $0x188] sm:$0x3f] %vm459_vm1, %v450_v4 }
  0xda   :  { %507 = vst.msk [vmem:[%s1428_s1 + $0x180] sm:$0xff] %vm457_vm0, %v449_v59  ;;  %v336_v20 = vpop.permute.xlu1 %335 }
  0xdb   :  { %v452_v21 = vmax.f32 %v1097_v60, %v336_v20  ;;  %v334_v32 = vpop.permute.xlu0 %333 }
  0xdc   :  { %v451_v33 = vmax.f32 %v1101_v61, %v334_v32 }
  0xdd   :  { %510 = vst.msk [vmem:[%s1428_s1 + $0x198] sm:$0x3f] %vm459_vm1, %v452_v21 }
  0xde   :  { %509 = vst.msk [vmem:[%s1428_s1 + $0x190] sm:$0xff] %vm457_vm0, %v451_v33  ;;  %v340_v42 = vpop.permute.xlu1 %339 }
  0xdf   :  { %v454_v43 = vmax.f32 %v1117_v30, %v340_v42  ;;  %v338_v0 = vpop.permute.xlu0 %337 }
  0xe0   :  { %v453_v1 = vmax.f32 %v1121_v31, %v338_v0 }
  0xe1   :  { %512 = vst.msk [vmem:[%s1428_s1 + $0x1a8] sm:$0x3f] %vm459_vm1, %v454_v43 }
  0xe2   :  { %511 = vst.msk [vmem:[%s1428_s1 + $0x1a0] sm:$0xff] %vm457_vm0, %v453_v1  ;;  %v344_v60 = vpop.permute.xlu1 %343 }
  0xe3   :  { %v456_v61 = vmax.f32 %v1137_v56, %v344_v60  ;;  %v342_v22 = vpop.permute.xlu0 %341 }
  0xe4   :  { %v455_v23 = vmax.f32 %v1141_v57, %v342_v22 }
  0xe5   :  { %514 = vst.msk [vmem:[%s1428_s1 + $0x1b8] sm:$0x3f] %vm459_vm1, %v456_v61 }
  0xe6   :  { %513 = vst.msk [vmem:[%s1428_s1 + $0x1b0] sm:$0xff] %vm457_vm0, %v455_v23 }

// kernel: lenet_forward.6
= control target key start
LH: loop header
LB: loop body
LE: loop exit
PB: predicated region body
PF: predicated region fallthrough
CT: control target
= control target key end

     0   :  { %s1491_s12 = smov 0   ;;  %s1737_s0 = inlined_call_operand.vmem [shape: f32[2,32,32,1], index: 0, kind: input, shape index: {}]   ;;  %s1738_s1 = inlined_call_operand.vmem [shape: f32[25,1,32], index: 1, kind: input, shape index: {}]   ;;  %s1739_s2 = inlined_call_operand.vmem [shape: f32[1,32], index: 2, kind: input, shape index: {}]   ;;  %s1740_s3 = inlined_call_operand.vmem [shape: f32[2,28,28,32], index: 3, kind: output, shape index: {}]  }
   0x1 LB: > { %s1288_s13 = sadd.s32 4294967295, %s1464_s12   ;;  %p1292_p0 = scmp.ge.s32.totalorder %s1464_s12, 1  ;;  %s1464_s12 = sphi %s1491_s12, %s13_s12  }
   0x2   : > { %p137_p1 = scmp.lt.s32.totalorder %s1464_s12, 3 }
   0x4   : > { %p138_p2 = pnand %p1292_p0, %p137_p1 }
   0x5   : > { %p161_p3 = scmp.lt.s32.totalorder (!%p138_p2), %s1288_s13, 1  ;;  %s1514_s24 = smov (!%p138_p2), 0  }
   0x6   : > { %141 = sbr.rel (%p138_p2) target bundleno = 348 (0x15c), region = 32 }
   0xb   : > { %v1502_v0 = vld [vmem:[%s1739_s2] ss:$0 sm:$0xff]  ;;  %s1742_s13 = smov (!%p161_p3, %s1288_s13), 1 }
   0xc   : > { %s1433_s16 = sshll.u32 %s1742_s13, 10  ;;  %s1434_s17 = smul.u32 896, %s1742_s13 }
   0xd   : > { %s1507_s20 = scalar_lea.vmem %s1737_s0, %s1433_s16 }
   0xe   : > { %s1512_s23 = scalar_lea.vmem %s1740_s3, %s1434_s17 }
   0xf LB: >> { %v1470_v1 = vmov 0   ;;  %s1296_s25 = sshll.u32 %s1468_s24, 5  ;;  %vm1206_vm0 = vcmask 261120   ;;  %vm1210_vm1 = vcmask 257024   ;;  %s177_s24 = sadd.s32 1, %s1468_s24   ;;  %s1468_s24 = sphi %s1514_s24, %s177_s24  }
  0x10   : >> { %1453 = vset.pattern.permute.xlu1 %v1470_v1  ;;  %1452 = vset.pattern.permute.xlu0 %v1470_v1  ;;  %s1523_s26 = scalar_lea.vmem %s1507_s20, %s1296_s25  ;;  %s1205_s6 = scalar_lea.vmem %s1512_s23, %s1296_s25 }
  0x11   : >> { %v182_v2 = vld [vmem:[%s1523_s26 + $0x10] sm:$0xff]  ;;  %v180_v3 = vld [vmem:[%s1523_s26] sm:$0xff]  ;;  %v183_v4 = vld [vmem:[%s1523_s26 + $0x18] sm:$0xf]  ;;  %p174_p4 = scmp.ge.s32.totalorder %s177_s24, 28  }
  0x12   : >> { %197 = vperm.xlu1 %1453, %v182_v2   ;;  %187 = vperm.xlu0 %1452, %v180_v3   ;;  %v181_v5 = vld [vmem:[%s1523_s26 + $0x8] sm:$0xff]  ;;  %v222_v8 = vld [vmem:[%s1523_s26 + $0x19] sm:$0xf]  ;;  %v221_v9 = vld [vmem:[%s1523_s26 + $0x11] sm:$0xff] }
  0x13   : >> { %v220_v6 = vld [vmem:[%s1523_s26 + $0x9] sm:$0xff]  ;;  %v219_v7 = vld [vmem:[%s1523_s26 + $0x1] sm:$0xff]  ;;  %v262_v12 = vld [vmem:[%s1523_s26 + $0x1a] sm:$0xf] }
  0x14   : >> { %v260_v10 = vld [vmem:[%s1523_s26 + $0xa] sm:$0xff]  ;;  %v259_v11 = vld [vmem:[%s1523_s26 + $0x2] sm:$0xff]  ;;  %v261_v13 = vld [vmem:[%s1523_s26 + $0x12] sm:$0xff] }
  0x15   : >> { %v300_v14 = vld [vmem:[%s1523_s26 + $0xb] sm:$0xff]  ;;  %v299_v15 = vld [vmem:[%s1523_s26 + $0x3] sm:$0xff]  ;;  %v302_v16 = vld [vmem:[%s1523_s26 + $0x1b] sm:$0xf] }
  0x16   : >> { %202 = vperm.xlu1 %1453, %v183_v4   ;;  %192 = vperm.xlu0 %1452, %v181_v5   ;;  %v301_v17 = vld [vmem:[%s1523_s26 + $0x13] sm:$0xff]  ;;  %v339_v19 = vld [vmem:[%s1523_s26 + $0x4] sm:$0xff]  ;;  %v342_v20 = vld [vmem:[%s1523_s26 + $0x1c] sm:$0xf] }
  0x17   : >> { %v340_v18 = vld [vmem:[%s1523_s26 + $0xc] sm:$0xff]  ;;  %v341_v21 = vld [vmem:[%s1523_s26 + $0x14] sm:$0xff]  ;;  %v1307_v23 = vld [vmem:[%s1523_s26 + $0x20] sm:$0xff] }
  0x18   : >> { %v1308_v22 = vld [vmem:[%s1523_s26 + $0x28] sm:$0xff]  ;;  %v1310_v24 = vld [vmem:[%s1523_s26 + $0x38] sm:$0xf]  ;;  %v1309_v25 = vld [vmem:[%s1523_s26 + $0x30] sm:$0xff] }
  0x19   : >> { %v1314_v26 = vld [vmem:[%s1523_s26 + $0x29] sm:$0xff]  ;;  %v1313_v27 = vld [vmem:[%s1523_s26 + $0x21] sm:$0xff]  ;;  %v1316_v28 = vld [vmem:[%s1523_s26 + $0x39] sm:$0xf] }
  0x1a   : >> { %232 = vperm.xlu1 %1453, %v220_v6   ;;  %227 = vperm.xlu0 %1452, %v219_v7   ;;  %v1315_v29 = vld [vmem:[%s1523_s26 + $0x31] sm:$0xff]  ;;  %v1319_v31 = vld [vmem:[%s1523_s26 + $0x22] sm:$0xff]  ;;  %v1322_v32 = vld [vmem:[%s1523_s26 + $0x3a] sm:$0xf] }
  0x1b   : >> { %v1320_v30 = vld [vmem:[%s1523_s26 + $0x2a] sm:$0xff]  ;;  %v1321_v33 = vld [vmem:[%s1523_s26 + $0x32] sm:$0xff]  ;;  %v1328_v36 = vld [vmem:[%s1523_s26 + $0x3b] sm:$0xf] }
  0x1c   : >> { %v1326_v34 = vld [vmem:[%s1523_s26 + $0x2b] sm:$0xff]  ;;  %v1325_v35 = vld [vmem:[%s1523_s26 + $0x23] sm:$0xff]  ;;  %v1327_v37 = vld [vmem:[%s1523_s26 + $0x33] sm:$0xff] }
  0x1d   : >> { %v1332_v38 = vld [vmem:[%s1523_s26 + $0x2c] sm:$0xff]  ;;  %v1331_v39 = vld [vmem:[%s1523_s26 + $0x24] sm:$0xff]  ;;  %v1334_v40 = vld [vmem:[%s1523_s26 + $0x3c] sm:$0xf] }
  0x1e   : >> { %242 = vperm.xlu1 %1453, %v222_v8   ;;  %237 = vperm.xlu0 %1452, %v221_v9   ;;  %v1333_v41 = vld [vmem:[%s1523_s26 + $0x34] sm:$0xff]  ;;  %v1339_v42 = vld [vmem:[%s1523_s26 + $0x48] sm:$0xff]  ;;  %v1338_v43 = vld [vmem:[%s1523_s26 + $0x40] sm:$0xff] }
  0x1f   : >> { %v1341_v44 = vld [vmem:[%s1523_s26 + $0x58] sm:$0xf]  ;;  %v1340_v45 = vld [vmem:[%s1523_s26 + $0x50] sm:$0xff]  ;;  %v1344_v47 = vld [vmem:[%s1523_s26 + $0x41] sm:$0xff] }
  0x20   : >> { %v1345_v46 = vld [vmem:[%s1523_s26 + $0x49] sm:$0xff]  ;;  %v1347_v48 = vld [vmem:[%s1523_s26 + $0x59] sm:$0xf]  ;;  %v1346_v49 = vld [vmem:[%s1523_s26 + $0x51] sm:$0xff] }
  0x21   : >> { %v1351_v50 = vld [vmem:[%s1523_s26 + $0x4a] sm:$0xff]  ;;  %v1350_v51 = vld [vmem:[%s1523_s26 + $0x42] sm:$0xff]  ;;  %v1353_v52 = vld [vmem:[%s1523_s26 + $0x5a] sm:$0xf] }
  0x22   : >> { %272 = vperm.xlu1 %1453, %v260_v10   ;;  %267 = vperm.xlu0 %1452, %v259_v11   ;;  %v1352_v53 = vld [vmem:[%s1523_s26 + $0x52] sm:$0xff]  ;;  %v1356_v55 = vld [vmem:[%s1523_s26 + $0x43] sm:$0xff]  ;;  %v1359_v56 = vld [vmem:[%s1523_s26 + $0x5b] sm:$0xf] }
  0x23   : >> { %v1357_v54 = vld [vmem:[%s1523_s26 + $0x4b] sm:$0xff]  ;;  %v1358_v57 = vld [vmem:[%s1523_s26 + $0x53] sm:$0xff]  ;;  %v1365_v60 = vld [vmem:[%s1523_s26 + $0x5c] sm:$0xf] }
  0x24   : >> { %v1363_v58 = vld [vmem:[%s1523_s26 + $0x4c] sm:$0xff]  ;;  %v1362_v59 = vld [vmem:[%s1523_s26 + $0x44] sm:$0xff]  ;;  %v1364_v61 = vld [vmem:[%s1523_s26 + $0x54] sm:$0xff] }
  0x25   : >> { %v1370_v62 = vld [vmem:[%s1523_s26 + $0x68] sm:$0xff]  ;;  %v1369_v63 = vld [vmem:[%s1523_s26 + $0x60] sm:$0xff]  ;;  %v1372_v1 = vld [vmem:[%s1523_s26 + $0x78] sm:$0xf] }
  0x26   : >> { %282 = vperm.xlu1 %1453, %v262_v12   ;;  %277 = vperm.xlu0 %1452, %v261_v13   ;;  %v1371_v2 = vld [vmem:[%s1523_s26 + $0x70] sm:$0xff]  ;;  %v1375_v6 = vld [vmem:[%s1523_s26 + $0x61] sm:$0xff]  ;;  %v1378_v10 = vld [vmem:[%s1523_s26 + $0x79] sm:$0xf] }
  0x27   : >> { %v1376_v5 = vld [vmem:[%s1523_s26 + $0x69] sm:$0xff]  ;;  %v1299_v9 = vld [vmem:[%s1738_s1 + $0x1] ss:$0 sm:$0xff]  ;;  %v1377_v11 = vld [vmem:[%s1523_s26 + $0x71] sm:$0xff] }
  0x28   : >> { %v1297_v12 = vld [vmem:[%s1738_s1] ss:$0 sm:$0xff] }
  0x2a   : >> { %312 = vperm.xlu1 %1453, %v300_v14   ;;  %307 = vperm.xlu0 %1452, %v299_v15  }
  0x2e   : >> { %322 = vperm.xlu1 %1453, %v302_v16   ;;  %317 = vperm.xlu0 %1452, %v301_v17   ;;  %v1382_v17 = vld [vmem:[%s1523_s26 + $0x6a] sm:$0xff] }
  0x32   : >> { %352 = vperm.xlu1 %1453, %v340_v18   ;;  %347 = vperm.xlu0 %1452, %v339_v19   ;;  %v1381_v18 = vld [vmem:[%s1523_s26 + $0x62] sm:$0xff] }
  0x36   : >> { %362 = vperm.xlu1 %1453, %v342_v20   ;;  %357 = vperm.xlu0 %1452, %v341_v21  }
  0x3a   : >> { %395 = vperm.xlu1 %1453, %v1308_v22   ;;  %390 = vperm.xlu0 %1452, %v1307_v23  }
  0x3e   : >> { %405 = vperm.xlu1 %1453, %v1310_v24   ;;  %400 = vperm.xlu0 %1452, %v1309_v25  }
  0x42   : >> { %435 = vperm.xlu1 %1453, %v1314_v26   ;;  %430 = vperm.xlu0 %1452, %v1313_v27   ;;  %v1301_v26 = vld [vmem:[%s1738_s1 + $0x2] ss:$0 sm:$0xff]  ;;  %v1384_v27 = vld [vmem:[%s1523_s26 + $0x7a] sm:$0xf] }
  0x46   : >> { %445 = vperm.xlu1 %1453, %v1316_v28   ;;  %440 = vperm.xlu0 %1452, %v1315_v29   ;;  %v1383_v28 = vld [vmem:[%s1523_s26 + $0x72] sm:$0xff] }
  0x4a   : >> { %475 = vperm.xlu1 %1453, %v1320_v30   ;;  %470 = vperm.xlu0 %1452, %v1319_v31  }
  0x4e   : >> { %485 = vperm.xlu1 %1453, %v1322_v32   ;;  %480 = vperm.xlu0 %1452, %v1321_v33  }
  0x52   : >> { %515 = vperm.xlu1 %1453, %v1326_v34   ;;  %510 = vperm.xlu0 %1452, %v1325_v35  }
  0x56   : >> { %525 = vperm.xlu1 %1453, %v1328_v36   ;;  %520 = vperm.xlu0 %1452, %v1327_v37   ;;  %v1388_v36 = vld [vmem:[%s1523_s26 + $0x6b] sm:$0xff]  ;;  %v1387_v37 = vld [vmem:[%s1523_s26 + $0x63] sm:$0xff] }
  0x5a   : >> { %555 = vperm.xlu1 %1453, %v1332_v38   ;;  %550 = vperm.xlu0 %1452, %v1331_v39  }
  0x5e   : >> { %565 = vperm.xlu1 %1453, %v1334_v40   ;;  %560 = vperm.xlu0 %1452, %v1333_v41  }
  0x62   : >> { %598 = vperm.xlu1 %1453, %v1339_v42   ;;  %593 = vperm.xlu0 %1452, %v1338_v43  }
  0x66   : >> { %608 = vperm.xlu1 %1453, %v1341_v44   ;;  %603 = vperm.xlu0 %1452, %v1340_v45  }
  0x6a   : >> { %638 = vperm.xlu1 %1453, %v1345_v46   ;;  %633 = vperm.xlu0 %1452, %v1344_v47   ;;  %v1303_v46 = vld [vmem:[%s1738_s1 + $0x3] ss:$0 sm:$0xff]  ;;  %v1390_v47 = vld [vmem:[%s1523_s26 + $0x7b] sm:$0xf] }
  0x6e   : >> { %648 = vperm.xlu1 %1453, %v1347_v48   ;;  %643 = vperm.xlu0 %1452, %v1346_v49   ;;  %v1389_v48 = vld [vmem:[%s1523_s26 + $0x73] sm:$0xff] }
  0x72   : >> { %678 = vperm.xlu1 %1453, %v1351_v50   ;;  %673 = vperm.xlu0 %1452, %v1350_v51  }
  0x76   : >> { %688 = vperm.xlu1 %1453, %v1353_v52   ;;  %683 = vperm.xlu0 %1452, %v1352_v53  }
  0x7a   : >> { %718 = vperm.xlu1 %1453, %v1357_v54   ;;  %713 = vperm.xlu0 %1452, %v1356_v55   ;;  %v1394_v55 = vld [vmem:[%s1523_s26 + $0x6c] sm:$0xff] }
  0x7e   : >> { %728 = vperm.xlu1 %1453, %v1359_v56   ;;  %723 = vperm.xlu0 %1452, %v1358_v57   ;;  %v1393_v56 = vld [vmem:[%s1523_s26 + $0x64] sm:$0xff] }
  0x82   : >> { %758 = vperm.xlu1 %1453, %v1363_v58   ;;  %753 = vperm.xlu0 %1452, %v1362_v59  }
  0x86   : >> { %768 = vperm.xlu1 %1453, %v1365_v60   ;;  %763 = vperm.xlu0 %1452, %v1364_v61  }
  0x8a   : >> { %801 = vperm.xlu1 %1453, %v1370_v62   ;;  %796 = vperm.xlu0 %1452, %v1369_v63   ;;  %v1305_v63 = vld [vmem:[%s1738_s1 + $0x4] ss:$0 sm:$0xff] }
  0x8d   : >> { %v198_v3 = vpop.permute.xlu1 %197  ;;  %v188_v4 = vpop.permute.xlu0 %187 }
  0x8e   : >> { %811 = vperm.xlu1 %1453, %v1372_v1   ;;  %806 = vperm.xlu0 %1452, %v1371_v2   ;;  %v211_v25 = vmul.f32 %v1297_v12, %v188_v4  ;;  %v213_v38 = vmul.f32 %v1297_v12, %v198_v3  ;;  %v1396_v1 = vld [vmem:[%s1523_s26 + $0x7c] sm:$0xf]  ;;  %v1395_v2 = vld [vmem:[%s1523_s26 + $0x74] sm:$0xff] }
  0x91   : >> { %v203_v7 = vpop.permute.xlu1 %202  ;;  %v193_v8 = vpop.permute.xlu0 %192 }
  0x92   : >> { %841 = vperm.xlu1 %1453, %v1376_v5   ;;  %836 = vperm.xlu0 %1452, %v1375_v6   ;;  %v212_v15 = vmul.f32 %v1297_v12, %v193_v8  ;;  %v214_v23 = vmul.f32 %v1297_v12, %v203_v7 }
  0x95   : >> { %v233_v13 = vpop.permute.xlu1 %232  ;;  %v228_v14 = vpop.permute.xlu0 %227 }
  0x96   : >> { %v252_v16 = vmul.f32 %v1299_v9, %v233_v13  ;;  %851 = vperm.xlu1 %1453, %v1378_v10   ;;  %846 = vperm.xlu0 %1452, %v1377_v11   ;;  %v251_v20 = vmul.f32 %v1299_v9, %v228_v14  ;;  %v1400_v10 = vld [vmem:[%s1523_s26 + $0x80] sm:$0xff] }
  0x98   : >> { %v256_v19 = vadd.f32 %v252_v16, %v212_v15  ;;  %v255_v30 = vadd.f32 %v251_v20, %v211_v25 }
  0x99   : >> { %v243_v21 = vpop.permute.xlu1 %242  ;;  %v238_v22 = vpop.permute.xlu0 %237 }
  0x9a   : >> { %v254_v24 = vmul.f32 %v1299_v9, %v243_v21  ;;  %881 = vperm.xlu1 %1453, %v1382_v17   ;;  %876 = vperm.xlu0 %1452, %v1381_v18   ;;  %v253_v33 = vmul.f32 %v1299_v9, %v238_v22  ;;  %v1401_v9 = vld [vmem:[%s1523_s26 + $0x88] sm:$0xff]  ;;  %v1312_v17 = vld [vmem:[%s1738_s1 + $0x5] ss:$0 sm:$0xff]  ;;  %v1403_v18 = vld [vmem:[%s1523_s26 + $0x98] sm:$0xf] }
  0x9c   : >> { %v258_v29 = vadd.f32 %v254_v24, %v214_v23  ;;  %v257_v43 = vadd.f32 %v253_v33, %v213_v38 }
  0x9d   : >> { %v273_v31 = vpop.permute.xlu1 %272  ;;  %v268_v32 = vpop.permute.xlu0 %267 }
  0x9e   : >> { %v292_v34 = vmul.f32 %v1301_v26, %v273_v31  ;;  %v291_v35 = vmul.f32 %v1301_v26, %v268_v32  ;;  %891 = vperm.xlu1 %1453, %v1384_v27   ;;  %886 = vperm.xlu0 %1452, %v1383_v28   ;;  %v1406_v27 = vld [vmem:[%s1523_s26 + $0x81] sm:$0xff] }
  0xa0   : >> { %v296_v39 = vadd.f32 %v292_v34, %v256_v19  ;;  %v295_v40 = vadd.f32 %v291_v35, %v255_v30  ;;  %v1402_v19 = vld [vmem:[%s1523_s26 + $0x90] sm:$0xff]  ;;  %v1318_v34 = vld [vmem:[%s1738_s1 + $0x6] ss:$0 sm:$0xff]  ;;  %v1409_v35 = vld [vmem:[%s1523_s26 + $0x99] sm:$0xf] }
  0xa1   : >> { %v283_v41 = vpop.permute.xlu1 %282  ;;  %v278_v42 = vpop.permute.xlu0 %277 }
  0xa2   : >> { %v294_v44 = vmul.f32 %v1301_v26, %v283_v41  ;;  %v293_v45 = vmul.f32 %v1301_v26, %v278_v42  ;;  %921 = vperm.xlu1 %1453, %v1388_v36   ;;  %916 = vperm.xlu0 %1452, %v1387_v37   ;;  %v1407_v26 = vld [vmem:[%s1523_s26 + $0x89] sm:$0xff]  ;;  %v1408_v36 = vld [vmem:[%s1523_s26 + $0x91] sm:$0xff] }
  0xa4   : >> { %v298_v49 = vadd.f32 %v294_v44, %v258_v29  ;;  %v297_v50 = vadd.f32 %v293_v45, %v257_v43  ;;  %v1413_v43 = vld [vmem:[%s1523_s26 + $0x8a] sm:$0xff]  ;;  %v1412_v44 = vld [vmem:[%s1523_s26 + $0x82] sm:$0xff] }
  0xa5   : >> { %v313_v51 = vpop.permute.xlu1 %312  ;;  %v308_v52 = vpop.permute.xlu0 %307 }
  0xa6   : >> { %v332_v53 = vmul.f32 %v1303_v46, %v313_v51  ;;  %v331_v54 = vmul.f32 %v1303_v46, %v308_v52  ;;  %931 = vperm.xlu1 %1453, %v1390_v47   ;;  %926 = vperm.xlu0 %1452, %v1389_v48   ;;  %v1324_v51 = vld [vmem:[%s1738_s1 + $0x7] ss:$0 sm:$0xff]  ;;  %v1415_v52 = vld [vmem:[%s1523_s26 + $0x9a] sm:$0xf] }
  0xa8   : >> { %v336_v57 = vadd.f32 %v332_v53, %v296_v39  ;;  %v335_v58 = vadd.f32 %v331_v54, %v295_v40  ;;  %v1414_v53 = vld [vmem:[%s1523_s26 + $0x92] sm:$0xff] }
  0xa9   : >> { %v323_v59 = vpop.permute.xlu1 %322  ;;  %v318_v60 = vpop.permute.xlu0 %317 }
  0xaa   : >> { %v334_v61 = vmul.f32 %v1303_v46, %v323_v59  ;;  %v333_v62 = vmul.f32 %v1303_v46, %v318_v60  ;;  %961 = vperm.xlu1 %1453, %v1394_v55   ;;  %956 = vperm.xlu0 %1452, %v1393_v56   ;;  %v1419_v60 = vld [vmem:[%s1523_s26 + $0x8b] sm:$0xff] }
  0xac   : >> { %v338_v3 = vadd.f32 %v334_v61, %v298_v49  ;;  %v337_v4 = vadd.f32 %v333_v62, %v297_v50  ;;  %v1418_v61 = vld [vmem:[%s1523_s26 + $0x83] sm:$0xff] }
  0xad   : >> { %v353_v5 = vpop.permute.xlu1 %352  ;;  %v348_v6 = vpop.permute.xlu0 %347 }
  0xae   : >> { %v372_v7 = vmul.f32 %v1305_v63, %v353_v5  ;;  %v371_v8 = vmul.f32 %v1305_v63, %v348_v6  ;;  %971 = vperm.xlu1 %1453, %v1396_v1   ;;  %966 = vperm.xlu0 %1452, %v1395_v2   ;;  %v1330_v5 = vld [vmem:[%s1738_s1 + $0x8] ss:$0 sm:$0xff]  ;;  %v1421_v6 = vld [vmem:[%s1523_s26 + $0x9b] sm:$0xf] }
  0xb0   : >> { %v376_v11 = vadd.f32 %v372_v7, %v336_v57  ;;  %v375_v12 = vadd.f32 %v371_v8, %v335_v58  ;;  %v1420_v7 = vld [vmem:[%s1523_s26 + $0x93] sm:$0xff] }
  0xb1   : >> { %v363_v13 = vpop.permute.xlu1 %362  ;;  %v358_v14 = vpop.permute.xlu0 %357 }
  0xb2   : >> { %v374_v15 = vmul.f32 %v1305_v63, %v363_v13  ;;  %v373_v16 = vmul.f32 %v1305_v63, %v358_v14  ;;  %1004 = vperm.xlu1 %1453, %v1401_v9   ;;  %999 = vperm.xlu0 %1452, %v1400_v10   ;;  %v1425_v14 = vld [vmem:[%s1523_s26 + $0x8c] sm:$0xff] }
  0xb4   : >> { %v378_v20 = vadd.f32 %v374_v15, %v338_v3  ;;  %v377_v21 = vadd.f32 %v373_v16, %v337_v4  ;;  %v1424_v15 = vld [vmem:[%s1523_s26 + $0x84] sm:$0xff] }
  0xb5   : >> { %v396_v22 = vpop.permute.xlu1 %395  ;;  %v391_v23 = vpop.permute.xlu0 %390 }
  0xb6   : >> { %v415_v24 = vmul.f32 %v1312_v17, %v396_v22  ;;  %v414_v25 = vmul.f32 %v1312_v17, %v391_v23  ;;  %1014 = vperm.xlu1 %1453, %v1403_v18   ;;  %1009 = vperm.xlu0 %1452, %v1402_v19   ;;  %v1336_v22 = vld [vmem:[%s1738_s1 + $0x9] ss:$0 sm:$0xff]  ;;  %v1427_v23 = vld [vmem:[%s1523_s26 + $0x9c] sm:$0xf] }
  0xb8   : >> { %v419_v28 = vadd.f32 %v415_v24, %v376_v11  ;;  %v418_v29 = vadd.f32 %v414_v25, %v375_v12  ;;  %v1426_v24 = vld [vmem:[%s1523_s26 + $0x94] sm:$0xff] }
  0xb9   : >> { %v406_v30 = vpop.permute.xlu1 %405  ;;  %v401_v31 = vpop.permute.xlu0 %400 }
  0xba   : >> { %v417_v32 = vmul.f32 %v1312_v17, %v406_v30  ;;  %v416_v33 = vmul.f32 %v1312_v17, %v401_v31  ;;  %1044 = vperm.xlu1 %1453, %v1407_v26   ;;  %1039 = vperm.xlu0 %1452, %v1406_v27  }
  0xbc   : >> { %v421_v37 = vadd.f32 %v417_v32, %v378_v20  ;;  %v420_v38 = vadd.f32 %v416_v33, %v377_v21 }
  0xbd   : >> { %v436_v39 = vpop.permute.xlu1 %435  ;;  %v431_v40 = vpop.permute.xlu0 %430 }
  0xbe   : >> { %v455_v41 = vmul.f32 %v1318_v34, %v436_v39  ;;  %v454_v42 = vmul.f32 %v1318_v34, %v431_v40  ;;  %1054 = vperm.xlu1 %1453, %v1409_v35   ;;  %1049 = vperm.xlu0 %1452, %v1408_v36  }
  0xc0   : >> { %v459_v45 = vadd.f32 %v455_v41, %v419_v28  ;;  %v458_v46 = vadd.f32 %v454_v42, %v418_v29 }
  0xc1   : >> { %v446_v47 = vpop.permute.xlu1 %445  ;;  %v441_v48 = vpop.permute.xlu0 %440 }
  0xc2   : >> { %v457_v49 = vmul.f32 %v1318_v34, %v446_v47  ;;  %v456_v50 = vmul.f32 %v1318_v34, %v441_v48  ;;  %1084 = vperm.xlu1 %1453, %v1413_v43   ;;  %1079 = vperm.xlu0 %1452, %v1412_v44  }
  0xc4   : >> { %v461_v54 = vadd.f32 %v457_v49, %v421_v37  ;;  %v460_v55 = vadd.f32 %v456_v50, %v420_v38  ;;  %v1343_v37 = vld [vmem:[%s1738_s1 + $0xa] ss:$0 sm:$0xff]  ;;  %v1349_v50 = vld [vmem:[%s1738_s1 + $0xb] ss:$0 sm:$0xff] }
  0xc5   : >> { %v476_v56 = vpop.permute.xlu1 %475  ;;  %v471_v57 = vpop.permute.xlu0 %470 }
  0xc6   : >> { %v495_v58 = vmul.f32 %v1324_v51, %v476_v56  ;;  %v494_v59 = vmul.f32 %v1324_v51, %v471_v57  ;;  %1094 = vperm.xlu1 %1453, %v1415_v52   ;;  %1089 = vperm.xlu0 %1452, %v1414_v53  }
  0xc8   : >> { %v499_v62 = vadd.f32 %v495_v58, %v459_v45  ;;  %v498_v63 = vadd.f32 %v494_v59, %v458_v46 }
  0xc9   : >> { %v486_v1 = vpop.permute.xlu1 %485  ;;  %v481_v2 = vpop.permute.xlu0 %480 }
  0xca   : >> { %v497_v3 = vmul.f32 %v1324_v51, %v486_v1  ;;  %v496_v4 = vmul.f32 %v1324_v51, %v481_v2  ;;  %1124 = vperm.xlu1 %1453, %v1419_v60   ;;  %1119 = vperm.xlu0 %1452, %v1418_v61  }
  0xcc   : >> { %v501_v8 = vadd.f32 %v497_v3, %v461_v54  ;;  %v500_v9 = vadd.f32 %v496_v4, %v460_v55 }
  0xcd   : >> { %v516_v10 = vpop.permute.xlu1 %515  ;;  %v511_v11 = vpop.permute.xlu0 %510 }
  0xce   : >> { %v535_v12 = vmul.f32 %v1330_v5, %v516_v10  ;;  %v534_v13 = vmul.f32 %v1330_v5, %v511_v11  ;;  %1134 = vperm.xlu1 %1453, %v1421_v6   ;;  %1129 = vperm.xlu0 %1452, %v1420_v7  }
  0xd0   : >> { %v539_v16 = vadd.f32 %v535_v12, %v499_v62  ;;  %v538_v17 = vadd.f32 %v534_v13, %v498_v63  ;;  %v1355_v63 = vld [vmem:[%s1738_s1 + $0xc] ss:$0 sm:$0xff]  ;;  %v1361_v13 = vld [vmem:[%s1738_s1 + $0xd] ss:$0 sm:$0xff] }
  0xd1   : >> { %v526_v18 = vpop.permute.xlu1 %525  ;;  %v521_v19 = vpop.permute.xlu0 %520 }
  0xd2   : >> { %v537_v20 = vmul.f32 %v1330_v5, %v526_v18  ;;  %v536_v21 = vmul.f32 %v1330_v5, %v521_v19  ;;  %1164 = vperm.xlu1 %1453, %v1425_v14   ;;  %1159 = vperm.xlu0 %1452, %v1424_v15  }
  0xd4   : >> { %v541_v25 = vadd.f32 %v537_v20, %v501_v8  ;;  %v540_v26 = vadd.f32 %v536_v21, %v500_v9 }
  0xd5   : >> { %v556_v27 = vpop.permute.xlu1 %555  ;;  %v551_v28 = vpop.permute.xlu0 %550 }
  0xd6   : >> { %v575_v29 = vmul.f32 %v1336_v22, %v556_v27  ;;  %v574_v30 = vmul.f32 %v1336_v22, %v551_v28  ;;  %1174 = vperm.xlu1 %1453, %v1427_v23   ;;  %1169 = vperm.xlu0 %1452, %v1426_v24  }
  0xd8   : >> { %v579_v31 = vadd.f32 %v575_v29, %v539_v16  ;;  %v578_v32 = vadd.f32 %v574_v30, %v538_v17 }
  0xd9   : >> { %v566_v33 = vpop.permute.xlu1 %565  ;;  %v561_v34 = vpop.permute.xlu0 %560 }
  0xda   : >> { %v577_v35 = vmul.f32 %v1336_v22, %v566_v33  ;;  %v576_v36 = vmul.f32 %v1336_v22, %v561_v34 }
  0xdc   : >> { %v581_v38 = vadd.f32 %v577_v35, %v541_v25  ;;  %v580_v39 = vadd.f32 %v576_v36, %v540_v26 }
  0xdd   : >> { %v599_v40 = vpop.permute.xlu1 %598  ;;  %v594_v41 = vpop.permute.xlu0 %593 }
  0xde   : >> { %v618_v42 = vmul.f32 %v1343_v37, %v599_v40  ;;  %v617_v43 = vmul.f32 %v1343_v37, %v594_v41 }
  0xe0   : >> { %v622_v44 = vadd.f32 %v618_v42, %v579_v31  ;;  %v621_v45 = vadd.f32 %v617_v43, %v578_v32 }
  0xe1   : >> { %v609_v46 = vpop.permute.xlu1 %608  ;;  %v604_v47 = vpop.permute.xlu0 %603 }
  0xe2   : >> { %v620_v48 = vmul.f32 %v1343_v37, %v609_v46  ;;  %v619_v49 = vmul.f32 %v1343_v37, %v604_v47 }
  0xe4   : >> { %v624_v51 = vadd.f32 %v620_v48, %v581_v38  ;;  %v623_v52 = vadd.f32 %v619_v49, %v580_v39 }
  0xe5   : >> { %v639_v53 = vpop.permute.xlu1 %638  ;;  %v634_v54 = vpop.permute.xlu0 %633 }
  0xe6   : >> { %v658_v55 = vmul.f32 %v1349_v50, %v639_v53  ;;  %v657_v56 = vmul.f32 %v1349_v50, %v634_v54 }
  0xe8   : >> { %v662_v57 = vadd.f32 %v658_v55, %v622_v44  ;;  %v661_v58 = vadd.f32 %v657_v56, %v621_v45  ;;  %v1367_v56 = vld [vmem:[%s1738_s1 + $0xe] ss:$0 sm:$0xff] }
  0xe9   : >> { %v649_v59 = vpop.permute.xlu1 %648  ;;  %v644_v60 = vpop.permute.xlu0 %643 }
  0xea   : >> { %v660_v61 = vmul.f32 %v1349_v50, %v649_v59  ;;  %v659_v62 = vmul.f32 %v1349_v50, %v644_v60  ;;  %v1374_v59 = vld [vmem:[%s1738_s1 + $0xf] ss:$0 sm:$0xff] }
  0xec   : >> { %v664_v1 = vadd.f32 %v660_v61, %v624_v51  ;;  %v663_v2 = vadd.f32 %v659_v62, %v623_v52  ;;  %v1380_v62 = vld [vmem:[%s1738_s1 + $0x10] ss:$0 sm:$0xff] }
  0xed   : >> { %v679_v3 = vpop.permute.xlu1 %678  ;;  %v674_v4 = vpop.permute.xlu0 %673 }
  0xee   : >> { %v698_v5 = vmul.f32 %v1355_v63, %v679_v3  ;;  %v697_v6 = vmul.f32 %v1355_v63, %v674_v4 }
  0xf0   : >> { %v702_v7 = vadd.f32 %v698_v5, %v662_v57  ;;  %v701_v8 = vadd.f32 %v697_v6, %v661_v58  ;;  %v1386_v6 = vld [vmem:[%s1738_s1 + $0x11] ss:$0 sm:$0xff] }
  0xf1   : >> { %v689_v9 = vpop.permute.xlu1 %688  ;;  %v684_v10 = vpop.permute.xlu0 %683 }
  0xf2   : >> { %v700_v11 = vmul.f32 %v1355_v63, %v689_v9  ;;  %v699_v12 = vmul.f32 %v1355_v63, %v684_v10 }
  0xf4   : >> { %v704_v14 = vadd.f32 %v700_v11, %v664_v1  ;;  %v703_v15 = vadd.f32 %v699_v12, %v663_v2 }
  0xf5   : >> { %v719_v16 = vpop.permute.xlu1 %718  ;;  %v714_v17 = vpop.permute.xlu0 %713 }
  0xf6   : >> { %v738_v18 = vmul.f32 %v1361_v13, %v719_v16  ;;  %v737_v19 = vmul.f32 %v1361_v13, %v714_v17 }
  0xf8   : >> { %v742_v20 = vadd.f32 %v738_v18, %v702_v7  ;;  %v741_v21 = vadd.f32 %v737_v19, %v701_v8 }
  0xf9   : >> { %v729_v22 = vpop.permute.xlu1 %728  ;;  %v724_v23 = vpop.permute.xlu0 %723 }
  0xfa   : >> { %v740_v24 = vmul.f32 %v1361_v13, %v729_v22  ;;  %v739_v25 = vmul.f32 %v1361_v13, %v724_v23  ;;  %v1392_v13 = vld [vmem:[%s1738_s1 + $0x12] ss:$0 sm:$0xff] }
  0xfc   : >> { %v744_v26 = vadd.f32 %v740_v24, %v704_v14  ;;  %v743_v27 = vadd.f32 %v739_v25, %v703_v15 }
  0xfd   : >> { %v759_v28 = vpop.permute.xlu1 %758  ;;  %v754_v29 = vpop.permute.xlu0 %753 }
  0xfe   : >> { %v778_v60 = vmul.f32 %v1367_v56, %v759_v28  ;;  %v777_v61 = vmul.f32 %v1367_v56, %v754_v29 }
 0x100   : >> { %v782_v7 = vadd.f32 %v778_v60, %v742_v20  ;;  %v781_v8 = vadd.f32 %v777_v61, %v741_v21  ;;  %v1398_v20 = vld [vmem:[%s1738_s1 + $0x13] ss:$0 sm:$0xff] }
 0x101   : >> { %v769_v30 = vpop.permute.xlu1 %768  ;;  %v764_v31 = vpop.permute.xlu0 %763 }
 0x102   : >> { %v780_v4 = vmul.f32 %v1367_v56, %v769_v30  ;;  %v779_v5 = vmul.f32 %v1367_v56, %v764_v31 }
 0x104   : >> { %v784_v22 = vadd.f32 %v780_v4, %v744_v26  ;;  %v783_v23 = vadd.f32 %v779_v5, %v743_v27 }
 0x105   : >> { %v802_v32 = vpop.permute.xlu1 %801  ;;  %v797_v33 = vpop.permute.xlu0 %796 }
 0x106   : >> { %v821_v2 = vmul.f32 %v1374_v59, %v802_v32  ;;  %v820_v3 = vmul.f32 %v1374_v59, %v797_v33 }
 0x108   : >> { %v825_v16 = vadd.f32 %v821_v2, %v782_v7  ;;  %v824_v17 = vadd.f32 %v820_v3, %v781_v8 }
 0x109   : >> { %v812_v34 = vpop.permute.xlu1 %811  ;;  %v807_v35 = vpop.permute.xlu0 %806 }
 0x10a   : >> { %v823_v11 = vmul.f32 %v1374_v59, %v812_v34  ;;  %v822_v12 = vmul.f32 %v1374_v59, %v807_v35  ;;  %v1405_v35 = vld [vmem:[%s1738_s1 + $0x14] ss:$0 sm:$0xff] }
 0x10c   : >> { %v827_v31 = vadd.f32 %v823_v11, %v784_v22  ;;  %v826_v32 = vadd.f32 %v822_v12, %v783_v23 }
 0x10d   : >> { %v842_v36 = vpop.permute.xlu1 %841  ;;  %v837_v37 = vpop.permute.xlu0 %836 }
 0x10e   : >> { %v861_v9 = vmul.f32 %v1380_v62, %v842_v36  ;;  %v860_v10 = vmul.f32 %v1380_v62, %v837_v37 }
 0x110   : >> { %v865_v21 = vadd.f32 %v861_v9, %v825_v16  ;;  %v864_v28 = vadd.f32 %v860_v10, %v824_v17 }
 0x111   : >> { %v852_v38 = vpop.permute.xlu1 %851  ;;  %v847_v39 = vpop.permute.xlu0 %846 }
 0x112   : >> { %v863_v24 = vmul.f32 %v1380_v62, %v852_v38  ;;  %v862_v25 = vmul.f32 %v1380_v62, %v847_v39 }
 0x115   : >> { %v882_v40 = vpop.permute.xlu1 %881  ;;  %v877_v41 = vpop.permute.xlu0 %876 }
 0x116   : >> { %v901_v18 = vmul.f32 %v1386_v6, %v882_v40  ;;  %v900_v19 = vmul.f32 %v1386_v6, %v877_v41  ;;  %v867_v40 = vadd.f32 %v863_v24, %v827_v31  ;;  %v866_v41 = vadd.f32 %v862_v25, %v826_v32 }
 0x118   : >> { %v905_v36 = vadd.f32 %v901_v18, %v865_v21  ;;  %v904_v37 = vadd.f32 %v900_v19, %v864_v28 }
 0x119   : >> { %v892_v42 = vpop.permute.xlu1 %891  ;;  %v887_v43 = vpop.permute.xlu0 %886 }
 0x11a   : >> { %v903_v33 = vmul.f32 %v1386_v6, %v892_v42  ;;  %v902_v34 = vmul.f32 %v1386_v6, %v887_v43 }
 0x11c   : >> { %v907_v61 = vadd.f32 %v903_v33, %v867_v40  ;;  %v906_v62 = vadd.f32 %v902_v34, %v866_v41 }
 0x11d   : >> { %v922_v44 = vpop.permute.xlu1 %921  ;;  %v917_v45 = vpop.permute.xlu0 %916 }
 0x11e   : >> { %v941_v29 = vmul.f32 %v1392_v13, %v922_v44  ;;  %v940_v30 = vmul.f32 %v1392_v13, %v917_v45  ;;  %v1411_v44 = vld [vmem:[%s1738_s1 + $0x15] ss:$0 sm:$0xff] }
 0x120   : >> { %v945_v42 = vadd.f32 %v941_v29, %v905_v36  ;;  %v944_v43 = vadd.f32 %v940_v30, %v904_v37 }
 0x121   : >> { %v932_v46 = vpop.permute.xlu1 %931  ;;  %v927_v47 = vpop.permute.xlu0 %926 }
 0x122   : >> { %v943_v56 = vmul.f32 %v1392_v13, %v932_v46  ;;  %v942_v59 = vmul.f32 %v1392_v13, %v927_v47 }
 0x125   : >> { %v962_v48 = vpop.permute.xlu1 %961  ;;  %v957_v49 = vpop.permute.xlu0 %956 }
 0x126   : >> { %v981_v38 = vmul.f32 %v1398_v20, %v962_v48  ;;  %v980_v39 = vmul.f32 %v1398_v20, %v957_v49  ;;  %v1417_v48 = vld [vmem:[%s1738_s1 + $0x16] ss:$0 sm:$0xff] }
 0x128   : >> { %v985_v49 = vadd.f32 %v981_v38, %v945_v42  ;;  %v984_v4 = vadd.f32 %v980_v39, %v944_v43 }
 0x129   : >> { %v1667_v50 = vpop.permute.xlu1 %971  ;;  %v1669_v51 = vpop.permute.xlu0 %966 }
 0x12a   : >> { %v983_v2 = vmul.f32 %v1398_v20, %v1667_v50  ;;  %v982_v3 = vmul.f32 %v1398_v20, %v1669_v51  ;;  %v1423_v51 = vld [vmem:[%s1738_s1 + $0x17] ss:$0 sm:$0xff] }
 0x12d   : >> { %v1005_v52 = vpop.permute.xlu1 %1004  ;;  %v1000_v53 = vpop.permute.xlu0 %999 }
 0x12e   : >> { %v1024_v45 = vmul.f32 %v1405_v35, %v1005_v52  ;;  %v1023_v60 = vmul.f32 %v1405_v35, %v1000_v53  ;;  %v947_v52 = vadd.f32 %v943_v56, %v907_v61  ;;  %v946_v53 = vadd.f32 %v942_v59, %v906_v62 }
 0x130   : >> { %v1028_v8 = vadd.f32 %v1024_v45, %v985_v49  ;;  %v1027_v9 = vadd.f32 %v1023_v60, %v984_v4  ;;  %v987_v12 = vadd.f32 %v983_v2, %v947_v52  ;;  %v986_v13 = vadd.f32 %v982_v3, %v946_v53 }
 0x131   : >> { %v1671_v54 = vpop.permute.xlu1 %1014  ;;  %v1673_v55 = vpop.permute.xlu0 %1009 }
 0x132   : >> { %v1026_v7 = vmul.f32 %v1405_v35, %v1671_v54  ;;  %v1025_v50 = vmul.f32 %v1405_v35, %v1673_v55 }
 0x134   : >> { %v1030_v22 = vadd.f32 %v1026_v7, %v987_v12  ;;  %v1029_v23 = vadd.f32 %v1025_v50, %v986_v13 }
 0x135   : >> { %v1678_v57 = vpop.permute.xlu1 %1044  ;;  %v1680_v58 = vpop.permute.xlu0 %1039 }
 0x136   : >> { %v1064_v5 = vmul.f32 %v1411_v44, %v1678_v57  ;;  %v1063_v6 = vmul.f32 %v1411_v44, %v1680_v58 }
 0x138   : >> { %v1068_v18 = vadd.f32 %v1064_v5, %v1028_v8  ;;  %v1067_v54 = vadd.f32 %v1063_v6, %v1027_v9 }
 0x139   : >> { %v1688_v63 = vpop.permute.xlu1 %1054  ;;  %v1690_v1 = vpop.permute.xlu0 %1049 }
 0x13a   : >> { %v1066_v57 = vmul.f32 %v1411_v44, %v1688_v63  ;;  %v1065_v58 = vmul.f32 %v1411_v44, %v1690_v1 }
 0x13c   : >> { %v1070_v21 = vadd.f32 %v1066_v57, %v1030_v22  ;;  %v1069_v63 = vadd.f32 %v1065_v58, %v1029_v23 }
 0x13d   : >> { %v1085_v14 = vpop.permute.xlu1 %1084  ;;  %v1080_v15 = vpop.permute.xlu0 %1079 }
 0x13e   : >> { %v1104_v10 = vmul.f32 %v1417_v48, %v1085_v14  ;;  %v1103_v11 = vmul.f32 %v1417_v48, %v1080_v15  ;;  %v1429_v14 = vld [vmem:[%s1738_s1 + $0x18] ss:$0 sm:$0xff] }
 0x140   : >> { %v1108_v15 = vadd.f32 %v1104_v10, %v1068_v18  ;;  %v1107_v20 = vadd.f32 %v1103_v11, %v1067_v54 }
 0x141   : >> { %v1095_v26 = vpop.permute.xlu1 %1094  ;;  %v1090_v27 = vpop.permute.xlu0 %1089 }
 0x142   : >> { %v1106_v24 = vmul.f32 %v1417_v48, %v1095_v26  ;;  %v1105_v25 = vmul.f32 %v1417_v48, %v1090_v27 }
 0x144   : >> { %v1110_v35 = vadd.f32 %v1106_v24, %v1070_v21  ;;  %v1109_v26 = vadd.f32 %v1105_v25, %v1069_v63 }
 0x145   : >> { %v1125_v46 = vpop.permute.xlu1 %1124  ;;  %v1120_v47 = vpop.permute.xlu0 %1119 }
 0x146   : >> { %v1144_v19 = vmul.f32 %v1423_v51, %v1125_v46  ;;  %v1143_v55 = vmul.f32 %v1423_v51, %v1120_v47 }
 0x148   : >> { %v1148_v31 = vadd.f32 %v1144_v19, %v1108_v15  ;;  %v1147_v32 = vadd.f32 %v1143_v55, %v1107_v20 }
 0x149   : >> { %v1135_v16 = vpop.permute.xlu1 %1134  ;;  %v1130_v17 = vpop.permute.xlu0 %1129 }
 0x14a   : >> { %v1146_v28 = vmul.f32 %v1423_v51, %v1135_v16  ;;  %v1145_v1 = vmul.f32 %v1423_v51, %v1130_v17 }
 0x14c   : >> { %v1150_v37 = vadd.f32 %v1146_v28, %v1110_v35  ;;  %v1149_v38 = vadd.f32 %v1145_v1, %v1109_v26 }
 0x14d   : >> { %v1165_v29 = vpop.permute.xlu1 %1164  ;;  %v1160_v30 = vpop.permute.xlu0 %1159 }
 0x14e   : >> { %v1184_v33 = vmul.f32 %v1429_v14, %v1165_v29  ;;  %v1183_v34 = vmul.f32 %v1429_v14, %v1160_v30 }
 0x150   : >> { %v1188_v27 = vadd.f32 %v1184_v33, %v1148_v31  ;;  %v1187_v36 = vadd.f32 %v1183_v34, %v1147_v32 }
 0x151   : >> { %v1175_v39 = vpop.permute.xlu1 %1174  ;;  %v1170_v40 = vpop.permute.xlu0 %1169 }
 0x152   : >> { %v1198_v41 = vadd.f32 %v1502_v0, %v1188_v27  ;;  %v1197_v56 = vadd.f32 %v1502_v0, %v1187_v36  ;;  %v1186_v59 = vmul.f32 %v1429_v14, %v1175_v39  ;;  %v1185_v44 = vmul.f32 %v1429_v14, %v1170_v40 }
 0x154   : >> { %v1202_v42 = vmax.f32 %v1198_v41, 0.0  ;;  %v1201_v43 = vmax.f32 %v1197_v56, 0.0  ;;  %v1190_v45 = vadd.f32 %v1186_v59, %v1150_v37  ;;  %v1189_v60 = vadd.f32 %v1185_v44, %v1149_v38 }
 0x156   : >> { %1208 = vst.msk [vmem:[%s1205_s6 + $0x8] sm:$0xff] %vm1206_vm0, %v1202_v42  ;;  %1207 = vst.msk [vmem:[%s1205_s6] sm:$0xff] %vm1206_vm0, %v1201_v43  ;;  %v1200_v61 = vadd.f32 %v1502_v0, %v1190_v45  ;;  %v1199_v62 = vadd.f32 %v1502_v0, %v1189_v60 }
 0x157   : > { %176 = sbr.rel (!%p174_p4) target bundleno = 15 (0xf), region = 99 }
 0x158   : >> { %v1204_v2 = vmax.f32 %v1200_v61, 0.0  ;;  %v1203_v3 = vmax.f32 %v1199_v62, 0.0 }
 0x15a   : >> { %1211 = vst.msk [vmem:[%s1205_s6 + $0x18] sm:$0xf] %vm1210_vm1, %v1204_v2 }
 0x15b   : >> { %1209 = vst.msk [vmem:[%s1205_s6 + $0x10] sm:$0xff] %vm1206_vm0, %v1203_v3 }
 0x15c PF: > { %s13_s12 = sadd.s32 1, %s1464_s12  }
 0x15d   : > { %p10_p5 = scmp.ge.s32.totalorder %s13_s12, 4  }
 0x15f   :  { %12 = sbr.rel (!%p10_p5) target bundleno = 1 (0x1), region = 110 }

// kernel: lenet_forward.9
= control target key start
LH: loop header
LB: loop body
LE: loop exit
PB: predicated region body
PF: predicated region fallthrough
CT: control target
= control target key end

     0   :  { %s155_s22 = smov 64   ;;  %vm121_vm0 = vcmask 522240   ;;  %s320_s0 = inlined_call_operand.vmem [shape: f32[2,7,2,7,128], index: 0, kind: input, shape index: {}]   ;;  %s321_s1 = inlined_call_operand.vmem [shape: f32[2,7,7,64], index: 1, kind: output, shape index: {}]  }
   0x1   :  { %v10_v0 = vld [vmem:[%s320_s0 + $0x20] sm:$0x7f]  ;;  %v142_v1 = vld [vmem:[%s320_s0 + $0x28] sm:$0x7f]  ;;  %v11_v5 = vld [vmem:[%s320_s0 + $0x30] sm:$0x7f] }
   0x2   :  { %v8_v2 = vld [vmem:[%s320_s0] sm:$0x7f]  ;;  %v39_v3 = vmax.f32 %v10_v0, %v142_v1  ;;  %v140_v4 = vld [vmem:[%s320_s0 + $0x8] sm:$0x7f]  ;;  %v143_v6 = vld [vmem:[%s320_s0 + $0x38] sm:$0x7f] }
   0x3   :  { %v37_v7 = vmax.f32 %v8_v2, %v140_v4  ;;  %v9_v8 = vld [vmem:[%s320_s0 + $0x10] sm:$0x7f]  ;;  %v141_v9 = vld [vmem:[%s320_s0 + $0x18] sm:$0x7f]  ;;  %v40_v10 = vmax.f32 %v11_v5, %v143_v6  ;;  %v12_v14 = vld [vmem:[%s320_s0 + $0x40] sm:$0x7f] }
   0x4   :  { %69 = vrot.lane.b32.xlu1 %v39_v3, %s155_s22  ;;  %v38_v11 = vmax.f32 %v9_v8, %v141_v9  ;;  %v13_v12 = vld [vmem:[%s320_s0 + $0x50] sm:$0x7f]  ;;  %v145_v13 = vld [vmem:[%s320_s0 + $0x58] sm:$0x7f]  ;;  %v144_v15 = vld [vmem:[%s320_s0 + $0x48] sm:$0x7f] }
   0x5   :  { %65 = vrot.lane.b32.xlu0 %v37_v7, %s155_s22  ;;  %v42_v16 = vmax.f32 %v13_v12, %v145_v13  ;;  %v41_v17 = vmax.f32 %v12_v14, %v144_v15  ;;  %v15_v18 = vld [vmem:[%s320_s0 + $0x70] sm:$0x7f]  ;;  %v147_v19 = vld [vmem:[%s320_s0 + $0x78] sm:$0x7f]  ;;  %v14_v20 = vld [vmem:[%s320_s0 + $0x60] sm:$0x7f] }
   0x6   :  { %v146_v21 = vld [vmem:[%s320_s0 + $0x68] sm:$0x7f]  ;;  %v44_v22 = vmax.f32 %v15_v18, %v147_v19  ;;  %v17_v24 = vld [vmem:[%s320_s0 + $0x90] sm:$0x7f]  ;;  %v149_v25 = vld [vmem:[%s320_s0 + $0x98] sm:$0x7f] }
   0x7   :  { %v43_v23 = vmax.f32 %v14_v20, %v146_v21  ;;  %v16_v26 = vld [vmem:[%s320_s0 + $0x80] sm:$0x7f]  ;;  %v148_v27 = vld [vmem:[%s320_s0 + $0x88] sm:$0x7f]  ;;  %v46_v28 = vmax.f32 %v17_v24, %v149_v25  ;;  %v19_v30 = vld [vmem:[%s320_s0 + $0xb0] sm:$0x7f] }
   0x8   :  { %71 = vrot.lane.b32.xlu1 %v40_v10, %s155_s22  ;;  %v45_v29 = vmax.f32 %v16_v26, %v148_v27  ;;  %v151_v31 = vld [vmem:[%s320_s0 + $0xb8] sm:$0x7f]  ;;  %v18_v32 = vld [vmem:[%s320_s0 + $0xa0] sm:$0x7f]  ;;  %v150_v33 = vld [vmem:[%s320_s0 + $0xa8] sm:$0x7f] }
   0x9   :  { %67 = vrot.lane.b32.xlu0 %v38_v11, %s155_s22  ;;  %v48_v34 = vmax.f32 %v19_v30, %v151_v31  ;;  %v47_v35 = vmax.f32 %v18_v32, %v150_v33  ;;  %v21_v36 = vld [vmem:[%s320_s0 + $0xd0] sm:$0x7f]  ;;  %v153_v37 = vld [vmem:[%s320_s0 + $0xd8] sm:$0x7f]  ;;  %v20_v38 = vld [vmem:[%s320_s0 + $0xc0] sm:$0x7f] }
   0xa   :  { %v152_v39 = vld [vmem:[%s320_s0 + $0xc8] sm:$0x7f]  ;;  %v50_v40 = vmax.f32 %v21_v36, %v153_v37 }
   0xb   :  { %v49_v41 = vmax.f32 %v20_v38, %v152_v39 }
   0xc   :  { %75 = vrot.lane.b32.xlu1 %v42_v16, %s155_s22 }
   0xd   :  { %73 = vrot.lane.b32.xlu0 %v41_v17, %s155_s22 }
  0x10   :  { %79 = vrot.lane.b32.xlu1 %v44_v22, %s155_s22 }
  0x11   :  { %77 = vrot.lane.b32.xlu0 %v43_v23, %s155_s22 }
  0x14   :  { %83 = vrot.lane.b32.xlu1 %v46_v28, %s155_s22 }
  0x15   :  { %81 = vrot.lane.b32.xlu0 %v45_v29, %s155_s22 }
  0x18   :  { %87 = vrot.lane.b32.xlu1 %v48_v34, %s155_s22 }
  0x19   :  { %85 = vrot.lane.b32.xlu0 %v47_v35, %s155_s22 }
  0x1c   :  { %91 = vrot.lane.b32.xlu1 %v50_v40, %s155_s22 }
  0x1d   :  { %89 = vrot.lane.b32.xlu0 %v49_v41, %s155_s22 }
  0x76   :  { %v70_v42 = vpop.permute.xlu1 %69 }
  0x77   :  { %v109_v43 = vmax.f32 %v39_v3, %v70_v42  ;;  %v66_v44 = vpop.permute.xlu0 %65 }
  0x78   :  { %v107_v45 = vmax.f32 %v37_v7, %v66_v44 }
  0x79   :  { %124 = vst.msk [vmem:[%s321_s1 + $0x10] sm:$0x7f] %vm121_vm0, %v109_v43 }
  0x7a   :  { %122 = vst.msk [vmem:[%s321_s1] sm:$0x7f] %vm121_vm0, %v107_v45  ;;  %v72_v46 = vpop.permute.xlu1 %71 }
  0x7b   :  { %v110_v47 = vmax.f32 %v40_v10, %v72_v46  ;;  %v68_v48 = vpop.permute.xlu0 %67 }
  0x7c   :  { %v108_v49 = vmax.f32 %v38_v11, %v68_v48 }
  0x7d   :  { %125 = vst.msk [vmem:[%s321_s1 + $0x18] sm:$0x7f] %vm121_vm0, %v110_v47 }
  0x7e   :  { %123 = vst.msk [vmem:[%s321_s1 + $0x8] sm:$0x7f] %vm121_vm0, %v108_v49  ;;  %v76_v50 = vpop.permute.xlu1 %75 }
  0x7f   :  { %v112_v51 = vmax.f32 %v42_v16, %v76_v50  ;;  %v74_v52 = vpop.permute.xlu0 %73 }
  0x80   :  { %v111_v53 = vmax.f32 %v41_v17, %v74_v52 }
  0x81   :  { %127 = vst.msk [vmem:[%s321_s1 + $0x28] sm:$0x7f] %vm121_vm0, %v112_v51 }
  0x82   :  { %126 = vst.msk [vmem:[%s321_s1 + $0x20] sm:$0x7f] %vm121_vm0, %v111_v53  ;;  %v80_v54 = vpop.permute.xlu1 %79 }
  0x83   :  { %v114_v55 = vmax.f32 %v44_v22, %v80_v54  ;;  %v78_v56 = vpop.permute.xlu0 %77 }
  0x84   :  { %v113_v57 = vmax.f32 %v43_v23, %v78_v56 }
  0x85   :  { %129 = vst.msk [vmem:[%s321_s1 + $0x38] sm:$0x7f] %vm121_vm0, %v114_v55 }
  0x86   :  { %128 = vst.msk [vmem:[%s321_s1 + $0x30] sm:$0x7f] %vm121_vm0, %v113_v57  ;;  %v84_v58 = vpop.permute.xlu1 %83 }
  0x87   :  { %v116_v59 = vmax.f32 %v46_v28, %v84_v58  ;;  %v82_v60 = vpop.permute.xlu0 %81 }
  0x88   :  { %v115_v61 = vmax.f32 %v45_v29, %v82_v60 }
  0x89   :  { %131 = vst.msk [vmem:[%s321_s1 + $0x48] sm:$0x7f] %vm121_vm0, %v116_v59 }
  0x8a   :  { %130 = vst.msk [vmem:[%s321_s1 + $0x40] sm:$0x7f] %vm121_vm0, %v115_v61  ;;  %v88_v62 = vpop.permute.xlu1 %87 }
  0x8b   :  { %v118_v63 = vmax.f32 %v48_v34, %v88_v62  ;;  %v86_v0 = vpop.permute.xlu0 %85 }
  0x8c   :  { %v117_v1 = vmax.f32 %v47_v35, %v86_v0 }
  0x8d   :  { %133 = vst.msk [vmem:[%s321_s1 + $0x58] sm:$0x7f] %vm121_vm0, %v118_v63 }
  0x8e   :  { %132 = vst.msk [vmem:[%s321_s1 + $0x50] sm:$0x7f] %vm121_vm0, %v117_v1  ;;  %v92_v2 = vpop.permute.xlu1 %91 }
  0x8f   :  { %v120_v3 = vmax.f32 %v50_v40, %v92_v2  ;;  %v90_v4 = vpop.permute.xlu0 %89 }
  0x90   :  { %v119_v5 = vmax.f32 %v49_v41, %v90_v4 }
  0x91   :  { %135 = vst.msk [vmem:[%s321_s1 + $0x68] sm:$0x7f] %vm121_vm0, %v120_v3 }
  0x92   :  { %134 = vst.msk [vmem:[%s321_s1 + $0x60] sm:$0x7f] %vm121_vm0, %v119_v5 }

// kernel: lenet_forward.8
= control target key start
LH: loop header
LB: loop body
LE: loop exit
PB: predicated region body
PF: predicated region fallthrough
CT: control target
= control target key end

     0   :  { %s3206_s12 = smov 0   ;;  %s3648_s0 = inlined_call_operand.vmem [shape: f32[2,18,18,32], index: 0, kind: input, shape index: {}]   ;;  %s3649_s1 = inlined_call_operand.vmem [shape: f32[25,32,64], index: 1, kind: input, shape index: {}]   ;;  %s3650_s2 = inlined_call_operand.vmem [shape: f32[1,64], index: 2, kind: input, shape index: {}]   ;;  %s3651_s3 = inlined_call_operand.vmem [shape: f32[2,14,14,64], index: 3, kind: output, shape index: {}]  }
   0x1 LB: > { %s2530_s13 = sadd.s32 4294967295, %s3180_s12   ;;  %p2534_p0 = scmp.ge.s32.totalorder %s3180_s12, 1  ;;  %s3180_s12 = sphi %s3206_s12, %s13_s12  }
   0x2   : > { %p137_p1 = scmp.lt.s32.totalorder %s3180_s12, 3 }
   0x4   : > { %p138_p2 = pnand %p2534_p0, %p137_p1 }
   0x5   : > { %p161_p3 = scmp.lt.s32.totalorder (!%p138_p2), %s2530_s13, 1  ;;  %s3229_s24 = smov (!%p138_p2), 0  }
   0x6   : > { %141 = sbr.rel (%p138_p2) target bundleno = 346 (0x15a), region = 32 }
   0xb   : > { %v3217_v0 = vld [vmem:[%s3650_s2] ss:$0 sm:$0xff]  ;;  %s3653_s13 = smov (!%p161_p3, %s2530_s13), 1 }
   0xc   : > { %s3152_s16 = smul.u32 432, %s3653_s13 }
   0xd   : > { %s3153_s17 = smul.u32 224, %s3653_s13 }
   0xe   : > { %s3222_s20 = scalar_lea.vmem %s3648_s0, %s3152_s16 }
   0xf   : > { %s3227_s23 = scalar_lea.vmem %s3651_s3, %s3153_s17 }
  0x10 LB: >> { %v2540_v1 = vld [vmem:[%s3649_s1 + $0x38] sm:$0xff]  ;;  %v2539_v3 = vld [vmem:[%s3649_s1 + $0x30] sm:$0xff]  ;;  %v2538_v5 = vld [vmem:[%s3649_s1 + $0x28] sm:$0xff]  ;;  %s178_s10 = smul.u32 24, %s3184_s24  ;;  %vm193_vm0 = vcmask 261120   ;;  %vm2452_vm1 = vcmask 521216   ;;  %s3184_s24 = sphi %s3229_s24, %s177_s24  }
  0x11   : >> { %v185_v2 = vld [vmem:[%s3649_s1 + $0x18] sm:$0xff]  ;;  %2877 = vmatprep.subr.mxu0 %v2540_v1  ;;  %v184_v4 = vld [vmem:[%s3649_s1 + $0x10] sm:$0xff]  ;;  %v183_v6 = vld [vmem:[%s3649_s1 + $0x8] sm:$0xff]  ;;  %vm2450_vm2 = vcmask 523264  }
  0x12   : >> { %2888 = vmatprep.subr.mxu1 %v185_v2  ;;  %2878 = vmatpush3.msra.mxu0 %v2540_v1  ;;  %v2537_v7 = vld [vmem:[%s3649_s1 + $0x20] sm:$0xff]  ;;  %s3260_s16 = scalar_lea.vmem %s3222_s20, %s178_s10  ;;  %v2548_v13 = vld [vmem:[%s3649_s1 + $0x58] sm:$0xff]  ;;  %v2547_v15 = vld [vmem:[%s3649_s1 + $0x50] sm:$0xff] }
  0x13   : >> { %2889 = vmatpush3.msra.mxu1 %v185_v2  ;;  %2879 = vmatprep.subr.mxu0 %v2539_v3  ;;  %v182_v8 = vld [vmem:[%s3649_s1] sm:$0xff]  ;;  %v187_v11 = vld [vmem:[%s3260_s16 + $0x9] sm:$0x3f]  ;;  %v2554_v14 = vld [vmem:[%s3649_s1 + $0x78] sm:$0xff] }
  0x14   : >> { %2890 = vmatprep.subr.mxu1 %v184_v4  ;;  %2880 = vmatpush3.msra.mxu0 %v2539_v3  ;;  %v186_v9 = vld [vmem:[%s3260_s16 + $0x1] sm:$0xff]  ;;  %v2553_v16 = vld [vmem:[%s3649_s1 + $0x70] sm:$0xff]  ;;  %v357_v22 = vld [vmem:[%s3260_s16 + $0xa] sm:$0x3f] }
  0x15   : >> { %2891 = vmatpush3.msra.mxu1 %v184_v4  ;;  %2881 = vmatprep.subr.mxu0 %v2538_v5  ;;  %v180_v10 = vld [vmem:[%s3260_s16] sm:$0xff]  ;;  %v181_v12 = vld [vmem:[%s3260_s16 + $0x8] sm:$0x3f]  ;;  %v2560_v23 = vld [vmem:[%s3649_s1 + $0x98] sm:$0xff] }
  0x16   : >> { %2892 = vmatprep.subr.mxu1 %v183_v6  ;;  %2882 = vmatpush3.msra.mxu0 %v2538_v5  ;;  %v2546_v17 = vld [vmem:[%s3649_s1 + $0x48] sm:$0xff]  ;;  %v2545_v20 = vld [vmem:[%s3649_s1 + $0x40] sm:$0xff]  ;;  %v2559_v26 = vld [vmem:[%s3649_s1 + $0x90] sm:$0xff] }
  0x17   : >> { %2893 = vmatpush3.msra.mxu1 %v183_v6  ;;  %2883 = vmatprep.subr.mxu0 %v2537_v7  ;;  %v2552_v18 = vld [vmem:[%s3649_s1 + $0x68] sm:$0xff]  ;;  %v2551_v21 = vld [vmem:[%s3649_s1 + $0x60] sm:$0xff]  ;;  %v2568_v27 = vld [vmem:[%s3649_s1 + $0xb8] sm:$0xff] }
  0x18   : >> { %2894 = vmatprep.subr.mxu1 %v182_v8  ;;  %2884 = vmatpush3.msra.mxu0 %v2537_v7  ;;  %v356_v19 = vld [vmem:[%s3260_s16 + $0x2] sm:$0xff]  ;;  %v447_v25 = vld [vmem:[%s3260_s16 + $0xb] sm:$0x3f]  ;;  %v2576_v35 = vld [vmem:[%s3649_s1 + $0xd8] sm:$0xff] }
  0x19   : >> { %2885 = vmatprep.mubr.msk.f32.mxu0 %vm193_vm0, %v186_v9  ;;  %2895 = vmatpush3.msra.mxu1 %v182_v8  ;;  %v446_v24 = vld [vmem:[%s3260_s16 + $0x3] sm:$0xff]  ;;  %v2567_v29 = vld [vmem:[%s3649_s1 + $0xb0] sm:$0xff]  ;;  %v2563_v36 = vld [vmem:[%s3260_s16 + $0x18] sm:$0xff] }
  0x1a   : >> { %2896 = vmatprep.mubr.msk.f32.mxu1 %vm193_vm0, %v180_v10  ;;  %2886 = vmatmul.mubr.msk.f32.vlgmr.msra.gmra.mxu0 %vm193_vm0, %v187_v11  ;;  %v2558_v28 = vld [vmem:[%s3649_s1 + $0x88] sm:$0xff]  ;;  %v2557_v30 = vld [vmem:[%s3649_s1 + $0x80] sm:$0xff]  ;;  %v2575_v38 = vld [vmem:[%s3649_s1 + $0xd0] sm:$0xff] }
  0x1b   : >> { %2897 = vmatmul.mubr.msk.f32.vlgmr.msra.gmra.mxu1 %vm193_vm0, %v181_v12  ;;  %2899 = vmatprep.subr.mxu0 %v2548_v13  ;;  %v2566_v31 = vld [vmem:[%s3649_s1 + $0xa8] sm:$0xff]  ;;  %v2565_v34 = vld [vmem:[%s3649_s1 + $0xa0] sm:$0xff]  ;;  %v2584_v39 = vld [vmem:[%s3649_s1 + $0xf8] sm:$0xff] }
  0x1c   : >> { %2910 = vmatprep.subr.mxu1 %v2554_v14  ;;  %2900 = vmatpush3.msra.mxu0 %v2548_v13  ;;  %v536_v32 = vld [vmem:[%s3260_s16 + $0x4] sm:$0xff]  ;;  %v537_v33 = vld [vmem:[%s3260_s16 + $0xc] sm:$0x3f]  ;;  %v2571_v44 = vld [vmem:[%s3260_s16 + $0x19] sm:$0xff] }
  0x1d   : >> { %2911 = vmatpush3.msra.mxu1 %v2554_v14  ;;  %2901 = vmatprep.subr.mxu0 %v2547_v15  ;;  %v2564_v37 = vld [vmem:[%s3260_s16 + $0x20] sm:$0x3f]  ;;  %v2574_v40 = vld [vmem:[%s3649_s1 + $0xc8] sm:$0xff]  ;;  %v2583_v41 = vld [vmem:[%s3649_s1 + $0xf0] sm:$0xff] }
  0x1e   : >> { %2912 = vmatprep.subr.mxu1 %v2553_v16  ;;  %2902 = vmatpush3.msra.mxu0 %v2547_v15  ;;  %v2573_v42 = vld [vmem:[%s3649_s1 + $0xc0] sm:$0xff]  ;;  %v2582_v43 = vld [vmem:[%s3649_s1 + $0xe8] sm:$0xff]  ;;  %v2592_v47 = vld [vmem:[%s3649_s1 + $0x118] sm:$0xff] }
  0x1f   : >> { %2913 = vmatpush3.msra.mxu1 %v2553_v16  ;;  %2903 = vmatprep.subr.mxu0 %v2546_v17  ;;  %v2572_v45 = vld [vmem:[%s3260_s16 + $0x21] sm:$0x3f]  ;;  %v2591_v50 = vld [vmem:[%s3649_s1 + $0x110] sm:$0xff]  ;;  %v2600_v51 = vld [vmem:[%s3649_s1 + $0x138] sm:$0xff] }
  0x20   : >> { %2914 = vmatprep.subr.mxu1 %v2552_v18  ;;  %2904 = vmatpush3.msra.mxu0 %v2546_v17  ;;  %v2581_v46 = vld [vmem:[%s3649_s1 + $0xe0] sm:$0xff]  ;;  %v2590_v52 = vld [vmem:[%s3649_s1 + $0x108] sm:$0xff]  ;;  %v2599_v53 = vld [vmem:[%s3649_s1 + $0x130] sm:$0xff] }
  0x21   : >> { %2907 = vmatprep.mubr.msk.f32.mxu0 %vm193_vm0, %v356_v19  ;;  %2905 = vmatprep.subr.mxu0 %v2545_v20  ;;  %v2579_v48 = vld [vmem:[%s3260_s16 + $0x1a] sm:$0xff]  ;;  %v2580_v49 = vld [vmem:[%s3260_s16 + $0x22] sm:$0x3f]  ;;  %v2598_v55 = vld [vmem:[%s3649_s1 + $0x128] sm:$0xff] }
  0x22   : >> { %2915 = vmatpush3.msra.mxu1 %v2552_v18  ;;  %2906 = vmatpush3.msra.mxu0 %v2545_v20  ;;  %v2589_v54 = vld [vmem:[%s3649_s1 + $0x100] sm:$0xff]  ;;  %v2608_v59 = vld [vmem:[%s3649_s1 + $0x158] sm:$0xff]  ;;  %v2607_v62 = vld [vmem:[%s3649_s1 + $0x150] sm:$0xff] }
  0x23   : >> { %2916 = vmatprep.subr.mxu1 %v2551_v21  ;;  %2908 = vmatmul.mubr.msk.f32.vlgmr.msra.gmra.mxu0 %vm193_vm0, %v357_v22  ;;  %v2587_v56 = vld [vmem:[%s3260_s16 + $0x1b] sm:$0xff]  ;;  %v2588_v57 = vld [vmem:[%s3260_s16 + $0x23] sm:$0x3f]  ;;  %v2615_v2 = vld [vmem:[%s3649_s1 + $0x170] sm:$0xff] }
  0x24   : >> { %2921 = vmatprep.subr.mxu0 %v2560_v23  ;;  %2917 = vmatpush3.msra.mxu1 %v2551_v21  ;;  %v2597_v58 = vld [vmem:[%s3649_s1 + $0x120] sm:$0xff]  ;;  %v2616_v63 = vld [vmem:[%s3649_s1 + $0x178] sm:$0xff]  ;;  %v2606_v1 = vld [vmem:[%s3649_s1 + $0x148] sm:$0xff] }
  0x25   : >> { %2918 = vmatprep.mubr.msk.f32.mxu1 %vm193_vm0, %v446_v24  ;;  %2922 = vmatpush3.msra.mxu0 %v2560_v23  ;;  %v2595_v60 = vld [vmem:[%s3260_s16 + $0x1c] sm:$0xff]  ;;  %v2596_v61 = vld [vmem:[%s3260_s16 + $0x24] sm:$0x3f]  ;;  %v2603_v5 = vld [vmem:[%s3260_s16 + $0x30] sm:$0xff] }
  0x26   : >> { %2919 = vmatmul.mubr.msk.f32.vlgmr.msra.gmra.mxu1 %vm193_vm0, %v447_v25  ;;  %2923 = vmatprep.subr.mxu0 %v2559_v26  ;;  %v2605_v3 = vld [vmem:[%s3649_s1 + $0x140] sm:$0xff]  ;;  %v2614_v4 = vld [vmem:[%s3649_s1 + $0x168] sm:$0xff]  ;;  %v2604_v6 = vld [vmem:[%s3260_s16 + $0x38] sm:$0x3f] }
  0x27   : >> { %2932 = vmatprep.subr.mxu1 %v2568_v27  ;;  %2924 = vmatpush3.msra.mxu0 %v2559_v26  ;;  %v2613_v7 = vld [vmem:[%s3649_s1 + $0x160] sm:$0xff]  ;;  %v2624_v8 = vld [vmem:[%s3649_s1 + $0x198] sm:$0xff]  ;;  %v2623_v11 = vld [vmem:[%s3649_s1 + $0x190] sm:$0xff] }
  0x28   : >> { %2933 = vmatpush3.msra.mxu1 %v2568_v27  ;;  %2925 = vmatprep.subr.mxu0 %v2558_v28  ;;  %v2611_v9 = vld [vmem:[%s3260_s16 + $0x31] sm:$0xff]  ;;  %v2612_v10 = vld [vmem:[%s3260_s16 + $0x39] sm:$0x3f]  ;;  %v2622_v13 = vld [vmem:[%s3649_s1 + $0x188] sm:$0xff] }
  0x29   : >> { %2934 = vmatprep.subr.mxu1 %v2567_v29  ;;  %2926 = vmatpush3.msra.mxu0 %v2558_v28  ;;  %v2632_v12 = vld [vmem:[%s3649_s1 + $0x1b8] sm:$0xff]  ;;  %v2631_v14 = vld [vmem:[%s3649_s1 + $0x1b0] sm:$0xff]  ;;  %v2621_v15 = vld [vmem:[%s3649_s1 + $0x180] sm:$0xff] }
  0x2a   : >> { %2935 = vmatpush3.msra.mxu1 %v2567_v29  ;;  %2927 = vmatprep.subr.mxu0 %v2557_v30  ;;  %v2630_v16 = vld [vmem:[%s3649_s1 + $0x1a8] sm:$0xff]  ;;  %v2619_v17 = vld [vmem:[%s3260_s16 + $0x32] sm:$0xff]  ;;  %v2620_v18 = vld [vmem:[%s3260_s16 + $0x3a] sm:$0x3f] }
  0x2b   : >> { %2936 = vmatprep.subr.mxu1 %v2566_v31  ;;  %2928 = vmatpush3.msra.mxu0 %v2557_v30  ;;  %v2629_v19 = vld [vmem:[%s3649_s1 + $0x1a0] sm:$0xff]  ;;  %v2640_v20 = vld [vmem:[%s3649_s1 + $0x1d8] sm:$0xff]  ;;  %v2639_v23 = vld [vmem:[%s3649_s1 + $0x1d0] sm:$0xff] }
  0x2c   : >> { %2929 = vmatprep.mubr.msk.f32.mxu0 %vm193_vm0, %v536_v32  ;;  %2937 = vmatpush3.msra.mxu1 %v2566_v31  ;;  %v2627_v21 = vld [vmem:[%s3260_s16 + $0x33] sm:$0xff]  ;;  %v2628_v22 = vld [vmem:[%s3260_s16 + $0x3b] sm:$0x3f]  ;;  %v2638_v25 = vld [vmem:[%s3649_s1 + $0x1c8] sm:$0xff] }
  0x2d   : >> { %2930 = vmatmul.mubr.msk.f32.vlgmr.msra.gmra.mxu0 %vm193_vm0, %v537_v33  ;;  %2938 = vmatprep.subr.mxu1 %v2565_v34  ;;  %v2648_v24 = vld [vmem:[%s3649_s1 + $0x1f8] sm:$0xff]  ;;  %v2647_v26 = vld [vmem:[%s3649_s1 + $0x1f0] sm:$0xff]  ;;  %v2637_v27 = vld [vmem:[%s3649_s1 + $0x1c0] sm:$0xff] }
  0x2e   : >> { %2943 = vmatprep.subr.mxu0 %v2576_v35  ;;  %2939 = vmatpush3.msra.mxu1 %v2565_v34  ;;  %v2646_v28 = vld [vmem:[%s3649_s1 + $0x1e8] sm:$0xff]  ;;  %v2635_v29 = vld [vmem:[%s3260_s16 + $0x34] sm:$0xff]  ;;  %v2636_v30 = vld [vmem:[%s3260_s16 + $0x3c] sm:$0x3f] }
  0x2f   : >> { %2940 = vmatprep.mubr.msk.f32.mxu1 %vm193_vm0, %v2563_v36  ;;  %2944 = vmatpush3.msra.mxu0 %v2576_v35  ;;  %v2645_v31 = vld [vmem:[%s3649_s1 + $0x1e0] sm:$0xff]  ;;  %v2656_v32 = vld [vmem:[%s3649_s1 + $0x218] sm:$0xff]  ;;  %v2643_v33 = vld [vmem:[%s3260_s16 + $0x48] sm:$0xff] }
  0x30   : >> { %2941 = vmatmul.mubr.msk.f32.vlgmr.msra.gmra.mxu1 %vm193_vm0, %v2564_v37  ;;  %2945 = vmatprep.subr.mxu0 %v2575_v38  ;;  %v2644_v34 = vld [vmem:[%s3260_s16 + $0x50] sm:$0x3f]  ;;  %v2664_v36 = vld [vmem:[%s3649_s1 + $0x238] sm:$0xff]  ;;  %v2654_v37 = vld [vmem:[%s3649_s1 + $0x208] sm:$0xff] }
  0x31   : >> { %2954 = vmatprep.subr.mxu1 %v2584_v39  ;;  %2946 = vmatpush3.msra.mxu0 %v2575_v38  ;;  %v2655_v35 = vld [vmem:[%s3649_s1 + $0x210] sm:$0xff] }
  0x32   : >> { %2955 = vmatpush3.msra.mxu1 %v2584_v39  ;;  %2947 = vmatprep.subr.mxu0 %v2574_v40  ;;  %v2663_v38 = vld [vmem:[%s3649_s1 + $0x230] sm:$0xff]  ;;  %v2653_v39 = vld [vmem:[%s3649_s1 + $0x200] sm:$0xff] }
  0x33   : >> { %2956 = vmatprep.subr.mxu1 %v2583_v41  ;;  %2948 = vmatpush3.msra.mxu0 %v2574_v40  ;;  %v2662_v40 = vld [vmem:[%s3649_s1 + $0x228] sm:$0xff] }
  0x34   : >> { %2957 = vmatpush3.msra.mxu1 %v2583_v41  ;;  %2949 = vmatprep.subr.mxu0 %v2573_v42  ;;  %v2651_v41 = vld [vmem:[%s3260_s16 + $0x49] sm:$0xff] }
  0x35   : >> { %2958 = vmatprep.subr.mxu1 %v2582_v43  ;;  %2950 = vmatpush3.msra.mxu0 %v2573_v42  ;;  %v2652_v42 = vld [vmem:[%s3260_s16 + $0x51] sm:$0x3f] }
  0x36   : >> { %2951 = vmatprep.mubr.msk.f32.mxu0 %vm193_vm0, %v2571_v44  ;;  %2959 = vmatpush3.msra.mxu1 %v2582_v43  ;;  %v2661_v43 = vld [vmem:[%s3649_s1 + $0x220] sm:$0xff]  ;;  %v2672_v44 = vld [vmem:[%s3649_s1 + $0x258] sm:$0xff] }
  0x37   : >> { %2952 = vmatmul.mubr.msk.f32.vlgmr.msra.gmra.mxu0 %vm193_vm0, %v2572_v45  ;;  %2960 = vmatprep.subr.mxu1 %v2581_v46  ;;  %v2659_v45 = vld [vmem:[%s3260_s16 + $0x4a] sm:$0xff] }
  0x38   : >> { %2965 = vmatprep.subr.mxu0 %v2592_v47  ;;  %2961 = vmatpush3.msra.mxu1 %v2581_v46  ;;  %v2660_v46 = vld [vmem:[%s3260_s16 + $0x52] sm:$0x3f] }
  0x39   : >> { %2962 = vmatprep.mubr.msk.f32.mxu1 %vm193_vm0, %v2579_v48  ;;  %2966 = vmatpush3.msra.mxu0 %v2592_v47  ;;  %v2671_v47 = vld [vmem:[%s3649_s1 + $0x250] sm:$0xff]  ;;  %v2680_v48 = vld [vmem:[%s3649_s1 + $0x278] sm:$0xff] }
  0x3a   : >> { %2963 = vmatmul.mubr.msk.f32.vlgmr.msra.gmra.mxu1 %vm193_vm0, %v2580_v49  ;;  %2967 = vmatprep.subr.mxu0 %v2591_v50  ;;  %v2670_v49 = vld [vmem:[%s3649_s1 + $0x248] sm:$0xff] }
  0x3b   : >> { %2976 = vmatprep.subr.mxu1 %v2600_v51  ;;  %2968 = vmatpush3.msra.mxu0 %v2591_v50  ;;  %v2679_v50 = vld [vmem:[%s3649_s1 + $0x270] sm:$0xff] }
  0x3c   : >> { %2977 = vmatpush3.msra.mxu1 %v2600_v51  ;;  %2969 = vmatprep.subr.mxu0 %v2590_v52  ;;  %v2669_v51 = vld [vmem:[%s3649_s1 + $0x240] sm:$0xff] }
  0x3d   : >> { %2978 = vmatprep.subr.mxu1 %v2599_v53  ;;  %2970 = vmatpush3.msra.mxu0 %v2590_v52  ;;  %v2678_v52 = vld [vmem:[%s3649_s1 + $0x268] sm:$0xff] }
  0x3e   : >> { %2979 = vmatpush3.msra.mxu1 %v2599_v53  ;;  %2971 = vmatprep.subr.mxu0 %v2589_v54  ;;  %v2667_v53 = vld [vmem:[%s3260_s16 + $0x4b] sm:$0xff] }
  0x3f   : >> { %2980 = vmatprep.subr.mxu1 %v2598_v55  ;;  %2972 = vmatpush3.msra.mxu0 %v2589_v54  ;;  %v2668_v54 = vld [vmem:[%s3260_s16 + $0x53] sm:$0x3f] }
  0x40   : >> { %2973 = vmatprep.mubr.msk.f32.mxu0 %vm193_vm0, %v2587_v56  ;;  %2981 = vmatpush3.msra.mxu1 %v2598_v55  ;;  %v2677_v55 = vld [vmem:[%s3649_s1 + $0x260] sm:$0xff]  ;;  %v2688_v56 = vld [vmem:[%s3649_s1 + $0x298] sm:$0xff] }
  0x41   : >> { %2974 = vmatmul.mubr.msk.f32.vlgmr.msra.gmra.mxu0 %vm193_vm0, %v2588_v57  ;;  %2982 = vmatprep.subr.mxu1 %v2597_v58  ;;  %v2675_v57 = vld [vmem:[%s3260_s16 + $0x4c] sm:$0xff] }
  0x42   : >> { %2987 = vmatprep.subr.mxu0 %v2608_v59  ;;  %2983 = vmatpush3.msra.mxu1 %v2597_v58  ;;  %v2676_v58 = vld [vmem:[%s3260_s16 + $0x54] sm:$0x3f] }
  0x43   : >> { %2984 = vmatprep.mubr.msk.f32.mxu1 %vm193_vm0, %v2595_v60  ;;  %2988 = vmatpush3.msra.mxu0 %v2608_v59  ;;  %v2687_v59 = vld [vmem:[%s3649_s1 + $0x290] sm:$0xff]  ;;  %v2696_v60 = vld [vmem:[%s3649_s1 + $0x2b8] sm:$0xff] }
  0x44   : >> { %2985 = vmatmul.mubr.msk.f32.vlgmr.msra.gmra.mxu1 %vm193_vm0, %v2596_v61  ;;  %2989 = vmatprep.subr.mxu0 %v2607_v62  ;;  %v2686_v61 = vld [vmem:[%s3649_s1 + $0x288] sm:$0xff] }
  0x45   : >> { %2998 = vmatprep.subr.mxu1 %v2616_v63  ;;  %2990 = vmatpush3.msra.mxu0 %v2607_v62  ;;  %v2695_v62 = vld [vmem:[%s3649_s1 + $0x2b0] sm:$0xff] }
  0x46   : >> { %2999 = vmatpush3.msra.mxu1 %v2616_v63  ;;  %2991 = vmatprep.subr.mxu0 %v2606_v1  ;;  %v2685_v63 = vld [vmem:[%s3649_s1 + $0x280] sm:$0xff] }
  0x47   : >> { %3000 = vmatprep.subr.mxu1 %v2615_v2  ;;  %2992 = vmatpush3.msra.mxu0 %v2606_v1  ;;  %v2694_v1 = vld [vmem:[%s3649_s1 + $0x2a8] sm:$0xff] }
  0x48   : >> { %3001 = vmatpush3.msra.mxu1 %v2615_v2  ;;  %2993 = vmatprep.subr.mxu0 %v2605_v3  ;;  %v2683_v2 = vld [vmem:[%s3260_s16 + $0x60] sm:$0xff] }
  0x49   : >> { %3002 = vmatprep.subr.mxu1 %v2614_v4  ;;  %2994 = vmatpush3.msra.mxu0 %v2605_v3  ;;  %v2684_v3 = vld [vmem:[%s3260_s16 + $0x68] sm:$0x3f] }
  0x4a   : >> { %2995 = vmatprep.mubr.msk.f32.mxu0 %vm193_vm0, %v2603_v5  ;;  %3003 = vmatpush3.msra.mxu1 %v2614_v4  ;;  %v2693_v4 = vld [vmem:[%s3649_s1 + $0x2a0] sm:$0xff]  ;;  %v2704_v5 = vld [vmem:[%s3649_s1 + $0x2d8] sm:$0xff] }
  0x4b   : >> { %2996 = vmatmul.mubr.msk.f32.vlgmr.msra.gmra.mxu0 %vm193_vm0, %v2604_v6  ;;  %3004 = vmatprep.subr.mxu1 %v2613_v7  ;;  %v2691_v6 = vld [vmem:[%s3260_s16 + $0x61] sm:$0xff] }
  0x4c   : >> { %3009 = vmatprep.subr.mxu0 %v2624_v8  ;;  %3005 = vmatpush3.msra.mxu1 %v2613_v7  ;;  %v2692_v7 = vld [vmem:[%s3260_s16 + $0x69] sm:$0x3f] }
  0x4d   : >> { %3006 = vmatprep.mubr.msk.f32.mxu1 %vm193_vm0, %v2611_v9  ;;  %3010 = vmatpush3.msra.mxu0 %v2624_v8  ;;  %v2703_v8 = vld [vmem:[%s3649_s1 + $0x2d0] sm:$0xff]  ;;  %v2712_v9 = vld [vmem:[%s3649_s1 + $0x2f8] sm:$0xff] }
  0x4e   : >> { %3007 = vmatmul.mubr.msk.f32.vlgmr.msra.gmra.mxu1 %vm193_vm0, %v2612_v10  ;;  %3011 = vmatprep.subr.mxu0 %v2623_v11  ;;  %v2702_v10 = vld [vmem:[%s3649_s1 + $0x2c8] sm:$0xff] }
  0x4f   : >> { %3020 = vmatprep.subr.mxu1 %v2632_v12  ;;  %3012 = vmatpush3.msra.mxu0 %v2623_v11  ;;  %v2711_v11 = vld [vmem:[%s3649_s1 + $0x2f0] sm:$0xff] }
  0x50   : >> { %3021 = vmatpush3.msra.mxu1 %v2632_v12  ;;  %3013 = vmatprep.subr.mxu0 %v2622_v13  ;;  %v2701_v12 = vld [vmem:[%s3649_s1 + $0x2c0] sm:$0xff] }
  0x51   : >> { %3022 = vmatprep.subr.mxu1 %v2631_v14  ;;  %3014 = vmatpush3.msra.mxu0 %v2622_v13  ;;  %v2710_v13 = vld [vmem:[%s3649_s1 + $0x2e8] sm:$0xff] }
  0x52   : >> { %3023 = vmatpush3.msra.mxu1 %v2631_v14  ;;  %3015 = vmatprep.subr.mxu0 %v2621_v15  ;;  %v2699_v14 = vld [vmem:[%s3260_s16 + $0x62] sm:$0xff] }
  0x53   : >> { %3024 = vmatprep.subr.mxu1 %v2630_v16  ;;  %3016 = vmatpush3.msra.mxu0 %v2621_v15  ;;  %v2700_v15 = vld [vmem:[%s3260_s16 + $0x6a] sm:$0x3f] }
  0x54   : >> { %3017 = vmatprep.mubr.msk.f32.mxu0 %vm193_vm0, %v2619_v17  ;;  %3025 = vmatpush3.msra.mxu1 %v2630_v16  ;;  %v2709_v16 = vld [vmem:[%s3649_s1 + $0x2e0] sm:$0xff]  ;;  %v2720_v17 = vld [vmem:[%s3649_s1 + $0x318] sm:$0xff] }
  0x55   : >> { %3018 = vmatmul.mubr.msk.f32.vlgmr.msra.gmra.mxu0 %vm193_vm0, %v2620_v18  ;;  %3026 = vmatprep.subr.mxu1 %v2629_v19  ;;  %v2707_v18 = vld [vmem:[%s3260_s16 + $0x63] sm:$0xff] }
  0x56   : >> { %3031 = vmatprep.subr.mxu0 %v2640_v20  ;;  %3027 = vmatpush3.msra.mxu1 %v2629_v19  ;;  %v2708_v19 = vld [vmem:[%s3260_s16 + $0x6b] sm:$0x3f] }
  0x57   : >> { %3028 = vmatprep.mubr.msk.f32.mxu1 %vm193_vm0, %v2627_v21  ;;  %3032 = vmatpush3.msra.mxu0 %v2640_v20  ;;  %v2719_v20 = vld [vmem:[%s3649_s1 + $0x310] sm:$0xff]  ;;  %v2715_v21 = vld [vmem:[%s3260_s16 + $0x64] sm:$0xff] }
  0x58   : >> { %3029 = vmatmul.mubr.msk.f32.vlgmr.msra.gmra.mxu1 %vm193_vm0, %v2628_v22  ;;  %3033 = vmatprep.subr.mxu0 %v2639_v23  ;;  %v2718_v22 = vld [vmem:[%s3649_s1 + $0x308] sm:$0xff] }
  0x59   : >> { %3042 = vmatprep.subr.mxu1 %v2648_v24  ;;  %3034 = vmatpush3.msra.mxu0 %v2639_v23  ;;  %v2717_v23 = vld [vmem:[%s3649_s1 + $0x300] sm:$0xff] }
  0x5a   : >> { %3043 = vmatpush3.msra.mxu1 %v2648_v24  ;;  %3035 = vmatprep.subr.mxu0 %v2638_v25  ;;  %v2716_v24 = vld [vmem:[%s3260_s16 + $0x6c] sm:$0x3f]  ;;  %s2724_s16 = sshll.u32 %s3184_s24, 4  ;;  %s177_s24 = sadd.s32 1, %s3184_s24  }
  0x5b   : >> { %3044 = vmatprep.subr.mxu1 %v2647_v26  ;;  %3036 = vmatpush3.msra.mxu0 %v2638_v25  ;;  %s2449_s28 = scalar_lea.vmem %s3227_s23, %s2724_s16  ;;  %p174_p4 = scmp.ge.s32.totalorder %s177_s24, 14  }
  0x5c   : >> { %3045 = vmatpush3.msra.mxu1 %v2647_v26  ;;  %3037 = vmatprep.subr.mxu0 %v2637_v27 }
  0x5d   : >> { %3046 = vmatprep.subr.mxu1 %v2646_v28  ;;  %3038 = vmatpush3.msra.mxu0 %v2637_v27 }
  0x5e   : >> { %3039 = vmatprep.mubr.msk.f32.mxu0 %vm193_vm0, %v2635_v29  ;;  %3047 = vmatpush3.msra.mxu1 %v2646_v28 }
  0x5f   : >> { %3040 = vmatmul.mubr.msk.f32.vlgmr.msra.gmra.mxu0 %vm193_vm0, %v2636_v30  ;;  %3048 = vmatprep.subr.mxu1 %v2645_v31 }
  0x60   : >> { %3053 = vmatprep.subr.mxu0 %v2656_v32  ;;  %3049 = vmatpush3.msra.mxu1 %v2645_v31 }
  0x61   : >> { %3050 = vmatprep.mubr.msk.f32.mxu1 %vm193_vm0, %v2643_v33  ;;  %3054 = vmatpush3.msra.mxu0 %v2656_v32 }
  0x62   : >> { %3051 = vmatmul.mubr.msk.f32.vlgmr.msra.gmra.mxu1 %vm193_vm0, %v2644_v34  ;;  %3055 = vmatprep.subr.mxu0 %v2655_v35 }
  0x63   : >> { %3064 = vmatprep.subr.mxu1 %v2664_v36  ;;  %3056 = vmatpush3.msra.mxu0 %v2655_v35 }
  0x64   : >> { %3065 = vmatpush3.msra.mxu1 %v2664_v36  ;;  %3057 = vmatprep.subr.mxu0 %v2654_v37 }
  0x65   : >> { %3066 = vmatprep.subr.mxu1 %v2663_v38  ;;  %3058 = vmatpush3.msra.mxu0 %v2654_v37 }
  0x66   : >> { %3067 = vmatpush3.msra.mxu1 %v2663_v38  ;;  %3059 = vmatprep.subr.mxu0 %v2653_v39 }
  0x67   : >> { %3068 = vmatprep.subr.mxu1 %v2662_v40  ;;  %3060 = vmatpush3.msra.mxu0 %v2653_v39 }
  0x68   : >> { %3061 = vmatprep.mubr.msk.f32.mxu0 %vm193_vm0, %v2651_v41  ;;  %3069 = vmatpush3.msra.mxu1 %v2662_v40 }
  0x69   : >> { %3062 = vmatmul.mubr.msk.f32.vlgmr.msra.gmra.mxu0 %vm193_vm0, %v2652_v42  ;;  %3070 = vmatprep.subr.mxu1 %v2661_v43 }
  0x6a   : >> { %3075 = vmatprep.subr.mxu0 %v2672_v44  ;;  %3071 = vmatpush3.msra.mxu1 %v2661_v43 }
  0x6b   : >> { %3072 = vmatprep.mubr.msk.f32.mxu1 %vm193_vm0, %v2659_v45  ;;  %3076 = vmatpush3.msra.mxu0 %v2672_v44 }
  0x6c   : >> { %3073 = vmatmul.mubr.msk.f32.vlgmr.msra.gmra.mxu1 %vm193_vm0, %v2660_v46  ;;  %3077 = vmatprep.subr.mxu0 %v2671_v47 }
  0x6d   : >> { %3086 = vmatprep.subr.mxu1 %v2680_v48  ;;  %3078 = vmatpush3.msra.mxu0 %v2671_v47 }
  0x6e   : >> { %3087 = vmatpush3.msra.mxu1 %v2680_v48  ;;  %3079 = vmatprep.subr.mxu0 %v2670_v49 }
  0x6f   : >> { %3088 = vmatprep.subr.mxu1 %v2679_v50  ;;  %3080 = vmatpush3.msra.mxu0 %v2670_v49 }
  0x70   : >> { %3089 = vmatpush3.msra.mxu1 %v2679_v50  ;;  %3081 = vmatprep.subr.mxu0 %v2669_v51 }
  0x71   : >> { %3090 = vmatprep.subr.mxu1 %v2678_v52  ;;  %3082 = vmatpush3.msra.mxu0 %v2669_v51 }
  0x72   : >> { %3083 = vmatprep.mubr.msk.f32.mxu0 %vm193_vm0, %v2667_v53  ;;  %3091 = vmatpush3.msra.mxu1 %v2678_v52 }
  0x73   : >> { %3084 = vmatmul.mubr.msk.f32.vlgmr.msra.gmra.mxu0 %vm193_vm0, %v2668_v54  ;;  %3092 = vmatprep.subr.mxu1 %v2677_v55 }
  0x74   : >> { %3097 = vmatprep.subr.mxu0 %v2688_v56  ;;  %3093 = vmatpush3.msra.mxu1 %v2677_v55 }
  0x75   : >> { %3094 = vmatprep.mubr.msk.f32.mxu1 %vm193_vm0, %v2675_v57  ;;  %3098 = vmatpush3.msra.mxu0 %v2688_v56 }
  0x76   : >> { %3095 = vmatmul.mubr.msk.f32.vlgmr.msra.gmra.mxu1 %vm193_vm0, %v2676_v58  ;;  %3099 = vmatprep.subr.mxu0 %v2687_v59 }
  0x77   : >> { %3108 = vmatprep.subr.mxu1 %v2696_v60  ;;  %3100 = vmatpush3.msra.mxu0 %v2687_v59 }
  0x78   : >> { %3109 = vmatpush3.msra.mxu1 %v2696_v60  ;;  %3101 = vmatprep.subr.mxu0 %v2686_v61 }
  0x79   : >> { %3110 = vmatprep.subr.mxu1 %v2695_v62  ;;  %3102 = vmatpush3.msra.mxu0 %v2686_v61 }
  0x7a   : >> { %3111 = vmatpush3.msra.mxu1 %v2695_v62  ;;  %3103 = vmatprep.subr.mxu0 %v2685_v63 }
  0x7b   : >> { %3112 = vmatprep.subr.mxu1 %v2694_v1  ;;  %3104 = vmatpush3.msra.mxu0 %v2685_v63 }
  0x7c   : >> { %3105 = vmatprep.mubr.msk.f32.mxu0 %vm193_vm0, %v2683_v2  ;;  %3113 = vmatpush3.msra.mxu1 %v2694_v1 }
  0x7d   : >> { %3106 = vmatmul.mubr.msk.f32.vlgmr.msra.gmra.mxu0 %vm193_vm0, %v2684_v3  ;;  %3114 = vmatprep.subr.mxu1 %v2693_v4 }
  0x7e   : >> { %3119 = vmatprep.subr.mxu0 %v2704_v5  ;;  %3115 = vmatpush3.msra.mxu1 %v2693_v4 }
  0x7f   : >> { %3116 = vmatprep.mubr.msk.f32.mxu1 %vm193_vm0, %v2691_v6  ;;  %3120 = vmatpush3.msra.mxu0 %v2704_v5 }
  0x80   : >> { %3117 = vmatmul.mubr.msk.f32.vlgmr.msra.gmra.mxu1 %vm193_vm0, %v2692_v7  ;;  %3121 = vmatprep.subr.mxu0 %v2703_v8 }
  0x81   : >> { %3130 = vmatprep.subr.mxu1 %v2712_v9  ;;  %3122 = vmatpush3.msra.mxu0 %v2703_v8 }
  0x82   : >> { %3131 = vmatpush3.msra.mxu1 %v2712_v9  ;;  %3123 = vmatprep.subr.mxu0 %v2702_v10 }
  0x83   : >> { %3132 = vmatprep.subr.mxu1 %v2711_v11  ;;  %3124 = vmatpush3.msra.mxu0 %v2702_v10 }
  0x84   : >> { %3133 = vmatpush3.msra.mxu1 %v2711_v11  ;;  %3125 = vmatprep.subr.mxu0 %v2701_v12 }
  0x85   : >> { %3134 = vmatprep.subr.mxu1 %v2710_v13  ;;  %3126 = vmatpush3.msra.mxu0 %v2701_v12 }
  0x86   : >> { %3127 = vmatprep.mubr.msk.f32.mxu0 %vm193_vm0, %v2699_v14  ;;  %3135 = vmatpush3.msra.mxu1 %v2710_v13 }
  0x87   : >> { %3128 = vmatmul.mubr.msk.f32.vlgmr.msra.gmra.mxu0 %vm193_vm0, %v2700_v15  ;;  %3136 = vmatprep.subr.mxu1 %v2709_v16 }
  0x88   : >> { %3141 = vmatprep.subr.mxu0 %v2720_v17  ;;  %3137 = vmatpush3.msra.mxu1 %v2709_v16 }
  0x89   : >> { %3138 = vmatprep.mubr.msk.f32.mxu1 %vm193_vm0, %v2707_v18  ;;  %3142 = vmatpush3.msra.mxu0 %v2720_v17 }
  0x8a   : >> { %3139 = vmatmul.mubr.msk.f32.vlgmr.msra.gmra.mxu1 %vm193_vm0, %v2708_v19  ;;  %3143 = vmatprep.subr.mxu0 %v2719_v20 }
  0x8b   : >> { %3149 = vmatprep.mubr.msk.f32.mxu0 %vm193_vm0, %v2715_v21  ;;  %3144 = vmatpush3.msra.mxu0 %v2719_v20 }
  0x8c   : >> { %3145 = vmatprep.subr.mxu0 %v2718_v22 }
  0x8d   : >> { %3146 = vmatpush3.msra.mxu0 %v2718_v22 }
  0x8e   : >> { %3147 = vmatprep.subr.mxu0 %v2717_v23 }
  0x8f   : >> { %3148 = vmatpush3.msra.mxu0 %v2717_v23 }
  0x90   : >> { %3150 = vmatmul.mubr.msk.f32.vlgmr.msra.gmra.mxu0 %vm193_vm0, %v2716_v24 }
  0xda   : >> { %v2887_v25 = vpop.f32.mrf.mxu0 }
  0xdb   : >> { %v2898_v26 = vpop.f32.mrf.mxu1 }
  0xdc   : >> { %v266_v27 = vpop.f32.mrf.mxu0  ;;  %v353_v30 = vadd.f32 %v2898_v26, %v2887_v25 }
  0xdd   : >> { %v347_v29 = vpop.f32.mrf.mxu1 }
  0xde   : >> { %v348_v33 = vadd.f32 %v347_v29, %v266_v27 }
  0xe3   : >> { %v2909_v28 = vpop.f32.mrf.mxu0 }
  0xe4   : >> { %v445_v34 = vadd.f32 %v2909_v28, %v353_v30 }
  0xe5   : >> { %v435_v31 = vpop.f32.mrf.mxu0 }
  0xe6   : >> { %v2920_v32 = vpop.f32.mrf.mxu1  ;;  %v444_v36 = vadd.f32 %v435_v31, %v348_v33 }
  0xe7   : >> { %v535_v38 = vadd.f32 %v2920_v32, %v445_v34 }
  0xe8   : >> { %v525_v37 = vpop.f32.mrf.mxu1 }
  0xe9   : >> { %v534_v41 = vadd.f32 %v525_v37, %v444_v36 }
  0xed   : >> { %v2931_v35 = vpop.f32.mrf.mxu0 }
  0xee   : >> { %v625_v42 = vadd.f32 %v2931_v35, %v535_v38 }
  0xef   : >> { %v615_v39 = vpop.f32.mrf.mxu0 }
  0xf0   : >> { %v2942_v40 = vpop.f32.mrf.mxu1  ;;  %v624_v44 = vadd.f32 %v615_v39, %v534_v41 }
  0xf1   : >> { %v718_v46 = vadd.f32 %v2942_v40, %v625_v42 }
  0xf2   : >> { %v708_v45 = vpop.f32.mrf.mxu1 }
  0xf3   : >> { %v717_v49 = vadd.f32 %v708_v45, %v624_v44 }
  0xf7   : >> { %v2953_v43 = vpop.f32.mrf.mxu0 }
  0xf8   : >> { %v808_v50 = vadd.f32 %v2953_v43, %v718_v46 }
  0xf9   : >> { %v798_v47 = vpop.f32.mrf.mxu0 }
  0xfa   : >> { %v2964_v48 = vpop.f32.mrf.mxu1  ;;  %v807_v52 = vadd.f32 %v798_v47, %v717_v49 }
  0xfb   : >> { %v898_v54 = vadd.f32 %v2964_v48, %v808_v50 }
  0xfc   : >> { %v888_v53 = vpop.f32.mrf.mxu1 }
  0xfd   : >> { %v897_v57 = vadd.f32 %v888_v53, %v807_v52 }
 0x101   : >> { %v2975_v51 = vpop.f32.mrf.mxu0 }
 0x102   : >> { %v988_v58 = vadd.f32 %v2975_v51, %v898_v54 }
 0x103   : >> { %v978_v55 = vpop.f32.mrf.mxu0 }
 0x104   : >> { %v2986_v56 = vpop.f32.mrf.mxu1  ;;  %v987_v60 = vadd.f32 %v978_v55, %v897_v57 }
 0x105   : >> { %v1078_v62 = vadd.f32 %v2986_v56, %v988_v58 }
 0x106   : >> { %v1068_v61 = vpop.f32.mrf.mxu1 }
 0x107   : >> { %v1077_v2 = vadd.f32 %v1068_v61, %v987_v60 }
 0x10b   : >> { %v2997_v59 = vpop.f32.mrf.mxu0 }
 0x10c   : >> { %v1171_v3 = vadd.f32 %v2997_v59, %v1078_v62 }
 0x10d   : >> { %v1161_v63 = vpop.f32.mrf.mxu0 }
 0x10e   : >> { %v3008_v1 = vpop.f32.mrf.mxu1  ;;  %v1170_v5 = vadd.f32 %v1161_v63, %v1077_v2 }
 0x10f   : >> { %v1261_v7 = vadd.f32 %v3008_v1, %v1171_v3 }
 0x110   : >> { %v1251_v6 = vpop.f32.mrf.mxu1 }
 0x111   : >> { %v1260_v10 = vadd.f32 %v1251_v6, %v1170_v5 }
 0x115   : >> { %v3019_v4 = vpop.f32.mrf.mxu0 }
 0x116   : >> { %v1351_v11 = vadd.f32 %v3019_v4, %v1261_v7 }
 0x117   : >> { %v1341_v8 = vpop.f32.mrf.mxu0 }
 0x118   : >> { %v3030_v9 = vpop.f32.mrf.mxu1  ;;  %v1350_v13 = vadd.f32 %v1341_v8, %v1260_v10 }
 0x119   : >> { %v1441_v15 = vadd.f32 %v3030_v9, %v1351_v11 }
 0x11a   : >> { %v1431_v14 = vpop.f32.mrf.mxu1 }
 0x11b   : >> { %v1440_v18 = vadd.f32 %v1431_v14, %v1350_v13 }
 0x11f   : >> { %v3041_v12 = vpop.f32.mrf.mxu0 }
 0x120   : >> { %v1531_v19 = vadd.f32 %v3041_v12, %v1441_v15 }
 0x121   : >> { %v1521_v16 = vpop.f32.mrf.mxu0 }
 0x122   : >> { %v3052_v17 = vpop.f32.mrf.mxu1  ;;  %v1530_v21 = vadd.f32 %v1521_v16, %v1440_v18 }
 0x123   : >> { %v1624_v23 = vadd.f32 %v3052_v17, %v1531_v19 }
 0x124   : >> { %v1614_v22 = vpop.f32.mrf.mxu1 }
 0x125   : >> { %v1623_v26 = vadd.f32 %v1614_v22, %v1530_v21 }
 0x129   : >> { %v3063_v20 = vpop.f32.mrf.mxu0 }
 0x12a   : >> { %v1714_v27 = vadd.f32 %v3063_v20, %v1624_v23 }
 0x12b   : >> { %v1704_v24 = vpop.f32.mrf.mxu0 }
 0x12c   : >> { %v3074_v25 = vpop.f32.mrf.mxu1  ;;  %v1713_v29 = vadd.f32 %v1704_v24, %v1623_v26 }
 0x12d   : >> { %v1804_v31 = vadd.f32 %v3074_v25, %v1714_v27 }
 0x12e   : >> { %v1794_v30 = vpop.f32.mrf.mxu1 }
 0x12f   : >> { %v1803_v34 = vadd.f32 %v1794_v30, %v1713_v29 }
 0x133   : >> { %v3085_v28 = vpop.f32.mrf.mxu0 }
 0x134   : >> { %v1894_v35 = vadd.f32 %v3085_v28, %v1804_v31 }
 0x135   : >> { %v1884_v32 = vpop.f32.mrf.mxu0 }
 0x136   : >> { %v3096_v33 = vpop.f32.mrf.mxu1  ;;  %v1893_v37 = vadd.f32 %v1884_v32, %v1803_v34 }
 0x137   : >> { %v1984_v39 = vadd.f32 %v3096_v33, %v1894_v35 }
 0x138   : >> { %v1974_v38 = vpop.f32.mrf.mxu1 }
 0x139   : >> { %v1983_v42 = vadd.f32 %v1974_v38, %v1893_v37 }
 0x13d   : >> { %v3107_v36 = vpop.f32.mrf.mxu0 }
 0x13e   : >> { %v2077_v43 = vadd.f32 %v3107_v36, %v1984_v39 }
 0x13f   : >> { %v2067_v40 = vpop.f32.mrf.mxu0 }
 0x140   : >> { %v3118_v41 = vpop.f32.mrf.mxu1  ;;  %v2076_v45 = vadd.f32 %v2067_v40, %v1983_v42 }
 0x141   : >> { %v2167_v47 = vadd.f32 %v3118_v41, %v2077_v43 }
 0x142   : >> { %v2157_v46 = vpop.f32.mrf.mxu1 }
 0x143   : >> { %v2166_v50 = vadd.f32 %v2157_v46, %v2076_v45 }
 0x147   : >> { %v3129_v44 = vpop.f32.mrf.mxu0 }
 0x148   : >> { %v2257_v51 = vadd.f32 %v3129_v44, %v2167_v47 }
 0x149   : >> { %v2247_v48 = vpop.f32.mrf.mxu0 }
 0x14a   : >> { %v3140_v49 = vpop.f32.mrf.mxu1  ;;  %v2256_v52 = vadd.f32 %v2247_v48, %v2166_v50 }
 0x14b   : >> { %v2347_v54 = vadd.f32 %v3140_v49, %v2257_v51 }
 0x14c   : >> { %v2337_v53 = vpop.f32.mrf.mxu1 }
 0x14d   : >> { %v2346_v56 = vadd.f32 %v2337_v53, %v2256_v52 }
 0x150   : >> { %v3151_v55 = vpop.f32.mrf.mxu0 }
 0x151   : >> { %v2437_v57 = vadd.f32 %v3151_v55, %v2347_v54 }
 0x152   : >> { %v2427_v58 = vpop.f32.mrf.mxu0 }
 0x153   : >> { %v2445_v59 = vadd.f32 %v3217_v0, %v2437_v57  ;;  %v2436_v60 = vadd.f32 %v2427_v58, %v2346_v56 }
 0x155   : >> { %v2447_v61 = vmax.f32 %v2445_v59, 0.0  ;;  %v2444_v62 = vadd.f32 %v3217_v0, %v2436_v60  ;;  %176 = sbr.rel (!%p174_p4) target bundleno = 16 (0x10), region = 99 }
 0x157   : >> { %2453 = vst.msk [vmem:[%s2449_s28 + $0x8] sm:$0x3f] %vm2452_vm1, %v2447_v61  ;;  %v2446_v63 = vmax.f32 %v2444_v62, 0.0 }
 0x159   : >> { %2451 = vst.msk [vmem:[%s2449_s28] sm:$0xff] %vm2450_vm2, %v2446_v63 }
 0x15a PF: > { %s13_s12 = sadd.s32 1, %s3180_s12  }
 0x15b   : > { %p10_p5 = scmp.ge.s32.totalorder %s13_s12, 4  }
 0x15d   :  { %12 = sbr.rel (!%p10_p5) target bundleno = 1 (0x1), region = 110 }

// kernel: lenet_forward.11
= control target key start
LH: loop header
LB: loop body
LE: loop exit
PB: predicated region body
PF: predicated region fallthrough
CT: control target
= control target key end

     0   :  { %v157_v28 = vlaneseq  ;;  %v1011_v36 = vmov 1966171168   ;;  %s1247_s0 = inlined_call_operand.vmem [shape: bf16[2,1024], index: 0, kind: input, shape index: {}]   ;;  %s1248_s1 = inlined_call_operand.vmem [shape: bf16[1024,128], index: 1, kind: input, shape index: {}]   ;;  %s1249_s2 = inlined_call_operand.vmem [shape: f32[1,128], index: 2, kind: input, shape index: {}]   ;;  %s1250_s3 = inlined_call_operand.hbm [shape: f32[2,128], index: 3, kind: output, shape index: {}]  }
   0x1   :  { %v924_v0 = vld [vmem:[%s1248_s1 + $0x78] sm:$0xff]   ;;  %v928_v4 = vld [vmem:[%s1248_s1 + $0x70] sm:$0xff]   ;;  %v932_v8 = vld [vmem:[%s1248_s1 + $0x68] sm:$0xff]   ;;  %v155_v37 = vunpack.c.l.s4 %v1011_v36 }
   0x2   :  { %v925_v1 = vld [vmem:[%s1248_s1 + $0xf8] sm:$0xff]   ;;  %834 = vmatprep.subr.bf16.mxu0 %v924_v0  ;;  %v929_v5 = vld [vmem:[%s1248_s1 + $0xf0] sm:$0xff]   ;;  %v933_v9 = vld [vmem:[%s1248_s1 + $0xe8] sm:$0xff]   ;;  %v158_v33 = vshrl.u32 %v157_v28, 7 }
   0x3   :  { %v926_v2 = vld [vmem:[%s1248_s1 + $0x38] sm:$0xff]   ;;  %856 = vmatprep.subr.bf16.mxu1 %v925_v1  ;;  %v930_v6 = vld [vmem:[%s1248_s1 + $0x30] sm:$0xff]   ;;  %v934_v10 = vld [vmem:[%s1248_s1 + $0x28] sm:$0xff]   ;;  %v156_v40 = vunpack.c.0.s8 %v155_v37 }
   0x4   :  { %v927_v3 = vld [vmem:[%s1248_s1 + $0xb8] sm:$0xff]   ;;  %835 = vmatpush3.bf16.msra.mxu0 %v926_v2  ;;  %v931_v7 = vld [vmem:[%s1248_s1 + $0xb0] sm:$0xff]   ;;  %v935_v11 = vld [vmem:[%s1248_s1 + $0xa8] sm:$0xff]  }
   0x5   :  { %857 = vmatpush3.bf16.msra.mxu1 %v927_v3  ;;  %836 = vmatprep.subr.bf16.mxu0 %v928_v4  ;;  %v936_v12 = vld [vmem:[%s1248_s1 + $0x60] sm:$0xff]   ;;  %v940_v16 = vld [vmem:[%s1248_s1 + $0x58] sm:$0xff]   ;;  %v944_v20 = vld [vmem:[%s1248_s1 + $0x50] sm:$0xff]   ;;  %v1138_v41 = vsub.s32 %v156_v40, %v158_v33 }
   0x6   :  { %858 = vmatprep.subr.bf16.mxu1 %v929_v5  ;;  %v937_v13 = vld [vmem:[%s1248_s1 + $0xe0] sm:$0xff]   ;;  %v941_v17 = vld [vmem:[%s1248_s1 + $0xd8] sm:$0xff]   ;;  %v945_v21 = vld [vmem:[%s1248_s1 + $0xd0] sm:$0xff]  }
   0x7   :  { %v938_v14 = vld [vmem:[%s1248_s1 + $0x20] sm:$0xff]   ;;  %v942_v18 = vld [vmem:[%s1248_s1 + $0x18] sm:$0xff]   ;;  %v946_v22 = vld [vmem:[%s1248_s1 + $0x10] sm:$0xff]  }
   0x8   :  { %837 = vmatpush3.bf16.msra.mxu0 %v930_v6  ;;  %v939_v15 = vld [vmem:[%s1248_s1 + $0xa0] sm:$0xff]   ;;  %v943_v19 = vld [vmem:[%s1248_s1 + $0x98] sm:$0xff]   ;;  %v947_v23 = vld [vmem:[%s1248_s1 + $0x90] sm:$0xff]  }
   0x9   :  { %859 = vmatpush3.bf16.msra.mxu1 %v931_v7  ;;  %838 = vmatprep.subr.bf16.mxu0 %v932_v8  ;;  %v948_v24 = vld [vmem:[%s1248_s1 + $0x48] sm:$0xff]   ;;  %v952_v29 = vld [vmem:[%s1248_s1 + $0x40] sm:$0xff]   ;;  %v957_v35 = vld [vmem:[%s1248_s1 + $0x178] sm:$0xff]  }
   0xa   :  { %860 = vmatprep.subr.bf16.mxu1 %v933_v9  ;;  %v949_v25 = vld [vmem:[%s1248_s1 + $0xc8] sm:$0xff]   ;;  %v953_v30 = vld [vmem:[%s1248_s1 + $0xc0] sm:$0xff]   ;;  %v958_v38 = vld [vmem:[%s1248_s1 + $0x1f8] sm:$0xff]  }
   0xb   :  { %v950_v26 = vld [vmem:[%s1248_s1 + $0x8] sm:$0xff]   ;;  %v954_v31 = vld [vmem:[%s1248_s1] sm:$0xff]   ;;  %v959_v48 = vld [vmem:[%s1248_s1 + $0x138] sm:$0xff]  }
   0xc   :  { %839 = vmatpush3.bf16.msra.mxu0 %v934_v10  ;;  %v951_v27 = vld [vmem:[%s1248_s1 + $0x88] sm:$0xff]   ;;  %v955_v32 = vld [vmem:[%s1248_s1 + $0x80] sm:$0xff]   ;;  %v961_v51 = vld [vmem:[%s1248_s1 + $0x170] sm:$0xff]  }
   0xd   :  { %861 = vmatpush3.bf16.msra.mxu1 %v935_v11  ;;  %840 = vmatprep.subr.bf16.mxu0 %v936_v12  ;;  %v16_v34 = vld [vmem:[%s1247_s0] sm:$0xff]  ;;  %v960_v53 = vld [vmem:[%s1248_s1 + $0x1b8] sm:$0xff]   ;;  %v962_v54 = vld [vmem:[%s1248_s1 + $0x1f0] sm:$0xff]  }
   0xe   :  { %862 = vmatprep.subr.bf16.mxu1 %v937_v13  ;;  %v153_v39 = vcombine.high %v16_v34, %v16_v34  ;;  %v160_v42 = vrot.slane %v16_v34, %v1138_v41  ;;  %v963_v56 = vld [vmem:[%s1248_s1 + $0x130] sm:$0xff]   ;;  %v965_v57 = vld [vmem:[%s1248_s1 + $0x168] sm:$0xff]   ;;  %v969_v61 = vld [vmem:[%s1248_s1 + $0x160] sm:$0xff]  }
   0xf   :  { %v964_v58 = vld [vmem:[%s1248_s1 + $0x1b0] sm:$0xff]   ;;  %v966_v59 = vld [vmem:[%s1248_s1 + $0x1e8] sm:$0xff]   ;;  %v970_v63 = vld [vmem:[%s1248_s1 + $0x1e0] sm:$0xff]  }
  0x10   :  { %841 = vmatpush3.bf16.msra.mxu0 %v938_v14  ;;  %v1142_v43 = vrot.slane %v153_v39, %v1138_v41  ;;  %v168_v44 = vcombine.high %v160_v42, %v160_v42  ;;  %v176_v45 = vrot.slane %v160_v42, %v1138_v41  ;;  %v967_v60 = vld [vmem:[%s1248_s1 + $0x128] sm:$0xff]   ;;  %v971_v0 = vld [vmem:[%s1248_s1 + $0x120] sm:$0xff]   ;;  %v973_v1 = vld [vmem:[%s1248_s1 + $0x158] sm:$0xff]  }
  0x11   :  { %863 = vmatpush3.bf16.msra.mxu1 %v939_v15  ;;  %842 = vmatprep.subr.bf16.mxu0 %v940_v16  ;;  %v968_v62 = vld [vmem:[%s1248_s1 + $0x1a8] sm:$0xff]   ;;  %v972_v2 = vld [vmem:[%s1248_s1 + $0x1a0] sm:$0xff]   ;;  %v974_v3 = vld [vmem:[%s1248_s1 + $0x1d8] sm:$0xff]  }
  0x12   :  { %864 = vmatprep.subr.bf16.mxu1 %v941_v17  ;;  %v169_v46 = vcombine.high %v1142_v43, %v1142_v43  ;;  %v190_v47 = vrot.slane %v168_v44, %v1138_v41  ;;  %v198_v50 = vcombine.high %v176_v45, %v176_v45  ;;  %v975_v4 = vld [vmem:[%s1248_s1 + $0x118] sm:$0xff]   ;;  %v977_v5 = vld [vmem:[%s1248_s1 + $0x150] sm:$0xff]   ;;  %v981_v9 = vld [vmem:[%s1248_s1 + $0x148] sm:$0xff]  }
  0x13   :  { %v976_v6 = vld [vmem:[%s1248_s1 + $0x198] sm:$0xff]   ;;  %v978_v7 = vld [vmem:[%s1248_s1 + $0x1d0] sm:$0xff]  }
  0x14   :  { %843 = vmatpush3.bf16.msra.mxu0 %v942_v18  ;;  %v197_v49 = vrot.slane %v169_v46, %v1138_v41  ;;  %626 = vmatprep.mubr.bf16.mxu0 %v190_v47  ;;  %v200_v52 = vcombine.high %v190_v47, %v190_v47  ;;  %v979_v8 = vld [vmem:[%s1248_s1 + $0x110] sm:$0xff]  }
  0x15   :  { %865 = vmatpush3.bf16.msra.mxu1 %v943_v19  ;;  %844 = vmatprep.subr.bf16.mxu0 %v944_v20 }
  0x16   :  { %866 = vmatprep.subr.bf16.mxu1 %v945_v21  ;;  %v201_v55 = vcombine.high %v197_v49, %v197_v49  ;;  %666 = vmatprep.mubr.bf16.mxu1 %v200_v52 }
  0x18   :  { %845 = vmatpush3.bf16.msra.mxu0 %v946_v22 }
  0x19   :  { %867 = vmatpush3.bf16.msra.mxu1 %v947_v23  ;;  %846 = vmatprep.subr.bf16.mxu0 %v948_v24 }
  0x1a   :  { %868 = vmatprep.subr.bf16.mxu1 %v949_v25 }
  0x1c   :  { %847 = vmatpush3.bf16.msra.mxu0 %v950_v26 }
  0x1d   :  { %869 = vmatpush3.bf16.msra.mxu1 %v951_v27  ;;  %848 = vmatprep.subr.bf16.mxu0 %v952_v29 }
  0x1e   :  { %870 = vmatprep.subr.bf16.mxu1 %v953_v30 }
  0x20   :  { %849 = vmatpush3.bf16.msra.mxu0 %v954_v31 }
  0x21   :  { %871 = vmatpush3.bf16.msra.mxu1 %v955_v32  ;;  %878 = vmatprep.subr.bf16.mxu0 %v957_v35 }
  0x22   :  { %900 = vmatprep.subr.bf16.mxu1 %v958_v38 }
  0x23   :  { %627 = vmatmul.mubr.bf16.vlgmr.msra.gmra.mxu0 %v176_v45 }
  0x24   :  { %879 = vmatpush3.bf16.msra.mxu0 %v959_v48  ;;  %667 = vmatmul.mubr.bf16.vlgmr.msra.gmra.mxu1 %v198_v50 }
  0x25   :  { %880 = vmatprep.subr.bf16.mxu0 %v961_v51  ;;  %901 = vmatpush3.bf16.msra.mxu1 %v960_v53 }
  0x26   :  { %706 = vmatprep.mubr.bf16.mxu0 %v197_v49  ;;  %902 = vmatprep.subr.bf16.mxu1 %v962_v54 }
  0x27   :  { %746 = vmatprep.mubr.bf16.mxu1 %v201_v55 }
  0x28   :  { %881 = vmatpush3.bf16.msra.mxu0 %v963_v56 }
  0x29   :  { %882 = vmatprep.subr.bf16.mxu0 %v965_v57  ;;  %903 = vmatpush3.bf16.msra.mxu1 %v964_v58 }
  0x2a   :  { %904 = vmatprep.subr.bf16.mxu1 %v966_v59 }
  0x2c   :  { %883 = vmatpush3.bf16.msra.mxu0 %v967_v60 }
  0x2d   :  { %884 = vmatprep.subr.bf16.mxu0 %v969_v61  ;;  %905 = vmatpush3.bf16.msra.mxu1 %v968_v62 }
  0x2e   :  { %906 = vmatprep.subr.bf16.mxu1 %v970_v63 }
  0x30   :  { %885 = vmatpush3.bf16.msra.mxu0 %v971_v0 }
  0x31   :  { %886 = vmatprep.subr.bf16.mxu0 %v973_v1  ;;  %907 = vmatpush3.bf16.msra.mxu1 %v972_v2 }
  0x32   :  { %908 = vmatprep.subr.bf16.mxu1 %v974_v3 }
  0x34   :  { %887 = vmatpush3.bf16.msra.mxu0 %v975_v4 }
  0x35   :  { %888 = vmatprep.subr.bf16.mxu0 %v977_v5 }
  0x36   :  { %8 = vsyncpa [#allocation3], 0  ;;  %909 = vmatpush3.bf16.msra.mxu1 %v976_v6  ;;  %v980_v10 = vld [vmem:[%s1248_s1 + $0x190] sm:$0xff]   ;;  %v982_v11 = vld [vmem:[%s1248_s1 + $0x1c8] sm:$0xff]   ;;  %v183_v17 = vrot.slane %v1142_v43, %v1138_v41 }
  0x37   :  { %910 = vmatprep.subr.bf16.mxu1 %v978_v7  ;;  %v983_v12 = vld [vmem:[%s1248_s1 + $0x108] sm:$0xff]   ;;  %v985_v13 = vld [vmem:[%s1248_s1 + $0x140] sm:$0xff]  }
  0x38   :  { %889 = vmatpush3.bf16.msra.mxu0 %v979_v8  ;;  %v984_v14 = vld [vmem:[%s1248_s1 + $0x188] sm:$0xff]   ;;  %v986_v15 = vld [vmem:[%s1248_s1 + $0x1c0] sm:$0xff]   ;;  %v199_v19 = vcombine.high %v183_v17, %v183_v17 }
  0x39   :  { %890 = vmatprep.subr.bf16.mxu0 %v981_v9  ;;  %v987_v16 = vld [vmem:[%s1248_s1 + $0x100] sm:$0xff]  }
  0x3a   :  { %911 = vmatpush3.bf16.msra.mxu1 %v980_v10  ;;  %v988_v18 = vld [vmem:[%s1248_s1 + $0x180] sm:$0xff]   ;;  %s1012_s1 = smov [#allocation2]  }
  0x3b   :  { %912 = vmatprep.subr.bf16.mxu1 %v982_v11  ;;  %v769_v29 = vld [vmem:[%s1249_s2] ss:$0 sm:$0xff]  ;;  %s761_s6 = sshll.u32 %s1012_s1, 4  ;;  %s762_s6 = int_to_ptr.vmem [resolvable:$true] %s761_s6 }
  0x3c   :  { %891 = vmatpush3.bf16.msra.mxu0 %v983_v12  ;;  %s989_s2 = scalar_lea.vmem %s762_s6, 32  ;;  %p994_p1 = scmp.lt.s32.totalorder %s762_s6, %s762_s6 }
  0x3d   :  { %892 = vmatprep.subr.bf16.mxu0 %v985_v13  ;;  %p990_p0 = scmp.ne.s32.totalorder %s762_s6, %s989_s2  ;;  %p995_p2 = scmp.lt.s32.totalorder %s989_s2, %s989_s2 }
  0x3e   :  { %913 = vmatpush3.bf16.msra.mxu1 %v984_v14 }
  0x3f   :  { %914 = vmatprep.subr.bf16.mxu1 %v986_v15  ;;  %p996_p3 = por %p995_p2, %p994_p1 }
  0x40   :  { %893 = vmatpush3.bf16.msra.mxu0 %v987_v16 }
  0x41   :  { %p997_p4 = pnand %p996_p3, %p990_p0 }
  0x42   :  { %915 = vmatpush3.bf16.msra.mxu1 %v988_v18 }
  0x43   :  { %707 = vmatmul.mubr.bf16.vlgmr.msra.gmra.mxu0 %v183_v17 }
  0x45   :  { %747 = vmatmul.mubr.bf16.vlgmr.msra.gmra.mxu1 %v199_v19 }
  0xe3   :  { %v850_v20 = vpop.f32.mrf.mxu0 }
  0xe4   :  { %v872_v21 = vpop.f32.mrf.mxu1 }
  0xe5   :  { %v851_v22 = vpop.f32.mrf.mxu0 }
  0xe6   :  { %v873_v23 = vpop.f32.mrf.mxu1  ;;  %v852_v28 = vadd.f32 %v851_v22, %v850_v20 }
  0xe7   :  { %v853_v24 = vpop.f32.mrf.mxu0  ;;  %v874_v31 = vadd.f32 %v873_v23, %v872_v21 }
  0xe8   :  { %v875_v25 = vpop.f32.mrf.mxu1  ;;  %v629_v30 = vadd.f32 %v852_v28, %v769_v29 }
  0xe9   :  { %v854_v26 = vpop.f32.mrf.mxu0 }
  0xea   :  { %v876_v27 = vpop.f32.mrf.mxu1  ;;  %v669_v35 = vadd.f32 %v874_v31, %v629_v30 }
 0x103   :  { %v894_v32 = vpop.f32.mrf.mxu0 }
 0x105   :  { %v916_v33 = vpop.f32.mrf.mxu1  ;;  %v895_v34 = vpop.f32.mrf.mxu0 }
 0x106   :  { %v896_v36 = vadd.f32 %v895_v34, %v894_v32 }
 0x107   :  { %v917_v37 = vpop.f32.mrf.mxu1  ;;  %v897_v38 = vpop.f32.mrf.mxu0 }
 0x108   :  { %v709_v39 = vadd.f32 %v896_v36, %v669_v35  ;;  %v918_v40 = vadd.f32 %v917_v37, %v916_v33 }
 0x109   :  { %v919_v41 = vpop.f32.mrf.mxu1  ;;  %v898_v42 = vpop.f32.mrf.mxu0 }
 0x10a   :  { %v749_v43 = vadd.f32 %v918_v40, %v709_v39 }
 0x10b   :  { %v920_v44 = vpop.f32.mrf.mxu1 }
 0x10c   :  { %754 = vst [vmem:[#allocation2] sm:$0x3] %v749_v43 }
 0x10d   :  { %1000 = shalt.err (!%p997_p4)
}
 0x10e   :  { %764 = dma.vmem_to_hbm [thread:$0]  %s762_s6, 32, %s1250_s3, [#allocation3]  }
 0x10f   :  { %1009 = dma.done.wait [#allocation3], 32  }
 0x110   :  { %1010 = vsyncadd [#allocation3], 4294967264 }
 0x111   :  { %768 = vsyncpa [#allocation3], 1 }

// kernel: lenet_forward.10
= control target key start
LH: loop header
LB: loop body
LE: loop exit
PB: predicated region body
PF: predicated region fallthrough
CT: control target
= control target key end

     0   :  { %s3303_s12 = smov 0   ;;  %s3305_s13 = smov 0   ;;  %s3768_s0 = inlined_call_operand.vmem [shape: bf16[2,3200], index: 0, kind: input, shape index: {}]   ;;  %s3769_s1 = inlined_call_operand.vmem [shape: bf16[3200,1024], index: 1, kind: input, shape index: {}]   ;;  %s3770_s2 = inlined_call_operand.vmem [shape: f32[1,1024], index: 2, kind: input, shape index: {}]   ;;  %s3771_s3 = inlined_call_operand.vmem [shape: f32[2,1024], index: 3, kind: output, shape index: {}]  }
   0x1   :  { %s3307_s14 = smov 0  }
   0x2 LB: > { %s22_s15 = sadd.s32 1, %s3273_s13  ;;  %p2897_p0 = scmp.ge.s32.totalorder %s3277_s14, 1  ;;  %s3277_s14 = sphi %s3307_s14, %s13_s14   ;;  %s3273_s13 = sphi %s3305_s13, %s3773_s13   ;;  %s3269_s12 = sphi %s3303_s12, %s3772_s12  }
   0x3   : > { %p23_p1 = scmp.ge.s32.totalorder %s22_s15, 5  ;;  %p167_p2 = scmp.lt.s32.totalorder %s3277_s14, 6 }
   0x5   : > { %s3775_s15 = smov (%p23_p1, %s22_s15), 0  ;;  %p168_p3 = pnand %p2897_p0, %p167_p2 }
   0x6   : > { %s200_s16 = smul.u32 (!%p168_p3), 5, %s3269_s12  ;;  %p2900_p6 = scmp.ne.s32.totalorder (!%p168_p3), %s3269_s12, 0 }
   0x7   : > { %171 = sbr.rel (%p168_p3) target bundleno = 571 (0x23b), region = 32 }
   0x8   : > { %s209_s17 = smul.u32 (!%p168_p3), 80, %s3269_s12  ;;  %p203_p4 = scmp.lt.s32.totalorder (!%p168_p3), %s200_s16, 24 }
   0xa   : > { %p210_p5 = scmp.lt.s32.totalorder (!%p168_p3), %s209_s17, 399 }
   0xc   : > { %s3777_s16 = smov (!%p203_p4, %s200_s16), 24  ;;  %s3779_s17 = smov (!%p210_p5, %s209_s17), 399 }
   0xd   : > { %s207_s20 = scalar_lea.vmem %s3768_s0, %s3777_s16  ;;  %s3225_s21 = sshll.u32 %s3779_s17, 5 }
   0xe   : > { %s3334_s24 = scalar_lea.vmem %s3769_s1, %s3225_s21  ;;  %225 = sbr.rel (%p2900_p6) target bundleno = 21 (0x15), region = 36 }
  0x13   : > { %v3279_v0 = vmov 0.0  }
  0x14   : > { %226 = vst [vmem:[#allocation2] sm:$0xff] %v3279_v0  ;;  %227 = vst [vmem:[#allocation2 + $0x8] sm:$0xff] %v3279_v0 }
  0x15 PF: > { %v287_v1 = vld [vmem:[%s3334_s24 + $0x1c0] sm:$0xff]  ;;  %v3280_v33 = vmov 1966171168   ;;  %v556_v35 = vlaneseq  ;;  %p3221_p7 = scmp.ne.s32.totalorder %s3269_s12, 4 }
  0x16   : > { %v291_v2 = vld [vmem:[%s3334_s24 + $0x1e0] sm:$0xff]  ;;  %v554_v34 = vunpack.c.l.s4 %v3280_v33 }
  0x17   : > { %v415_v3 = vld [vmem:[%s3334_s24 + $0x5c0] sm:$0xff]  ;;  %v2958_v4 = vcombine.high %v287_v1, %v291_v2  ;;  %v2957_v6 = vcombine.low %v287_v1, %v291_v2  ;;  %v3359_v45 = vshrl.u32 %v556_v35, 7 }
  0x18   : > { %v419_v5 = vld [vmem:[%s3334_s24 + $0x5e0] sm:$0xff]  ;;  %v555_v44 = vunpack.c.0.s8 %v554_v34 }
  0x19   : > { %v279_v7 = vld [vmem:[%s3334_s24 + $0x180] sm:$0xff]  ;;  %v3086_v9 = vcombine.high %v415_v3, %v419_v5  ;;  %v3085_v10 = vcombine.low %v415_v3, %v419_v5  ;;  %2196 = vmatprep.subr.bf16.mxu0 %v2958_v4 }
  0x1a   : > { %v283_v8 = vld [vmem:[%s3334_s24 + $0x1a0] sm:$0xff]  ;;  %2197 = vmatpush1.bf16.msra.mxu0 %v2957_v6  ;;  %v3366_v54 = vsub.s32 %v555_v44, %v3359_v45 }
  0x1b   : > { %v2950_v11 = vcombine.high %v279_v7, %v283_v8  ;;  %v407_v12 = vld [vmem:[%s3334_s24 + $0x580] sm:$0xff]  ;;  %2237 = vmatprep.subr.bf16.mxu1 %v3086_v9  ;;  %v2949_v19 = vcombine.low %v279_v7, %v283_v8 }
  0x1c   : > { %v411_v13 = vld [vmem:[%s3334_s24 + $0x5a0] sm:$0xff]  ;;  %2238 = vmatpush1.bf16.msra.mxu1 %v3085_v10 }
  0x1d   : > { %v271_v14 = vld [vmem:[%s3334_s24 + $0x140] sm:$0xff]  ;;  %v3078_v15 = vcombine.high %v407_v12, %v411_v13  ;;  %2198 = vmatprep.subr.bf16.mxu0 %v2950_v11  ;;  %v3077_v20 = vcombine.low %v407_v12, %v411_v13 }
  0x1e   : > { %v275_v16 = vld [vmem:[%s3334_s24 + $0x160] sm:$0xff]  ;;  %2199 = vmatpush1.bf16.msra.mxu0 %v2949_v19 }
  0x1f   : > { %v399_v17 = vld [vmem:[%s3334_s24 + $0x540] sm:$0xff]  ;;  %v2942_v21 = vcombine.high %v271_v14, %v275_v16  ;;  %2239 = vmatprep.subr.bf16.mxu1 %v3078_v15  ;;  %v2941_v27 = vcombine.low %v271_v14, %v275_v16 }
  0x20   : > { %v403_v18 = vld [vmem:[%s3334_s24 + $0x560] sm:$0xff]  ;;  %2240 = vmatpush1.bf16.msra.mxu1 %v3077_v20 }
  0x21   : > { %v3070_v22 = vcombine.high %v399_v17, %v403_v18  ;;  %v263_v23 = vld [vmem:[%s3334_s24 + $0x100] sm:$0xff]  ;;  %2200 = vmatprep.subr.bf16.mxu0 %v2942_v21  ;;  %v3069_v28 = vcombine.low %v399_v17, %v403_v18 }
  0x22   : > { %v267_v24 = vld [vmem:[%s3334_s24 + $0x120] sm:$0xff]  ;;  %2201 = vmatpush1.bf16.msra.mxu0 %v2941_v27 }
  0x23   : > { %v391_v25 = vld [vmem:[%s3334_s24 + $0x500] sm:$0xff]  ;;  %v2934_v29 = vcombine.high %v263_v23, %v267_v24  ;;  %2241 = vmatprep.subr.bf16.mxu1 %v3070_v22  ;;  %v2933_v38 = vcombine.low %v263_v23, %v267_v24 }
  0x24   : > { %v395_v26 = vld [vmem:[%s3334_s24 + $0x520] sm:$0xff]  ;;  %2242 = vmatpush1.bf16.msra.mxu1 %v3069_v28 }
  0x25   : > { %v3062_v30 = vcombine.high %v391_v25, %v395_v26  ;;  %v255_v31 = vld [vmem:[%s3334_s24 + $0xc0] sm:$0xff]  ;;  %2202 = vmatprep.subr.bf16.mxu0 %v2934_v29  ;;  %v3061_v39 = vcombine.low %v391_v25, %v395_v26 }
  0x26   : > { %v259_v32 = vld [vmem:[%s3334_s24 + $0xe0] sm:$0xff]  ;;  %2203 = vmatpush1.bf16.msra.mxu0 %v2933_v38 }
  0x27   : > { %v383_v36 = vld [vmem:[%s3334_s24 + $0x4c0] sm:$0xff]  ;;  %v2926_v40 = vcombine.high %v255_v31, %v259_v32  ;;  %2243 = vmatprep.subr.bf16.mxu1 %v3062_v30  ;;  %v2925_v48 = vcombine.low %v255_v31, %v259_v32 }
  0x28   : > { %v387_v37 = vld [vmem:[%s3334_s24 + $0x4e0] sm:$0xff]  ;;  %2244 = vmatpush1.bf16.msra.mxu1 %v3061_v39 }
  0x29   : > { %v3054_v41 = vcombine.high %v383_v36, %v387_v37  ;;  %v247_v42 = vld [vmem:[%s3334_s24 + $0x80] sm:$0xff]  ;;  %2204 = vmatprep.subr.bf16.mxu0 %v2926_v40  ;;  %v3053_v49 = vcombine.low %v383_v36, %v387_v37 }
  0x2a   : > { %v251_v43 = vld [vmem:[%s3334_s24 + $0xa0] sm:$0xff]  ;;  %2205 = vmatpush1.bf16.msra.mxu0 %v2925_v48 }
  0x2b   : > { %v375_v46 = vld [vmem:[%s3334_s24 + $0x480] sm:$0xff]  ;;  %v2918_v50 = vcombine.high %v247_v42, %v251_v43  ;;  %2245 = vmatprep.subr.bf16.mxu1 %v3054_v41  ;;  %v2917_v57 = vcombine.low %v247_v42, %v251_v43 }
  0x2c   : > { %v379_v47 = vld [vmem:[%s3334_s24 + $0x4a0] sm:$0xff]  ;;  %2246 = vmatpush1.bf16.msra.mxu1 %v3053_v49 }
  0x2d   : > { %v3046_v51 = vcombine.high %v375_v46, %v379_v47  ;;  %v239_v52 = vld [vmem:[%s3334_s24 + $0x40] sm:$0xff]  ;;  %2206 = vmatprep.subr.bf16.mxu0 %v2918_v50  ;;  %v3045_v58 = vcombine.low %v375_v46, %v379_v47 }
  0x2e   : > { %v243_v53 = vld [vmem:[%s3334_s24 + $0x60] sm:$0xff]  ;;  %2207 = vmatpush1.bf16.msra.mxu0 %v2917_v57 }
  0x2f   : > { %v367_v55 = vld [vmem:[%s3334_s24 + $0x440] sm:$0xff]  ;;  %v2910_v59 = vcombine.high %v239_v52, %v243_v53  ;;  %2247 = vmatprep.subr.bf16.mxu1 %v3046_v51  ;;  %v2909_v3 = vcombine.low %v239_v52, %v243_v53 }
  0x30   : > { %v371_v56 = vld [vmem:[%s3334_s24 + $0x460] sm:$0xff]  ;;  %2248 = vmatpush1.bf16.msra.mxu1 %v3045_v58 }
  0x31   : > { %v230_v60 = vld [vmem:[%s207_s20] sm:$0x1f]  ;;  %v3038_v61 = vcombine.high %v367_v55, %v371_v56  ;;  %2208 = vmatprep.subr.bf16.mxu0 %v2910_v59  ;;  %v3037_v5 = vcombine.low %v367_v55, %v371_v56 }
  0x32   : > { %v231_v62 = vld [vmem:[%s3334_s24] sm:$0xff]  ;;  %v3378_v0 = vrot.slane %v230_v60, %v3366_v54  ;;  %2209 = vmatpush1.bf16.msra.mxu0 %v2909_v3  ;;  %v552_v15 = vcombine.high %v230_v60, %v230_v60 }
  0x33   : > { %v235_v63 = vld [vmem:[%s3334_s24 + $0x20] sm:$0xff]  ;;  %2249 = vmatprep.subr.bf16.mxu1 %v3038_v61 }
  0x34   : > { %v359_v1 = vld [vmem:[%s3334_s24 + $0x400] sm:$0xff]  ;;  %v567_v4 = vcombine.high %v3378_v0, %v3378_v0  ;;  %v2902_v6 = vcombine.high %v231_v62, %v235_v63  ;;  %v2901_v13 = vcombine.low %v231_v62, %v235_v63  ;;  %2250 = vmatpush1.bf16.msra.mxu1 %v3037_v5  ;;  %v566_v24 = vrot.slane %v552_v15, %v3366_v54 }
  0x35   : > { %v363_v2 = vld [vmem:[%s3334_s24 + $0x420] sm:$0xff] }
  0x36   : > { %v3030_v7 = vcombine.high %v359_v1, %v363_v2  ;;  %v351_v8 = vld [vmem:[%s3334_s24 + $0x3c0] sm:$0xff]  ;;  %v3387_v10 = vrot.slane %v567_v4, %v3366_v54  ;;  %2210 = vmatprep.subr.bf16.mxu0 %v2902_v6  ;;  %v3029_v16 = vcombine.low %v359_v1, %v363_v2  ;;  %v3405_v30 = vrot.slane %v566_v24, %v3366_v54 }
  0x37   : > { %v355_v9 = vld [vmem:[%s3334_s24 + $0x3e0] sm:$0xff]  ;;  %2211 = vmatpush1.bf16.msra.mxu0 %v2901_v13 }
  0x38   : > { %v479_v11 = vld [vmem:[%s3334_s24 + $0x7c0] sm:$0xff]  ;;  %2228 = vmatprep.mubr.bf16.mxu0 %v3387_v10  ;;  %v3394_v14 = vcombine.high %v3387_v10, %v3387_v10  ;;  %v3022_v17 = vcombine.high %v351_v8, %v355_v9  ;;  %2251 = vmatprep.subr.bf16.mxu1 %v3030_v7  ;;  %v3021_v23 = vcombine.low %v351_v8, %v355_v9 }
  0x39   : > { %v483_v12 = vld [vmem:[%s3334_s24 + $0x7e0] sm:$0xff]  ;;  %2252 = vmatpush1.bf16.msra.mxu1 %v3029_v16 }
  0x3a   : > { %v3150_v18 = vcombine.high %v479_v11, %v483_v12  ;;  %v343_v19 = vld [vmem:[%s3334_s24 + $0x380] sm:$0xff]  ;;  %2269 = vmatprep.mubr.bf16.mxu1 %v3394_v14  ;;  %2212 = vmatprep.subr.bf16.mxu0 %v3022_v17  ;;  %v3149_v25 = vcombine.low %v479_v11, %v483_v12 }
  0x3b   : > { %v347_v20 = vld [vmem:[%s3334_s24 + $0x3a0] sm:$0xff]  ;;  %2213 = vmatpush2.bf16.msra.mxu0 %v3021_v23  ;;  %v3435_v23 = vrot.slane %v3378_v0, %v3366_v54 }
  0x3c   : > { %v471_v21 = vld [vmem:[%s3334_s24 + $0x780] sm:$0xff]  ;;  %v3014_v26 = vcombine.high %v343_v19, %v347_v20  ;;  %2253 = vmatprep.subr.bf16.mxu1 %v3150_v18  ;;  %v3013_v33 = vcombine.low %v343_v19, %v347_v20  ;;  %v288_v20 = vld [vmem:[%s3334_s24 + $0x1c8] sm:$0xff] }
  0x3d   : > { %v475_v22 = vld [vmem:[%s3334_s24 + $0x7a0] sm:$0xff]  ;;  %2254 = vmatpush2.bf16.msra.mxu1 %v3149_v25 }
  0x3e   : > { %v3142_v27 = vcombine.high %v471_v21, %v475_v22  ;;  %v335_v28 = vld [vmem:[%s3334_s24 + $0x340] sm:$0xff]  ;;  %2214 = vmatprep.subr.bf16.mxu0 %v3014_v26  ;;  %v3141_v34 = vcombine.low %v471_v21, %v475_v22  ;;  %v292_v21 = vld [vmem:[%s3334_s24 + $0x1e8] sm:$0xff] }
  0x3f   : > { %v339_v29 = vld [vmem:[%s3334_s24 + $0x360] sm:$0xff]  ;;  %2215 = vmatpush2.bf16.msra.mxu0 %v3013_v33  ;;  %v2960_v26 = vcombine.high %v288_v20, %v292_v21  ;;  %v2959_v0 = vcombine.low %v288_v20, %v292_v21  ;;  %v236_v20 = vld [vmem:[%s3334_s24 + $0x28] sm:$0xff] }
  0x40   : > { %v463_v31 = vld [vmem:[%s3334_s24 + $0x740] sm:$0xff]  ;;  %v3006_v35 = vcombine.high %v335_v28, %v339_v29  ;;  %2255 = vmatprep.subr.bf16.mxu1 %v3142_v27  ;;  %v3005_v41 = vcombine.low %v335_v28, %v339_v29  ;;  %v280_v29 = vld [vmem:[%s3334_s24 + $0x188] sm:$0xff] }
  0x41   : > { %v467_v32 = vld [vmem:[%s3334_s24 + $0x760] sm:$0xff]  ;;  %2256 = vmatpush2.bf16.msra.mxu1 %v3141_v34 }
  0x42   : > { %v3134_v36 = vcombine.high %v463_v31, %v467_v32  ;;  %v327_v37 = vld [vmem:[%s3334_s24 + $0x300] sm:$0xff]  ;;  %2216 = vmatprep.subr.bf16.mxu0 %v3006_v35  ;;  %v3133_v42 = vcombine.low %v463_v31, %v467_v32  ;;  %v284_v31 = vld [vmem:[%s3334_s24 + $0x1a8] sm:$0xff]  ;;  %v3443_v32 = vcombine.high %v3435_v23, %v3435_v23 }
  0x43   : > { %v331_v38 = vld [vmem:[%s3334_s24 + $0x320] sm:$0xff]  ;;  %2217 = vmatpush2.bf16.msra.mxu0 %v3005_v41  ;;  %v2952_v34 = vcombine.high %v280_v29, %v284_v31 }
  0x44   : > { %v455_v39 = vld [vmem:[%s3334_s24 + $0x700] sm:$0xff]  ;;  %v2998_v43 = vcombine.high %v327_v37, %v331_v38  ;;  %2257 = vmatprep.subr.bf16.mxu1 %v3134_v36  ;;  %v2997_v50 = vcombine.low %v327_v37, %v331_v38  ;;  %v272_v37 = vld [vmem:[%s3334_s24 + $0x148] sm:$0xff] }
  0x45   : > { %v459_v40 = vld [vmem:[%s3334_s24 + $0x720] sm:$0xff]  ;;  %2258 = vmatpush2.bf16.msra.mxu1 %v3133_v42  ;;  %v276_v38 = vld [vmem:[%s3334_s24 + $0x168] sm:$0xff] }
  0x46   : > { %v3126_v44 = vcombine.high %v455_v39, %v459_v40  ;;  %v319_v46 = vld [vmem:[%s3334_s24 + $0x2c0] sm:$0xff]  ;;  %2218 = vmatprep.subr.bf16.mxu0 %v2998_v43  ;;  %v3125_v51 = vcombine.low %v455_v39, %v459_v40  ;;  %v2951_v40 = vcombine.low %v280_v29, %v284_v31  ;;  %v2944_v42 = vcombine.high %v272_v37, %v276_v38  ;;  %v356_v29 = vld [vmem:[%s3334_s24 + $0x3e8] sm:$0xff] }
  0x47   : > { %v323_v47 = vld [vmem:[%s3334_s24 + $0x2e0] sm:$0xff]  ;;  %2219 = vmatpush2.bf16.msra.mxu0 %v2997_v50  ;;  %v2943_v50 = vcombine.low %v272_v37, %v276_v38  ;;  %v348_v37 = vld [vmem:[%s3334_s24 + $0x3a8] sm:$0xff] }
  0x48   : > { %v447_v48 = vld [vmem:[%s3334_s24 + $0x6c0] sm:$0xff]  ;;  %v2990_v52 = vcombine.high %v319_v46, %v323_v47  ;;  %2259 = vmatprep.subr.bf16.mxu1 %v3126_v44  ;;  %v2989_v59 = vcombine.low %v319_v46, %v323_v47  ;;  %v3281_v46 = vmov 0   ;;  %v264_v47 = vld [vmem:[%s3334_s24 + $0x108] sm:$0xff] }
  0x49   : > { %v451_v49 = vld [vmem:[%s3334_s24 + $0x6e0] sm:$0xff]  ;;  %2260 = vmatpush2.bf16.msra.mxu1 %v3125_v51 }
  0x4a   : > { %v3118_v53 = vcombine.high %v447_v48, %v451_v49  ;;  %v311_v55 = vld [vmem:[%s3334_s24 + $0x280] sm:$0xff]  ;;  %2220 = vmatprep.subr.bf16.mxu0 %v2990_v52  ;;  %v3117_v60 = vcombine.low %v447_v48, %v451_v49  ;;  %v268_v48 = vld [vmem:[%s3334_s24 + $0x128] sm:$0xff] }
  0x4b   : > { %v315_v56 = vld [vmem:[%s3334_s24 + $0x2a0] sm:$0xff]  ;;  %2221 = vmatpush2.bf16.msra.mxu0 %v2989_v59  ;;  %v2936_v52 = vcombine.high %v264_v47, %v268_v48  ;;  %v2935_v59 = vcombine.low %v264_v47, %v268_v48  ;;  %v340_v47 = vld [vmem:[%s3334_s24 + $0x368] sm:$0xff] }
  0x4c   : > { %v439_v57 = vld [vmem:[%s3334_s24 + $0x680] sm:$0xff]  ;;  %v2982_v61 = vcombine.high %v311_v55, %v315_v56  ;;  %2261 = vmatprep.subr.bf16.mxu1 %v3118_v53  ;;  %v2981_v4 = vcombine.low %v311_v55, %v315_v56  ;;  %v256_v56 = vld [vmem:[%s3334_s24 + $0xc8] sm:$0xff] }
  0x4d   : > { %v443_v58 = vld [vmem:[%s3334_s24 + $0x6a0] sm:$0xff]  ;;  %2262 = vmatpush2.bf16.msra.mxu1 %v3117_v60 }
  0x4e   : > { %v3110_v62 = vcombine.high %v439_v57, %v443_v58  ;;  %v303_v63 = vld [vmem:[%s3334_s24 + $0x240] sm:$0xff]  ;;  %2222 = vmatprep.subr.bf16.mxu0 %v2982_v61  ;;  %v3109_v5 = vcombine.low %v439_v57, %v443_v58  ;;  %v260_v57 = vld [vmem:[%s3334_s24 + $0xe8] sm:$0xff] }
  0x4f   : > { %v307_v1 = vld [vmem:[%s3334_s24 + $0x260] sm:$0xff]  ;;  %2223 = vmatpush2.bf16.msra.mxu0 %v2981_v4  ;;  %v2928_v61 = vcombine.high %v256_v56, %v260_v57  ;;  %v2927_v4 = vcombine.low %v256_v56, %v260_v57  ;;  %v332_v56 = vld [vmem:[%s3334_s24 + $0x328] sm:$0xff] }
  0x50   : > { %v431_v2 = vld [vmem:[%s3334_s24 + $0x640] sm:$0xff]  ;;  %v2974_v6 = vcombine.high %v303_v63, %v307_v1  ;;  %2263 = vmatprep.subr.bf16.mxu1 %v3110_v62  ;;  %v2973_v13 = vcombine.low %v303_v63, %v307_v1  ;;  %v248_v1 = vld [vmem:[%s3334_s24 + $0x88] sm:$0xff] }
  0x51   : > { %v435_v3 = vld [vmem:[%s3334_s24 + $0x660] sm:$0xff]  ;;  %2264 = vmatpush2.bf16.msra.mxu1 %v3109_v5 }
  0x52   : > { %v3102_v7 = vcombine.high %v431_v2, %v435_v3  ;;  %v295_v8 = vld [vmem:[%s3334_s24 + $0x200] sm:$0xff]  ;;  %2224 = vmatprep.subr.bf16.mxu0 %v2974_v6  ;;  %v3101_v15 = vcombine.low %v431_v2, %v435_v3  ;;  %v252_v2 = vld [vmem:[%s3334_s24 + $0xa8] sm:$0xff] }
  0x53   : > { %v299_v9 = vld [vmem:[%s3334_s24 + $0x220] sm:$0xff]  ;;  %2225 = vmatpush2.bf16.msra.mxu0 %v2973_v13  ;;  %v2920_v6 = vcombine.high %v248_v1, %v252_v2  ;;  %v2919_v13 = vcombine.low %v248_v1, %v252_v2  ;;  %v324_v1 = vld [vmem:[%s3334_s24 + $0x2e8] sm:$0xff] }
  0x54   : > { %v423_v11 = vld [vmem:[%s3334_s24 + $0x600] sm:$0xff]  ;;  %v2966_v16 = vcombine.high %v295_v8, %v299_v9  ;;  %2265 = vmatprep.subr.bf16.mxu1 %v3102_v7  ;;  %v2965_v22 = vcombine.low %v295_v8, %v299_v9  ;;  %v240_v9 = vld [vmem:[%s3334_s24 + $0x48] sm:$0xff] }
  0x55   : > { %v427_v12 = vld [vmem:[%s3334_s24 + $0x620] sm:$0xff]  ;;  %2266 = vmatpush2.bf16.msra.mxu1 %v3101_v15 }
  0x56   : > { %v3094_v17 = vcombine.high %v423_v11, %v427_v12  ;;  %v543_v18 = vld [vmem:[%s3334_s24 + $0x9c0] sm:$0xff]  ;;  %2226 = vmatprep.subr.bf16.mxu0 %v2966_v16  ;;  %v3093_v24 = vcombine.low %v423_v11, %v427_v12  ;;  %v244_v11 = vld [vmem:[%s3334_s24 + $0x68] sm:$0xff] }
  0x57   : > { %v547_v19 = vld [vmem:[%s3334_s24 + $0x9e0] sm:$0xff]  ;;  %2227 = vmatpush2.bf16.msra.mxu0 %v2965_v22  ;;  %v2912_v16 = vcombine.high %v240_v9, %v244_v11  ;;  %v2911_v22 = vcombine.low %v240_v9, %v244_v11  ;;  %v316_v9 = vld [vmem:[%s3334_s24 + $0x2a8] sm:$0xff] }
  0x58   : > { %v3214_v25 = vcombine.high %v543_v18, %v547_v19  ;;  %2267 = vmatprep.subr.bf16.mxu1 %v3094_v17  ;;  %v535_v27 = vld [vmem:[%s3334_s24 + $0x980] sm:$0xff]  ;;  %v3213_v54 = vcombine.low %v543_v18, %v547_v19  ;;  %v232_v19 = vld [vmem:[%s3334_s24 + $0x8] sm:$0xff] }
  0x59   : > { %v539_v28 = vld [vmem:[%s3334_s24 + $0x9a0] sm:$0xff]  ;;  %2268 = vmatpush2.bf16.msra.mxu1 %v3093_v24 }
  0x5a   : > { %2278 = vmatprep.subr.bf16.mxu0 %v3214_v25  ;;  %v3206_v33 = vcombine.high %v535_v27, %v539_v28  ;;  %2319 = vmatprep.subr.bf16.mxu1 %v2960_v26  ;;  %v527_v35 = vld [vmem:[%s3334_s24 + $0x940] sm:$0xff]  ;;  %v3205_v39 = vcombine.low %v535_v27, %v539_v28  ;;  %v2904_v25 = vcombine.high %v232_v19, %v236_v20  ;;  %v416_v26 = vld [vmem:[%s3334_s24 + $0x5c8] sm:$0xff] }
  0x5b   : > { %v531_v36 = vld [vmem:[%s3334_s24 + $0x960] sm:$0xff]  ;;  %2229 = vmatmul.mubr.bf16.vlgmr.msra.gmra.mxu0 %v3435_v23  ;;  %v420_v27 = vld [vmem:[%s3334_s24 + $0x5e8] sm:$0xff] }
  0x5c   : > { %2270 = vmatmul.mubr.bf16.vlgmr.msra.gmra.mxu1 %v3443_v32  ;;  %2279 = vmatpush1.bf16.msra.mxu0 %v3213_v54  ;;  %v3198_v41 = vcombine.high %v527_v35, %v531_v36  ;;  %v519_v43 = vld [vmem:[%s3334_s24 + $0x900] sm:$0xff]  ;;  %v3197_v49 = vcombine.low %v527_v35, %v531_v36  ;;  %v352_v28 = vld [vmem:[%s3334_s24 + $0x3c8] sm:$0xff]  ;;  %v2903_v54 = vcombine.low %v232_v19, %v236_v20 }
  0x5d   : > { %2320 = vmatpush1.bf16.msra.mxu1 %v2959_v0  ;;  %2280 = vmatprep.subr.bf16.mxu0 %v3206_v33  ;;  %v523_v44 = vld [vmem:[%s3334_s24 + $0x920] sm:$0xff]  ;;  %v3088_v0 = vcombine.high %v416_v26, %v420_v27  ;;  %v3024_v33 = vcombine.high %v352_v28, %v356_v29  ;;  %v412_v35 = vld [vmem:[%s3334_s24 + $0x5a8] sm:$0xff]  ;;  %v3087_v38 = vcombine.low %v416_v26, %v420_v27 }
  0x5e   : > { %2321 = vmatprep.subr.bf16.mxu1 %v2952_v34  ;;  %2310 = vmatprep.mubr.bf16.mxu0 %v3281_v46  ;;  %v3190_v51 = vcombine.high %v519_v43, %v523_v44  ;;  %v511_v53 = vld [vmem:[%s3334_s24 + $0x8c0] sm:$0xff]  ;;  %v3189_v58 = vcombine.low %v519_v43, %v523_v44  ;;  %v408_v34 = vld [vmem:[%s3334_s24 + $0x588] sm:$0xff] }
  0x5f   : > { %2351 = vmatprep.mubr.bf16.mxu1 %v3387_v10  ;;  %v515_v55 = vld [vmem:[%s3334_s24 + $0x8e0] sm:$0xff]  ;;  %v344_v36 = vld [vmem:[%s3334_s24 + $0x388] sm:$0xff]  ;;  %v3079_v48 = vcombine.low %v408_v34, %v412_v35 }
  0x60   : > { %2281 = vmatpush1.bf16.msra.mxu0 %v3205_v39  ;;  %v3182_v60 = vcombine.high %v511_v53, %v515_v55  ;;  %v503_v62 = vld [vmem:[%s3334_s24 + $0x880] sm:$0xff]  ;;  %v3181_v3 = vcombine.low %v511_v53, %v515_v55  ;;  %v3023_v39 = vcombine.low %v352_v28, %v356_v29  ;;  %v404_v43 = vld [vmem:[%s3334_s24 + $0x568] sm:$0xff] }
  0x61   : > { %2322 = vmatpush1.bf16.msra.mxu1 %v2951_v40  ;;  %2282 = vmatprep.subr.bf16.mxu0 %v3198_v41  ;;  %v507_v63 = vld [vmem:[%s3334_s24 + $0x8a0] sm:$0xff]  ;;  %v3080_v40 = vcombine.high %v408_v34, %v412_v35  ;;  %v3016_v41 = vcombine.high %v344_v36, %v348_v37  ;;  %v336_v44 = vld [vmem:[%s3334_s24 + $0x348] sm:$0xff] }
  0x62   : > { %2323 = vmatprep.subr.bf16.mxu1 %v2944_v42  ;;  %v3174_v5 = vcombine.high %v503_v62, %v507_v63  ;;  %v495_v7 = vld [vmem:[%s3334_s24 + $0x840] sm:$0xff]  ;;  %v3173_v12 = vcombine.low %v503_v62, %v507_v63  ;;  %v400_v42 = vld [vmem:[%s3334_s24 + $0x548] sm:$0xff] }
  0x63   : > { %v499_v8 = vld [vmem:[%s3334_s24 + $0x860] sm:$0xff]  ;;  %v396_v53 = vld [vmem:[%s3334_s24 + $0x528] sm:$0xff]  ;;  %v3071_v57 = vcombine.low %v400_v42, %v404_v43 }
  0x64   : > { %2283 = vmatpush1.bf16.msra.mxu0 %v3197_v49  ;;  %v3166_v15 = vcombine.high %v495_v7, %v499_v8  ;;  %v487_v17 = vld [vmem:[%s3334_s24 + $0x800] sm:$0xff]  ;;  %v3165_v21 = vcombine.low %v495_v7, %v499_v8  ;;  %v3015_v49 = vcombine.low %v344_v36, %v348_v37  ;;  %v328_v55 = vld [vmem:[%s3334_s24 + $0x308] sm:$0xff] }
  0x65   : > { %2324 = vmatpush1.bf16.msra.mxu1 %v2943_v50  ;;  %2284 = vmatprep.subr.bf16.mxu0 %v3190_v51  ;;  %v491_v18 = vld [vmem:[%s3334_s24 + $0x820] sm:$0xff]  ;;  %v3072_v50 = vcombine.high %v400_v42, %v404_v43  ;;  %v3008_v51 = vcombine.high %v336_v44, %v340_v47  ;;  %v388_v62 = vld [vmem:[%s3334_s24 + $0x4e8] sm:$0xff] }
  0x66   : > { %2325 = vmatprep.subr.bf16.mxu1 %v2936_v52  ;;  %v3158_v24 = vcombine.high %v487_v17, %v491_v18  ;;  %v3157_v31 = vcombine.low %v487_v17, %v491_v18  ;;  %v392_v52 = vld [vmem:[%s3334_s24 + $0x508] sm:$0xff] }
  0x67   : > { %v320_v63 = vld [vmem:[%s3334_s24 + $0x2c8] sm:$0xff]  ;;  %v3063_v2 = vcombine.low %v392_v52, %v396_v53 }
  0x68   : > { %2285 = vmatpush1.bf16.msra.mxu0 %v3189_v58  ;;  %v3007_v58 = vcombine.low %v336_v44, %v340_v47  ;;  %v380_v7 = vld [vmem:[%s3334_s24 + $0x4a8] sm:$0xff] }
  0x69   : > { %2326 = vmatpush1.bf16.msra.mxu1 %v2935_v59  ;;  %2286 = vmatprep.subr.bf16.mxu0 %v3182_v60  ;;  %v3064_v59 = vcombine.high %v392_v52, %v396_v53  ;;  %v3000_v60 = vcombine.high %v328_v55, %v332_v56  ;;  %v312_v8 = vld [vmem:[%s3334_s24 + $0x288] sm:$0xff] }
  0x6a   : > { %2327 = vmatprep.subr.bf16.mxu1 %v2928_v61  ;;  %v384_v61 = vld [vmem:[%s3334_s24 + $0x4c8] sm:$0xff] }
  0x6b   : > { %v3055_v11 = vcombine.low %v384_v61, %v388_v62  ;;  %v372_v17 = vld [vmem:[%s3334_s24 + $0x468] sm:$0xff] }
  0x6c   : > { %2287 = vmatpush1.bf16.msra.mxu0 %v3181_v3  ;;  %v2999_v3 = vcombine.low %v328_v55, %v332_v56  ;;  %v304_v18 = vld [vmem:[%s3334_s24 + $0x248] sm:$0xff] }
  0x6d   : > { %2328 = vmatpush1.bf16.msra.mxu1 %v2927_v4  ;;  %2288 = vmatprep.subr.bf16.mxu0 %v3174_v5  ;;  %v3056_v4 = vcombine.high %v384_v61, %v388_v62  ;;  %v2992_v5 = vcombine.high %v320_v63, %v324_v1  ;;  %v308_v19 = vld [vmem:[%s3334_s24 + $0x268] sm:$0xff] }
  0x6e   : > { %2329 = vmatprep.subr.bf16.mxu1 %v2920_v6  ;;  %v376_v6 = vld [vmem:[%s3334_s24 + $0x488] sm:$0xff] }
  0x6f   : > { %v3047_v20 = vcombine.low %v376_v6, %v380_v7  ;;  %v364_v26 = vld [vmem:[%s3334_s24 + $0x428] sm:$0xff] }
  0x70   : > { %2289 = vmatpush1.bf16.msra.mxu0 %v3173_v12  ;;  %v2991_v12 = vcombine.low %v320_v63, %v324_v1  ;;  %v296_v27 = vld [vmem:[%s3334_s24 + $0x208] sm:$0xff] }
  0x71   : > { %2330 = vmatpush1.bf16.msra.mxu1 %v2919_v13  ;;  %2290 = vmatprep.subr.bf16.mxu0 %v3166_v15  ;;  %v3048_v13 = vcombine.high %v376_v6, %v380_v7  ;;  %v2984_v15 = vcombine.high %v312_v8, %v316_v9  ;;  %v300_v28 = vld [vmem:[%s3334_s24 + $0x228] sm:$0xff] }
  0x72   : > { %2331 = vmatprep.subr.bf16.mxu1 %v2912_v16  ;;  %v368_v16 = vld [vmem:[%s3334_s24 + $0x448] sm:$0xff] }
  0x73   : > { %v3039_v29 = vcombine.low %v368_v16, %v372_v17  ;;  %v484_v34 = vld [vmem:[%s3334_s24 + $0x7e8] sm:$0xff] }
  0x74   : > { %2291 = vmatpush1.bf16.msra.mxu0 %v3165_v21  ;;  %v2983_v21 = vcombine.low %v312_v8, %v316_v9  ;;  %v544_v35 = vld [vmem:[%s3334_s24 + $0x9c8] sm:$0xff] }
  0x75   : > { %2332 = vmatpush1.bf16.msra.mxu1 %v2911_v22  ;;  %2292 = vmatprep.subr.bf16.mxu0 %v3158_v24  ;;  %v3040_v22 = vcombine.high %v368_v16, %v372_v17  ;;  %v2976_v24 = vcombine.high %v304_v18, %v308_v19  ;;  %v548_v36 = vld [vmem:[%s3334_s24 + $0x9e8] sm:$0xff] }
  0x76   : > { %2333 = vmatprep.subr.bf16.mxu1 %v2904_v25  ;;  %v360_v25 = vld [vmem:[%s3334_s24 + $0x408] sm:$0xff] }
  0x77   : > { %v3031_v37 = vcombine.low %v360_v25, %v364_v26  ;;  %v476_v42 = vld [vmem:[%s3334_s24 + $0x7a8] sm:$0xff] }
  0x78   : > { %2293 = vmatpush1.bf16.msra.mxu0 %v3157_v31  ;;  %v2975_v31 = vcombine.low %v304_v18, %v308_v19  ;;  %v536_v43 = vld [vmem:[%s3334_s24 + $0x988] sm:$0xff] }
  0x79   : > { %2334 = vmatpush1.bf16.msra.mxu1 %v2903_v54  ;;  %2360 = vmatprep.subr.bf16.mxu0 %v3088_v0  ;;  %v3032_v54 = vcombine.high %v360_v25, %v364_v26  ;;  %v2968_v0 = vcombine.high %v296_v27, %v300_v28  ;;  %v540_v44 = vld [vmem:[%s3334_s24 + $0x9a8] sm:$0xff] }
  0x7a   : > { %2335 = vmatprep.subr.bf16.mxu1 %v3024_v33  ;;  %v480_v33 = vld [vmem:[%s3334_s24 + $0x7c8] sm:$0xff] }
  0x7b   : > { %2311 = vmatmul.mubr.bf16.vlgmr.msra.gmra.mxu0 %v3405_v30  ;;  %v3151_v47 = vcombine.low %v480_v33, %v484_v34  ;;  %v468_v52 = vld [vmem:[%s3334_s24 + $0x768] sm:$0xff] }
  0x7c   : > { %2361 = vmatpush1.bf16.msra.mxu0 %v3087_v38  ;;  %2392 = vmatprep.mubr.bf16.mxu0 %v3394_v14  ;;  %v2967_v38 = vcombine.low %v296_v27, %v300_v28  ;;  %v528_v53 = vld [vmem:[%s3334_s24 + $0x948] sm:$0xff] }
  0x7d   : > { %2336 = vmatpush2.bf16.msra.mxu1 %v3023_v39  ;;  %2362 = vmatprep.subr.bf16.mxu0 %v3080_v40  ;;  %v3152_v39 = vcombine.high %v480_v33, %v484_v34  ;;  %v3216_v40 = vcombine.high %v544_v35, %v548_v36  ;;  %v532_v55 = vld [vmem:[%s3334_s24 + $0x968] sm:$0xff] }
  0x7e   : > { %2337 = vmatprep.subr.bf16.mxu1 %v3016_v41  ;;  %v472_v41 = vld [vmem:[%s3334_s24 + $0x788] sm:$0xff] }
  0x7f   : > { %v3143_v56 = vcombine.low %v472_v41, %v476_v42  ;;  %v460_v61 = vld [vmem:[%s3334_s24 + $0x728] sm:$0xff] }
  0x80   : > { %2363 = vmatpush1.bf16.msra.mxu0 %v3079_v48  ;;  %v3215_v48 = vcombine.low %v544_v35, %v548_v36  ;;  %v520_v62 = vld [vmem:[%s3334_s24 + $0x908] sm:$0xff] }
  0x81   : > { %2338 = vmatpush2.bf16.msra.mxu1 %v3015_v49  ;;  %2364 = vmatprep.subr.bf16.mxu0 %v3072_v50  ;;  %v3144_v49 = vcombine.high %v472_v41, %v476_v42  ;;  %v3208_v50 = vcombine.high %v536_v43, %v540_v44  ;;  %v524_v63 = vld [vmem:[%s3334_s24 + $0x928] sm:$0xff]  ;;  %v293_v41 = vld [vmem:[%s3334_s24 + $0x1f0] sm:$0xff] }
  0x82   : > { %2339 = vmatprep.subr.bf16.mxu1 %v3008_v51  ;;  %v464_v51 = vld [vmem:[%s3334_s24 + $0x748] sm:$0xff]  ;;  %v417_v42 = vld [vmem:[%s3334_s24 + $0x5d0] sm:$0xff] }
  0x83   : > { %v3135_v1 = vcombine.low %v464_v51, %v468_v52  ;;  %v452_v6 = vld [vmem:[%s3334_s24 + $0x6e8] sm:$0xff] }
  0x84   : > { %2365 = vmatpush1.bf16.msra.mxu0 %v3071_v57  ;;  %v3207_v57 = vcombine.low %v536_v43, %v540_v44  ;;  %v512_v7 = vld [vmem:[%s3334_s24 + $0x8c8] sm:$0xff]  ;;  %v421_v43 = vld [vmem:[%s3334_s24 + $0x5f0] sm:$0xff] }
  0x85   : > { %2340 = vmatpush2.bf16.msra.mxu1 %v3007_v58  ;;  %2366 = vmatprep.subr.bf16.mxu0 %v3064_v59  ;;  %v3136_v58 = vcombine.high %v464_v51, %v468_v52  ;;  %v3200_v59 = vcombine.high %v528_v53, %v532_v55  ;;  %v516_v8 = vld [vmem:[%s3334_s24 + $0x8e8] sm:$0xff]  ;;  %v285_v51 = vld [vmem:[%s3334_s24 + $0x1b0] sm:$0xff] }
  0x86   : > { %2341 = vmatprep.subr.bf16.mxu1 %v3000_v60  ;;  %v456_v60 = vld [vmem:[%s3334_s24 + $0x708] sm:$0xff]  ;;  %v409_v52 = vld [vmem:[%s3334_s24 + $0x590] sm:$0xff] }
  0x87   : > { %v3127_v9 = vcombine.low %v456_v60, %v460_v61  ;;  %v444_v16 = vld [vmem:[%s3334_s24 + $0x6a8] sm:$0xff] }
  0x88   : > { %2367 = vmatpush1.bf16.msra.mxu0 %v3063_v2  ;;  %v3199_v2 = vcombine.low %v528_v53, %v532_v55  ;;  %v504_v17 = vld [vmem:[%s3334_s24 + $0x888] sm:$0xff]  ;;  %v413_v53 = vld [vmem:[%s3334_s24 + $0x5b0] sm:$0xff] }
  0x89   : > { %2342 = vmatpush2.bf16.msra.mxu1 %v2999_v3  ;;  %2368 = vmatprep.subr.bf16.mxu0 %v3056_v4  ;;  %v3128_v3 = vcombine.high %v456_v60, %v460_v61  ;;  %v3192_v4 = vcombine.high %v520_v62, %v524_v63  ;;  %v508_v18 = vld [vmem:[%s3334_s24 + $0x8a8] sm:$0xff]  ;;  %v277_v60 = vld [vmem:[%s3334_s24 + $0x170] sm:$0xff] }
  0x8a   : > { %2343 = vmatprep.subr.bf16.mxu1 %v2992_v5  ;;  %v448_v5 = vld [vmem:[%s3334_s24 + $0x6c8] sm:$0xff]  ;;  %v401_v61 = vld [vmem:[%s3334_s24 + $0x550] sm:$0xff] }
  0x8b   : > { %v3119_v19 = vcombine.low %v448_v5, %v452_v6  ;;  %v436_v25 = vld [vmem:[%s3334_s24 + $0x668] sm:$0xff] }
  0x8c   : > { %2369 = vmatpush1.bf16.msra.mxu0 %v3055_v11  ;;  %v3191_v11 = vcombine.low %v520_v62, %v524_v63  ;;  %v496_v26 = vld [vmem:[%s3334_s24 + $0x848] sm:$0xff]  ;;  %v405_v62 = vld [vmem:[%s3334_s24 + $0x570] sm:$0xff] }
  0x8d   : > { %2344 = vmatpush2.bf16.msra.mxu1 %v2991_v12  ;;  %2370 = vmatprep.subr.bf16.mxu0 %v3048_v13  ;;  %v3120_v12 = vcombine.high %v448_v5, %v452_v6  ;;  %v3184_v13 = vcombine.high %v512_v7, %v516_v8  ;;  %v500_v27 = vld [vmem:[%s3334_s24 + $0x868] sm:$0xff]  ;;  %v269_v5 = vld [vmem:[%s3334_s24 + $0x130] sm:$0xff] }
  0x8e   : > { %2345 = vmatprep.subr.bf16.mxu1 %v2984_v15  ;;  %v440_v15 = vld [vmem:[%s3334_s24 + $0x688] sm:$0xff]  ;;  %v393_v6 = vld [vmem:[%s3334_s24 + $0x510] sm:$0xff] }
  0x8f   : > { %v3111_v28 = vcombine.low %v440_v15, %v444_v16  ;;  %v428_v33 = vld [vmem:[%s3334_s24 + $0x628] sm:$0xff] }
  0x90   : > { %2371 = vmatpush1.bf16.msra.mxu0 %v3047_v20  ;;  %v3183_v20 = vcombine.low %v512_v7, %v516_v8  ;;  %v488_v34 = vld [vmem:[%s3334_s24 + $0x808] sm:$0xff]  ;;  %v397_v7 = vld [vmem:[%s3334_s24 + $0x530] sm:$0xff] }
  0x91   : > { %2346 = vmatpush2.bf16.msra.mxu1 %v2983_v21  ;;  %2372 = vmatprep.subr.bf16.mxu0 %v3040_v22  ;;  %v3112_v21 = vcombine.high %v440_v15, %v444_v16  ;;  %v3176_v22 = vcombine.high %v504_v17, %v508_v18  ;;  %v492_v35 = vld [vmem:[%s3334_s24 + $0x828] sm:$0xff]  ;;  %v261_v15 = vld [vmem:[%s3334_s24 + $0xf0] sm:$0xff] }
  0x92   : > { %2347 = vmatprep.subr.bf16.mxu1 %v2976_v24  ;;  %v432_v24 = vld [vmem:[%s3334_s24 + $0x648] sm:$0xff]  ;;  %v385_v16 = vld [vmem:[%s3334_s24 + $0x4d0] sm:$0xff] }
  0x93   : > { %v3103_v36 = vcombine.low %v432_v24, %v436_v25 }
  0x94   : > { %2373 = vmatpush1.bf16.msra.mxu0 %v3039_v29  ;;  %v3175_v29 = vcombine.low %v504_v17, %v508_v18  ;;  %v389_v17 = vld [vmem:[%s3334_s24 + $0x4f0] sm:$0xff] }
  0x95   : > { %2348 = vmatpush2.bf16.msra.mxu1 %v2975_v31  ;;  %2374 = vmatprep.subr.bf16.mxu0 %v3032_v54  ;;  %v3104_v31 = vcombine.high %v432_v24, %v436_v25  ;;  %v3168_v54 = vcombine.high %v496_v26, %v500_v27  ;;  %v253_v24 = vld [vmem:[%s3334_s24 + $0xb0] sm:$0xff] }
  0x96   : > { %2349 = vmatprep.subr.bf16.mxu1 %v2968_v0  ;;  %v424_v0 = vld [vmem:[%s3334_s24 + $0x608] sm:$0xff]  ;;  %v377_v25 = vld [vmem:[%s3334_s24 + $0x490] sm:$0xff] }
  0x97   : > { %v3095_v44 = vcombine.low %v424_v0, %v428_v33 }
  0x98   : > { %2375 = vmatpush1.bf16.msra.mxu0 %v3031_v37  ;;  %v3167_v37 = vcombine.low %v496_v26, %v500_v27  ;;  %v381_v26 = vld [vmem:[%s3334_s24 + $0x4b0] sm:$0xff] }
  0x99   : > { %2350 = vmatpush2.bf16.msra.mxu1 %v2967_v38  ;;  %2376 = vmatprep.subr.bf16.mxu0 %v3152_v39  ;;  %v3096_v38 = vcombine.high %v424_v0, %v428_v33  ;;  %v3160_v39 = vcombine.high %v488_v34, %v492_v35  ;;  %v245_v0 = vld [vmem:[%s3334_s24 + $0x70] sm:$0xff] }
  0x9a   : > { %2401 = vmatprep.subr.bf16.mxu1 %v3216_v40  ;;  %v289_v40 = vld [vmem:[%s3334_s24 + $0x1d0] sm:$0xff] }
  0x9b   : > { %v2961_v55 = vcombine.low %v289_v40, %v293_v41  ;;  %v369_v33 = vld [vmem:[%s3334_s24 + $0x450] sm:$0xff] }
  0x9c   : > { %2352 = vmatmul.mubr.bf16.vlgmr.msra.gmra.mxu1 %v3435_v23  ;;  %2377 = vmatpush2.bf16.msra.mxu0 %v3151_v47  ;;  %v3159_v47 = vcombine.low %v488_v34, %v492_v35  ;;  %v373_v34 = vld [vmem:[%s3334_s24 + $0x470] sm:$0xff] }
  0x9d   : > { %2402 = vmatpush1.bf16.msra.mxu1 %v3215_v48  ;;  %2378 = vmatprep.subr.bf16.mxu0 %v3144_v49  ;;  %v2962_v48 = vcombine.high %v289_v40, %v293_v41  ;;  %v3090_v49 = vcombine.high %v417_v42, %v421_v43  ;;  %v237_v40 = vld [vmem:[%s3334_s24 + $0x30] sm:$0xff] }
  0x9e   : > { %2403 = vmatprep.subr.bf16.mxu1 %v3208_v50  ;;  %2433 = vmatprep.mubr.bf16.mxu1 %v3281_v46  ;;  %v281_v50 = vld [vmem:[%s3334_s24 + $0x190] sm:$0xff] }
  0x9f   : > { %v2953_v63 = vcombine.low %v281_v50, %v285_v51  ;;  %v361_v41 = vld [vmem:[%s3334_s24 + $0x410] sm:$0xff] }
  0xa0   : > { %2379 = vmatpush2.bf16.msra.mxu0 %v3143_v56  ;;  %v3089_v56 = vcombine.low %v417_v42, %v421_v43  ;;  %v365_v42 = vld [vmem:[%s3334_s24 + $0x430] sm:$0xff] }
  0xa1   : > { %2404 = vmatpush1.bf16.msra.mxu1 %v3207_v57  ;;  %2380 = vmatprep.subr.bf16.mxu0 %v3136_v58  ;;  %v2954_v57 = vcombine.high %v281_v50, %v285_v51  ;;  %v3082_v58 = vcombine.high %v409_v52, %v413_v53  ;;  %v357_v50 = vld [vmem:[%s3334_s24 + $0x3f0] sm:$0xff] }
  0xa2   : > { %2405 = vmatprep.subr.bf16.mxu1 %v3200_v59  ;;  %v273_v59 = vld [vmem:[%s3334_s24 + $0x150] sm:$0xff] }
  0xa3   : > { %v2945_v8 = vcombine.low %v273_v59, %v277_v60  ;;  %v481_v51 = vld [vmem:[%s3334_s24 + $0x7d0] sm:$0xff] }
  0xa4   : > { %2381 = vmatpush2.bf16.msra.mxu0 %v3135_v1  ;;  %v3081_v1 = vcombine.low %v409_v52, %v413_v53  ;;  %v485_v52 = vld [vmem:[%s3334_s24 + $0x7f0] sm:$0xff] }
  0xa5   : > { %2406 = vmatpush1.bf16.msra.mxu1 %v3199_v2  ;;  %2382 = vmatprep.subr.bf16.mxu0 %v3128_v3  ;;  %v2946_v2 = vcombine.high %v273_v59, %v277_v60  ;;  %v3074_v3 = vcombine.high %v401_v61, %v405_v62  ;;  %v349_v59 = vld [vmem:[%s3334_s24 + $0x3b0] sm:$0xff] }
  0xa6   : > { %2407 = vmatprep.subr.bf16.mxu1 %v3192_v4  ;;  %v265_v4 = vld [vmem:[%s3334_s24 + $0x110] sm:$0xff] }
  0xa7   : > { %v2937_v18 = vcombine.low %v265_v4, %v269_v5  ;;  %v473_v60 = vld [vmem:[%s3334_s24 + $0x790] sm:$0xff] }
  0xa8   : > { %2383 = vmatpush2.bf16.msra.mxu0 %v3127_v9  ;;  %v3073_v9 = vcombine.low %v401_v61, %v405_v62  ;;  %v477_v61 = vld [vmem:[%s3334_s24 + $0x7b0] sm:$0xff] }
  0xa9   : > { %2408 = vmatpush1.bf16.msra.mxu1 %v3191_v11  ;;  %2384 = vmatprep.subr.bf16.mxu0 %v3120_v12  ;;  %v2938_v11 = vcombine.high %v265_v4, %v269_v5  ;;  %v3066_v12 = vcombine.high %v393_v6, %v397_v7  ;;  %v341_v4 = vld [vmem:[%s3334_s24 + $0x370] sm:$0xff] }
  0xaa   : > { %2409 = vmatprep.subr.bf16.mxu1 %v3184_v13  ;;  %v257_v13 = vld [vmem:[%s3334_s24 + $0xd0] sm:$0xff] }
  0xab   : > { %v2929_v27 = vcombine.low %v257_v13, %v261_v15  ;;  %v465_v5 = vld [vmem:[%s3334_s24 + $0x750] sm:$0xff] }
  0xac   : > { %2385 = vmatpush2.bf16.msra.mxu0 %v3119_v19  ;;  %v3065_v19 = vcombine.low %v393_v6, %v397_v7  ;;  %v469_v6 = vld [vmem:[%s3334_s24 + $0x770] sm:$0xff] }
  0xad   : > { %2410 = vmatpush1.bf16.msra.mxu1 %v3183_v20  ;;  %2386 = vmatprep.subr.bf16.mxu0 %v3112_v21  ;;  %v2930_v20 = vcombine.high %v257_v13, %v261_v15  ;;  %v3058_v21 = vcombine.high %v385_v16, %v389_v17  ;;  %v333_v13 = vld [vmem:[%s3334_s24 + $0x330] sm:$0xff] }
  0xae   : > { %2411 = vmatprep.subr.bf16.mxu1 %v3176_v22  ;;  %v249_v22 = vld [vmem:[%s3334_s24 + $0x90] sm:$0xff] }
  0xaf   : > { %v2921_v35 = vcombine.low %v249_v22, %v253_v24  ;;  %v457_v15 = vld [vmem:[%s3334_s24 + $0x710] sm:$0xff] }
  0xb0   : > { %2387 = vmatpush2.bf16.msra.mxu0 %v3111_v28  ;;  %v3057_v28 = vcombine.low %v385_v16, %v389_v17  ;;  %v461_v16 = vld [vmem:[%s3334_s24 + $0x730] sm:$0xff] }
  0xb1   : > { %2412 = vmatpush1.bf16.msra.mxu1 %v3175_v29  ;;  %2388 = vmatprep.subr.bf16.mxu0 %v3104_v31  ;;  %v2922_v29 = vcombine.high %v249_v22, %v253_v24  ;;  %v3050_v31 = vcombine.high %v377_v25, %v381_v26  ;;  %v325_v22 = vld [vmem:[%s3334_s24 + $0x2f0] sm:$0xff] }
  0xb2   : > { %2413 = vmatprep.subr.bf16.mxu1 %v3168_v54  ;;  %v241_v54 = vld [vmem:[%s3334_s24 + $0x50] sm:$0xff] }
  0xb3   : > { %v2913_v43 = vcombine.low %v241_v54, %v245_v0  ;;  %v449_v24 = vld [vmem:[%s3334_s24 + $0x6d0] sm:$0xff] }
  0xb4   : > { %2389 = vmatpush2.bf16.msra.mxu0 %v3103_v36  ;;  %v3049_v36 = vcombine.low %v377_v25, %v381_v26  ;;  %v453_v25 = vld [vmem:[%s3334_s24 + $0x6f0] sm:$0xff] }
  0xb5   : > { %2414 = vmatpush1.bf16.msra.mxu1 %v3167_v37  ;;  %2390 = vmatprep.subr.bf16.mxu0 %v3096_v38  ;;  %v2914_v37 = vcombine.high %v241_v54, %v245_v0  ;;  %v3042_v38 = vcombine.high %v369_v33, %v373_v34  ;;  %v317_v54 = vld [vmem:[%s3334_s24 + $0x2b0] sm:$0xff] }
  0xb6   : > { %2415 = vmatprep.subr.bf16.mxu1 %v3160_v39  ;;  %v233_v39 = vld [vmem:[%s3334_s24 + $0x10] sm:$0xff] }
  0xb7   : > { %v2905_v53 = vcombine.low %v233_v39, %v237_v40  ;;  %v441_v0 = vld [vmem:[%s3334_s24 + $0x690] sm:$0xff] }
  0xb8   : > { %2391 = vmatpush2.bf16.msra.mxu0 %v3095_v44  ;;  %v3041_v44 = vcombine.low %v369_v33, %v373_v34  ;;  %v445_v33 = vld [vmem:[%s3334_s24 + $0x6b0] sm:$0xff] }
  0xb9   : > { %2416 = vmatpush1.bf16.msra.mxu1 %v3159_v47  ;;  %2442 = vmatprep.subr.bf16.mxu0 %v2962_v48  ;;  %v2906_v47 = vcombine.high %v233_v39, %v237_v40  ;;  %v3034_v48 = vcombine.high %v361_v41, %v365_v42  ;;  %v309_v39 = vld [vmem:[%s3334_s24 + $0x270] sm:$0xff] }
  0xba   : > { %2483 = vmatprep.subr.bf16.mxu1 %v3090_v49  ;;  %v353_v49 = vld [vmem:[%s3334_s24 + $0x3d0] sm:$0xff] }
  0xbb   : > { %2393 = vmatmul.mubr.bf16.vlgmr.msra.gmra.mxu0 %v3443_v32  ;;  %v3025_v62 = vcombine.low %v353_v49, %v357_v50  ;;  %v433_v40 = vld [vmem:[%s3334_s24 + $0x650] sm:$0xff] }
  0xbc   : > { %2434 = vmatmul.mubr.bf16.vlgmr.msra.gmra.mxu1 %v3405_v30  ;;  %2443 = vmatpush1.bf16.msra.mxu0 %v2961_v55  ;;  %v3033_v55 = vcombine.low %v361_v41, %v365_v42  ;;  %v437_v41 = vld [vmem:[%s3334_s24 + $0x670] sm:$0xff] }
  0xbd   : > { %2484 = vmatpush1.bf16.msra.mxu1 %v3089_v56  ;;  %2444 = vmatprep.subr.bf16.mxu0 %v2954_v57  ;;  %v3026_v56 = vcombine.high %v353_v49, %v357_v50  ;;  %v3154_v57 = vcombine.high %v481_v51, %v485_v52  ;;  %v301_v49 = vld [vmem:[%s3334_s24 + $0x230] sm:$0xff] }
  0xbe   : > { %2485 = vmatprep.subr.bf16.mxu1 %v3082_v58  ;;  %2474 = vmatprep.mubr.bf16.mxu0 %v3387_v10  ;;  %v345_v58 = vld [vmem:[%s3334_s24 + $0x390] sm:$0xff] }
  0xbf   : > { %2515 = vmatprep.mubr.bf16.mxu1 %v3394_v14  ;;  %v3017_v7 = vcombine.low %v345_v58, %v349_v59  ;;  %v425_v50 = vld [vmem:[%s3334_s24 + $0x610] sm:$0xff] }
  0xc0   : > { %2445 = vmatpush1.bf16.msra.mxu0 %v2953_v63  ;;  %v3153_v63 = vcombine.low %v481_v51, %v485_v52  ;;  %v429_v51 = vld [vmem:[%s3334_s24 + $0x630] sm:$0xff] }
  0xc1   : > { %2486 = vmatpush1.bf16.msra.mxu1 %v3081_v1  ;;  %2446 = vmatprep.subr.bf16.mxu0 %v2946_v2  ;;  %v3018_v1 = vcombine.high %v345_v58, %v349_v59  ;;  %v3146_v2 = vcombine.high %v473_v60, %v477_v61  ;;  %v549_v58 = vld [vmem:[%s3334_s24 + $0x9f0] sm:$0xff]  ;;  %v290_v59 = vld [vmem:[%s3334_s24 + $0x1d8] sm:$0xff] }
  0xc2   : > { %2487 = vmatprep.subr.bf16.mxu1 %v3074_v3  ;;  %v337_v3 = vld [vmem:[%s3334_s24 + $0x350] sm:$0xff] }
  0xc3   : > { %v3009_v17 = vcombine.low %v337_v3, %v341_v4 }
  0xc4   : > { %2447 = vmatpush1.bf16.msra.mxu0 %v2945_v8  ;;  %v3145_v8 = vcombine.low %v473_v60, %v477_v61  ;;  %v294_v60 = vld [vmem:[%s3334_s24 + $0x1f8] sm:$0xff] }
  0xc5   : > { %2488 = vmatpush1.bf16.msra.mxu1 %v3073_v9  ;;  %2448 = vmatprep.subr.bf16.mxu0 %v2938_v11  ;;  %v3010_v9 = vcombine.high %v337_v3, %v341_v4  ;;  %v3138_v11 = vcombine.high %v465_v5, %v469_v6  ;;  %v541_v3 = vld [vmem:[%s3334_s24 + $0x9b0] sm:$0xff]  ;;  %v282_v4 = vld [vmem:[%s3334_s24 + $0x198] sm:$0xff] }
  0xc6   : > { %2489 = vmatprep.subr.bf16.mxu1 %v3066_v12  ;;  %v329_v12 = vld [vmem:[%s3334_s24 + $0x310] sm:$0xff] }
  0xc7   : > { %v3001_v26 = vcombine.low %v329_v12, %v333_v13 }
  0xc8   : > { %2449 = vmatpush1.bf16.msra.mxu0 %v2937_v18  ;;  %v3137_v18 = vcombine.low %v465_v5, %v469_v6  ;;  %v286_v5 = vld [vmem:[%s3334_s24 + $0x1b8] sm:$0xff] }
  0xc9   : > { %2490 = vmatpush1.bf16.msra.mxu1 %v3065_v19  ;;  %2450 = vmatprep.subr.bf16.mxu0 %v2930_v20  ;;  %v3002_v19 = vcombine.high %v329_v12, %v333_v13  ;;  %v3130_v20 = vcombine.high %v457_v15, %v461_v16  ;;  %v533_v12 = vld [vmem:[%s3334_s24 + $0x970] sm:$0xff]  ;;  %v274_v13 = vld [vmem:[%s3334_s24 + $0x158] sm:$0xff] }
  0xca   : > { %2491 = vmatprep.subr.bf16.mxu1 %v3058_v21  ;;  %v321_v21 = vld [vmem:[%s3334_s24 + $0x2d0] sm:$0xff] }
  0xcb   : > { %v2993_v34 = vcombine.low %v321_v21, %v325_v22 }
  0xcc   : > { %2451 = vmatpush1.bf16.msra.mxu0 %v2929_v27  ;;  %v3129_v27 = vcombine.low %v457_v15, %v461_v16  ;;  %v278_v15 = vld [vmem:[%s3334_s24 + $0x178] sm:$0xff] }
  0xcd   : > { %2492 = vmatpush1.bf16.msra.mxu1 %v3057_v28  ;;  %2452 = vmatprep.subr.bf16.mxu0 %v2922_v29  ;;  %v2994_v28 = vcombine.high %v321_v21, %v325_v22  ;;  %v3122_v29 = vcombine.high %v449_v24, %v453_v25  ;;  %v525_v21 = vld [vmem:[%s3334_s24 + $0x930] sm:$0xff]  ;;  %v266_v22 = vld [vmem:[%s3334_s24 + $0x118] sm:$0xff] }
  0xce   : > { %2493 = vmatprep.subr.bf16.mxu1 %v3050_v31  ;;  %v313_v31 = vld [vmem:[%s3334_s24 + $0x290] sm:$0xff] }
  0xcf   : > { %v2985_v42 = vcombine.low %v313_v31, %v317_v54 }
  0xd0   : > { %2453 = vmatpush1.bf16.msra.mxu0 %v2921_v35  ;;  %v3121_v35 = vcombine.low %v449_v24, %v453_v25  ;;  %v270_v24 = vld [vmem:[%s3334_s24 + $0x138] sm:$0xff] }
  0xd1   : > { %2494 = vmatpush1.bf16.msra.mxu1 %v3049_v36  ;;  %2454 = vmatprep.subr.bf16.mxu0 %v2914_v37  ;;  %v2986_v36 = vcombine.high %v313_v31, %v317_v54  ;;  %v3114_v37 = vcombine.high %v441_v0, %v445_v33  ;;  %v517_v31 = vld [vmem:[%s3334_s24 + $0x8f0] sm:$0xff]  ;;  %v258_v54 = vld [vmem:[%s3334_s24 + $0xd8] sm:$0xff] }
  0xd2   : > { %2495 = vmatprep.subr.bf16.mxu1 %v3042_v38  ;;  %v305_v38 = vld [vmem:[%s3334_s24 + $0x250] sm:$0xff] }
  0xd3   : > { %v2977_v52 = vcombine.low %v305_v38, %v309_v39 }
  0xd4   : > { %2455 = vmatpush1.bf16.msra.mxu0 %v2913_v43  ;;  %v3113_v43 = vcombine.low %v441_v0, %v445_v33  ;;  %v262_v0 = vld [vmem:[%s3334_s24 + $0xf8] sm:$0xff] }
  0xd5   : > { %2496 = vmatpush1.bf16.msra.mxu1 %v3041_v44  ;;  %2456 = vmatprep.subr.bf16.mxu0 %v2906_v47  ;;  %v2978_v44 = vcombine.high %v305_v38, %v309_v39  ;;  %v3106_v47 = vcombine.high %v433_v40, %v437_v41  ;;  %v250_v38 = vld [vmem:[%s3334_s24 + $0x98] sm:$0xff] }
  0xd6   : > { %2497 = vmatprep.subr.bf16.mxu1 %v3034_v48  ;;  %v297_v48 = vld [vmem:[%s3334_s24 + $0x210] sm:$0xff]  ;;  %v254_v39 = vld [vmem:[%s3334_s24 + $0xb8] sm:$0xff] }
  0xd7   : > { %v2969_v61 = vcombine.low %v297_v48, %v301_v49 }
  0xd8   : > { %2457 = vmatpush1.bf16.msra.mxu0 %v2905_v53  ;;  %v3105_v53 = vcombine.low %v433_v40, %v437_v41  ;;  %v2931_v41 = vcombine.low %v258_v54, %v262_v0 }
  0xd9   : > { %2498 = vmatpush1.bf16.msra.mxu1 %v3033_v55  ;;  %2458 = vmatprep.subr.bf16.mxu0 %v3026_v56  ;;  %v2970_v55 = vcombine.high %v297_v48, %v301_v49  ;;  %v3098_v56 = vcombine.high %v425_v50, %v429_v51  ;;  %v242_v48 = vld [vmem:[%s3334_s24 + $0x58] sm:$0xff] }
  0xda   : > { %2499 = vmatprep.subr.bf16.mxu1 %v3154_v57  ;;  %v545_v57 = vld [vmem:[%s3334_s24 + $0x9d0] sm:$0xff]  ;;  %v246_v49 = vld [vmem:[%s3334_s24 + $0x78] sm:$0xff] }
  0xdb   : > { %v3217_v6 = vcombine.low %v545_v57, %v549_v58 }
  0xdc   : > { %2459 = vmatpush2.bf16.msra.mxu0 %v3025_v62  ;;  %v3097_v62 = vcombine.low %v425_v50, %v429_v51  ;;  %v2923_v51 = vcombine.low %v250_v38, %v254_v39 }
  0xdd   : > { %2500 = vmatpush2.bf16.msra.mxu1 %v3153_v63  ;;  %2460 = vmatprep.subr.bf16.mxu0 %v3018_v1  ;;  %v3218_v63 = vcombine.high %v545_v57, %v549_v58  ;;  %v2964_v1 = vcombine.high %v290_v59, %v294_v60  ;;  %v234_v57 = vld [vmem:[%s3334_s24 + $0x18] sm:$0xff] }
  0xde   : > { %2501 = vmatprep.subr.bf16.mxu1 %v3146_v2  ;;  %v537_v2 = vld [vmem:[%s3334_s24 + $0x990] sm:$0xff]  ;;  %v238_v58 = vld [vmem:[%s3334_s24 + $0x38] sm:$0xff] }
  0xdf   : > { %v3209_v16 = vcombine.low %v537_v2, %v541_v3 }
  0xe0   : > { %2461 = vmatpush2.bf16.msra.mxu0 %v3017_v7  ;;  %v2963_v7 = vcombine.low %v290_v59, %v294_v60  ;;  %v2915_v60 = vcombine.low %v242_v48, %v246_v49 }
  0xe1   : > { %2502 = vmatpush2.bf16.msra.mxu1 %v3145_v8  ;;  %2462 = vmatprep.subr.bf16.mxu0 %v3010_v9  ;;  %v3210_v8 = vcombine.high %v537_v2, %v541_v3  ;;  %v2956_v9 = vcombine.high %v282_v4, %v286_v5  ;;  %v354_v2 = vld [vmem:[%s3334_s24 + $0x3d8] sm:$0xff] }
  0xe2   : > { %2503 = vmatprep.subr.bf16.mxu1 %v3138_v11  ;;  %v529_v11 = vld [vmem:[%s3334_s24 + $0x950] sm:$0xff]  ;;  %v358_v3 = vld [vmem:[%s3334_s24 + $0x3f8] sm:$0xff] }
  0xe3   : > { %v3201_v25 = vcombine.low %v529_v11, %v533_v12 }
  0xe4   : > { %2463 = vmatpush2.bf16.msra.mxu0 %v3009_v17  ;;  %v2955_v17 = vcombine.low %v282_v4, %v286_v5  ;;  %v2907_v5 = vcombine.low %v234_v57, %v238_v58 }
  0xe5   : > { %2504 = vmatpush2.bf16.msra.mxu1 %v3137_v18  ;;  %2464 = vmatprep.subr.bf16.mxu0 %v3002_v19  ;;  %v3202_v18 = vcombine.high %v529_v11, %v533_v12  ;;  %v2948_v19 = vcombine.high %v274_v13, %v278_v15  ;;  %v346_v11 = vld [vmem:[%s3334_s24 + $0x398] sm:$0xff] }
  0xe6   : > { %2505 = vmatprep.subr.bf16.mxu1 %v3130_v20  ;;  %v521_v20 = vld [vmem:[%s3334_s24 + $0x910] sm:$0xff]  ;;  %v350_v12 = vld [vmem:[%s3334_s24 + $0x3b8] sm:$0xff] }
  0xe7   : > { %v3193_v33 = vcombine.low %v521_v20, %v525_v21 }
  0xe8   : > { %2465 = vmatpush2.bf16.msra.mxu0 %v3001_v26  ;;  %v2947_v26 = vcombine.low %v274_v13, %v278_v15  ;;  %v3027_v15 = vcombine.low %v354_v2, %v358_v3 }
  0xe9   : > { %2506 = vmatpush2.bf16.msra.mxu1 %v3129_v27  ;;  %2466 = vmatprep.subr.bf16.mxu0 %v2994_v28  ;;  %v3194_v27 = vcombine.high %v521_v20, %v525_v21  ;;  %v2940_v28 = vcombine.high %v266_v22, %v270_v24  ;;  %v338_v21 = vld [vmem:[%s3334_s24 + $0x358] sm:$0xff] }
  0xea   : > { %2507 = vmatprep.subr.bf16.mxu1 %v3122_v29  ;;  %v513_v29 = vld [vmem:[%s3334_s24 + $0x8d0] sm:$0xff] }
  0xeb   : > { %v3185_v40 = vcombine.low %v513_v29, %v517_v31 }
  0xec   : > { %2467 = vmatpush2.bf16.msra.mxu0 %v2993_v34  ;;  %v3186_v34 = vcombine.high %v513_v29, %v517_v31 }
  0xed   : > { %2508 = vmatpush2.bf16.msra.mxu1 %v3121_v35  ;;  %2468 = vmatprep.subr.bf16.mxu0 %v2986_v36  ;;  %v2932_v35 = vcombine.high %v258_v54, %v262_v0  ;;  %v505_v36 = vld [vmem:[%s3334_s24 + $0x890] sm:$0xff]  ;;  %v394_v0 = vld [vmem:[%s3334_s24 + $0x518] sm:$0xff] }
  0xee   : > { %2509 = vmatprep.subr.bf16.mxu1 %v3114_v37  ;;  %v509_v37 = vld [vmem:[%s3334_s24 + $0x8b0] sm:$0xff] }
  0xef   : > { %v3177_v50 = vcombine.low %v505_v36, %v509_v37 }
  0xf0   : > { %2469 = vmatpush2.bf16.msra.mxu0 %v2985_v42  ;;  %v3178_v42 = vcombine.high %v505_v36, %v509_v37 }
  0xf1   : > { %2510 = vmatpush2.bf16.msra.mxu1 %v3113_v43  ;;  %2470 = vmatprep.subr.bf16.mxu0 %v2978_v44  ;;  %v2924_v43 = vcombine.high %v250_v38, %v254_v39  ;;  %v497_v44 = vld [vmem:[%s3334_s24 + $0x850] sm:$0xff] }
  0xf2   : > { %2511 = vmatprep.subr.bf16.mxu1 %v3106_v47  ;;  %v501_v47 = vld [vmem:[%s3334_s24 + $0x870] sm:$0xff] }
  0xf3   : > { %v3169_v59 = vcombine.low %v497_v44, %v501_v47 }
  0xf4   : > { %2471 = vmatpush2.bf16.msra.mxu0 %v2977_v52  ;;  %v3170_v52 = vcombine.high %v497_v44, %v501_v47  ;;  %v390_v44 = vld [vmem:[%s3334_s24 + $0x4f8] sm:$0xff] }
  0xf5   : > { %2512 = vmatpush2.bf16.msra.mxu1 %v3105_v53  ;;  %2472 = vmatprep.subr.bf16.mxu0 %v2970_v55  ;;  %v2916_v53 = vcombine.high %v242_v48, %v246_v49  ;;  %v489_v55 = vld [vmem:[%s3334_s24 + $0x810] sm:$0xff]  ;;  %v322_v47 = vld [vmem:[%s3334_s24 + $0x2d8] sm:$0xff] }
  0xf6   : > { %2513 = vmatprep.subr.bf16.mxu1 %v3098_v56  ;;  %v493_v56 = vld [vmem:[%s3334_s24 + $0x830] sm:$0xff]  ;;  %v326_v48 = vld [vmem:[%s3334_s24 + $0x2f8] sm:$0xff] }
  0xf7   : > { %v3161_v4 = vcombine.low %v489_v55, %v493_v56 }
  0xf8   : > { %2473 = vmatpush2.bf16.msra.mxu0 %v2969_v61  ;;  %v3162_v61 = vcombine.high %v489_v55, %v493_v56  ;;  %v382_v55 = vld [vmem:[%s3334_s24 + $0x4b8] sm:$0xff] }
  0xf9   : > { %2514 = vmatpush2.bf16.msra.mxu1 %v3097_v62  ;;  %2524 = vmatprep.subr.bf16.mxu0 %v3218_v63  ;;  %v2908_v62 = vcombine.high %v234_v57, %v238_v58  ;;  %v418_v63 = vld [vmem:[%s3334_s24 + $0x5d8] sm:$0xff] }
  0xfa   : > { %2565 = vmatprep.subr.bf16.mxu1 %v2964_v1  ;;  %v422_v1 = vld [vmem:[%s3334_s24 + $0x5f8] sm:$0xff] }
  0xfb   : > { %2475 = vmatmul.mubr.bf16.vlgmr.msra.gmra.mxu0 %v3435_v23  ;;  %v3091_v13 = vcombine.low %v418_v63, %v422_v1  ;;  %v314_v56 = vld [vmem:[%s3334_s24 + $0x298] sm:$0xff] }
  0xfc   : > { %2516 = vmatmul.mubr.bf16.vlgmr.msra.gmra.mxu1 %v3443_v32  ;;  %2525 = vmatpush1.bf16.msra.mxu0 %v3217_v6  ;;  %v3092_v6 = vcombine.high %v418_v63, %v422_v1  ;;  %v318_v57 = vld [vmem:[%s3334_s24 + $0x2b8] sm:$0xff] }
  0xfd   : > { %2566 = vmatpush1.bf16.msra.mxu1 %v2963_v7  ;;  %2526 = vmatprep.subr.bf16.mxu0 %v3210_v8  ;;  %v3028_v7 = vcombine.high %v354_v2, %v358_v3  ;;  %v410_v8 = vld [vmem:[%s3334_s24 + $0x598] sm:$0xff] }
  0xfe   : > { %2567 = vmatprep.subr.bf16.mxu1 %v2956_v9  ;;  %2556 = vmatprep.mubr.bf16.mxu0 %v3281_v46  ;;  %v414_v9 = vld [vmem:[%s3334_s24 + $0x5b8] sm:$0xff] }
  0xff   : > { %2597 = vmatprep.mubr.bf16.mxu1 %v3387_v10  ;;  %v2939_v10 = vcombine.low %v266_v22, %v270_v24  ;;  %v342_v22 = vld [vmem:[%s3334_s24 + $0x378] sm:$0xff] }
 0x100   : > { %2527 = vmatpush1.bf16.msra.mxu0 %v3209_v16  ;;  %v3084_v16 = vcombine.high %v410_v8, %v414_v9  ;;  %v3012_v54 = vcombine.high %v338_v21, %v342_v22  ;;  %v3011_v39 = vcombine.low %v338_v21, %v342_v22  ;;  %v374_v63 = vld [vmem:[%s3334_s24 + $0x478] sm:$0xff] }
 0x101   : > { %2568 = vmatpush1.bf16.msra.mxu1 %v2955_v17  ;;  %2528 = vmatprep.subr.bf16.mxu0 %v3202_v18  ;;  %v3020_v17 = vcombine.high %v346_v11, %v350_v12  ;;  %v402_v18 = vld [vmem:[%s3334_s24 + $0x558] sm:$0xff] }
 0x102   : > { %2569 = vmatprep.subr.bf16.mxu1 %v2948_v19  ;;  %v406_v19 = vld [vmem:[%s3334_s24 + $0x578] sm:$0xff] }
 0x103   : > { %v3076_v29 = vcombine.high %v402_v18, %v406_v19  ;;  %v3075_v37 = vcombine.low %v402_v18, %v406_v19  ;;  %v306_v1 = vld [vmem:[%s3334_s24 + $0x258] sm:$0xff] }
 0x104   : > { %2529 = vmatpush1.bf16.msra.mxu0 %v3201_v25  ;;  %v3083_v25 = vcombine.low %v410_v8, %v414_v9  ;;  %v310_v2 = vld [vmem:[%s3334_s24 + $0x278] sm:$0xff] }
 0x105   : > { %2570 = vmatpush1.bf16.msra.mxu1 %v2947_v26  ;;  %2530 = vmatprep.subr.bf16.mxu0 %v3194_v27  ;;  %v366_v8 = vld [vmem:[%s3334_s24 + $0x438] sm:$0xff] }
 0x106   : > { %2571 = vmatprep.subr.bf16.mxu1 %v2940_v28  ;;  %v3019_v28 = vcombine.low %v346_v11, %v350_v12  ;;  %v298_v9 = vld [vmem:[%s3334_s24 + $0x218] sm:$0xff] }
 0x107   : > { %v302_v11 = vld [vmem:[%s3334_s24 + $0x238] sm:$0xff] }
 0x108   : > { %2531 = vmatpush1.bf16.msra.mxu0 %v3193_v33  ;;  %v398_v33 = vld [vmem:[%s3334_s24 + $0x538] sm:$0xff]  ;;  %v2971_v22 = vcombine.low %v298_v9, %v302_v11 }
 0x109   : > { %2572 = vmatpush1.bf16.msra.mxu1 %v2939_v10  ;;  %2532 = vmatprep.subr.bf16.mxu0 %v3186_v34  ;;  %v3067_v49 = vcombine.low %v394_v0, %v398_v33  ;;  %v486_v18 = vld [vmem:[%s3334_s24 + $0x7f8] sm:$0xff] }
 0x10a   : > { %2573 = vmatprep.subr.bf16.mxu1 %v2932_v35  ;;  %v330_v35 = vld [vmem:[%s3334_s24 + $0x318] sm:$0xff] }
 0x10b   : > { %v546_v19 = vld [vmem:[%s3334_s24 + $0x9d8] sm:$0xff] }
 0x10c   : > { %2533 = vmatpush1.bf16.msra.mxu0 %v3185_v40  ;;  %v3068_v40 = vcombine.high %v394_v0, %v398_v33 }
 0x10d   : > { %2574 = vmatpush1.bf16.msra.mxu1 %v2931_v41  ;;  %2534 = vmatprep.subr.bf16.mxu0 %v3178_v42 }
 0x10e   : > { %2575 = vmatprep.subr.bf16.mxu1 %v2924_v43  ;;  %v386_v43 = vld [vmem:[%s3334_s24 + $0x4d8] sm:$0xff] }
 0x10f   : > { %v3059_v58 = vcombine.low %v386_v43, %v390_v44 }
 0x110   : > { %2535 = vmatpush1.bf16.msra.mxu0 %v3177_v50 }
 0x111   : > { %2576 = vmatpush1.bf16.msra.mxu1 %v2923_v51  ;;  %2536 = vmatprep.subr.bf16.mxu0 %v3170_v52  ;;  %v3060_v51 = vcombine.high %v386_v43, %v390_v44  ;;  %v2996_v52 = vcombine.high %v322_v47, %v326_v48 }
 0x112   : > { %2577 = vmatprep.subr.bf16.mxu1 %v2916_v53  ;;  %v378_v53 = vld [vmem:[%s3334_s24 + $0x498] sm:$0xff] }
 0x113   : > { %v3051_v3 = vcombine.low %v378_v53, %v382_v55 }
 0x114   : > { %2537 = vmatpush1.bf16.msra.mxu0 %v3169_v59  ;;  %v2995_v59 = vcombine.low %v322_v47, %v326_v48  ;;  %v458_v48 = vld [vmem:[%s3334_s24 + $0x718] sm:$0xff] }
 0x115   : > { %2578 = vmatpush1.bf16.msra.mxu1 %v2915_v60  ;;  %2538 = vmatprep.subr.bf16.mxu0 %v3162_v61  ;;  %v3052_v60 = vcombine.high %v378_v53, %v382_v55  ;;  %v2988_v61 = vcombine.high %v314_v56, %v318_v57 }
 0x116   : > { %2579 = vmatprep.subr.bf16.mxu1 %v2908_v62  ;;  %v370_v62 = vld [vmem:[%s3334_s24 + $0x458] sm:$0xff] }
 0x117   : > { %v3043_v12 = vcombine.low %v370_v62, %v374_v63 }
 0x118   : > { %2539 = vmatpush1.bf16.msra.mxu0 %v3161_v4  ;;  %v2987_v4 = vcombine.low %v314_v56, %v318_v57  ;;  %v450_v56 = vld [vmem:[%s3334_s24 + $0x6d8] sm:$0xff] }
 0x119   : > { %2580 = vmatpush1.bf16.msra.mxu1 %v2907_v5  ;;  %2606 = vmatprep.subr.bf16.mxu0 %v3092_v6  ;;  %v3044_v5 = vcombine.high %v370_v62, %v374_v63  ;;  %v2980_v6 = vcombine.high %v306_v1, %v310_v2  ;;  %v454_v57 = vld [vmem:[%s3334_s24 + $0x6f8] sm:$0xff] }
 0x11a   : > { %2581 = vmatprep.subr.bf16.mxu1 %v3028_v7  ;;  %v362_v7 = vld [vmem:[%s3334_s24 + $0x418] sm:$0xff]  ;;  %v3124_v62 = vcombine.high %v450_v56, %v454_v57 }
 0x11b   : > { %v2230_v20 = vpop.f32.mrf.mxu0  ;;  %2557 = vmatmul.mubr.bf16.vlgmr.msra.gmra.mxu0 %v3405_v30  ;;  %v3035_v21 = vcombine.low %v362_v7, %v366_v8 }
 0x11c   : > { %v2271_v24 = vpop.f32.mrf.mxu1  ;;  %2607 = vmatpush1.bf16.msra.mxu0 %v3091_v13  ;;  %2638 = vmatprep.mubr.bf16.mxu0 %v3394_v14  ;;  %v334_v14 = vld [vmem:[%s3334_s24 + $0x338] sm:$0xff]  ;;  %v2979_v13 = vcombine.low %v306_v1, %v310_v2 }
 0x11d   : > { %v3659_v26 = vadd.f32 %v2271_v24, %v2230_v20  ;;  %2582 = vmatpush2.bf16.msra.mxu1 %v3027_v15  ;;  %v2232_v27 = vpop.f32.mrf.mxu0  ;;  %2608 = vmatprep.subr.bf16.mxu0 %v3084_v16  ;;  %v3004_v42 = vcombine.high %v330_v35, %v334_v14  ;;  %v3003_v50 = vcombine.low %v330_v35, %v334_v14  ;;  %v550_v20 = vld [vmem:[%s3334_s24 + $0x9f8] sm:$0xff] }
 0x11e   : > { %v2273_v31 = vpop.f32.mrf.mxu1  ;;  %2583 = vmatprep.subr.bf16.mxu1 %v3020_v17  ;;  %v3036_v15 = vcombine.high %v362_v7, %v366_v8  ;;  %v2972_v16 = vcombine.high %v298_v9, %v302_v11  ;;  %v482_v17 = vld [vmem:[%s3334_s24 + $0x7d8] sm:$0xff]  ;;  %v3219_v0 = vcombine.low %v546_v19, %v550_v20 }
 0x11f   : > { %v3663_v10 = vadd.f32 %v2273_v31, %v2232_v27  ;;  %v2234_v34 = vpop.f32.mrf.mxu0  ;;  %v3156_v24 = vcombine.high %v482_v17, %v486_v18  ;;  %v474_v27 = vld [vmem:[%s3334_s24 + $0x798] sm:$0xff] }
 0x120   : > { %v2275_v36 = vpop.f32.mrf.mxu1  ;;  %2609 = vmatpush1.bf16.msra.mxu0 %v3083_v25  ;;  %v3220_v25 = vcombine.high %v546_v19, %v550_v20  ;;  %v542_v31 = vld [vmem:[%s3334_s24 + $0x9b8] sm:$0xff] }
 0x121   : > { %2584 = vmatpush2.bf16.msra.mxu1 %v3019_v28  ;;  %v2235_v38 = vpop.f32.mrf.mxu0  ;;  %2610 = vmatprep.subr.bf16.mxu0 %v3076_v29  ;;  %v478_v28 = vld [vmem:[%s3334_s24 + $0x7b8] sm:$0xff] }
 0x122   : > { %v2276_v41 = vpop.f32.mrf.mxu1  ;;  %2585 = vmatprep.subr.bf16.mxu1 %v3012_v54  ;;  %v538_v29 = vld [vmem:[%s3334_s24 + $0x998] sm:$0xff]  ;;  %v3155_v54 = vcombine.low %v482_v17, %v486_v18  ;;  %v3148_v33 = vcombine.high %v474_v27, %v478_v28 }
 0x123   : > { %v3212_v34 = vcombine.high %v538_v29, %v542_v31  ;;  %v466_v35 = vld [vmem:[%s3334_s24 + $0x758] sm:$0xff] }
 0x124   : > { %2611 = vmatpush1.bf16.msra.mxu0 %v3075_v37  ;;  %v470_v14 = vld [vmem:[%s3334_s24 + $0x778] sm:$0xff] }
 0x125   : > { %2586 = vmatpush2.bf16.msra.mxu1 %v3011_v39  ;;  %2612 = vmatprep.subr.bf16.mxu0 %v3068_v40  ;;  %v530_v37 = vld [vmem:[%s3334_s24 + $0x958] sm:$0xff]  ;;  %v3147_v40 = vcombine.low %v474_v27, %v478_v28  ;;  %v3140_v43 = vcombine.high %v466_v35, %v470_v14 }
 0x126   : > { %2587 = vmatprep.subr.bf16.mxu1 %v3004_v42  ;;  %v534_v38 = vld [vmem:[%s3334_s24 + $0x978] sm:$0xff]  ;;  %v3211_v42 = vcombine.low %v538_v29, %v542_v31 }
 0x127   : > { %v3204_v47 = vcombine.high %v530_v37, %v534_v38  ;;  %v3203_v53 = vcombine.low %v530_v37, %v534_v38  ;;  %v442_v1 = vld [vmem:[%s3334_s24 + $0x698] sm:$0xff] }
 0x128   : > { %2613 = vmatpush1.bf16.msra.mxu0 %v3067_v49  ;;  %v522_v49 = vld [vmem:[%s3334_s24 + $0x918] sm:$0xff] }
 0x129   : > { %2588 = vmatpush2.bf16.msra.mxu1 %v3003_v50  ;;  %2614 = vmatprep.subr.bf16.mxu0 %v3060_v51  ;;  %v526_v50 = vld [vmem:[%s3334_s24 + $0x938] sm:$0xff] }
 0x12a   : > { %2589 = vmatprep.subr.bf16.mxu1 %v2996_v52  ;;  %v3139_v52 = vcombine.low %v466_v35, %v470_v14  ;;  %v446_v2 = vld [vmem:[%s3334_s24 + $0x6b8] sm:$0xff]  ;;  %v3282_v35 = vmov 1983009808  }
 0x12b   : > { %v3116_v7 = vcombine.high %v442_v1, %v446_v2  ;;  %v434_v9 = vld [vmem:[%s3334_s24 + $0x658] sm:$0xff]  ;;  %v2699_v14 = vunpack.c.l.s4 %v3282_v35 }
 0x12c   : > { %2615 = vmatpush1.bf16.msra.mxu0 %v3059_v58  ;;  %v514_v58 = vld [vmem:[%s3334_s24 + $0x8d8] sm:$0xff] }
 0x12d   : > { %2590 = vmatpush2.bf16.msra.mxu1 %v2995_v59  ;;  %2616 = vmatprep.subr.bf16.mxu0 %v3052_v60  ;;  %v518_v59 = vld [vmem:[%s3334_s24 + $0x8f8] sm:$0xff]  ;;  %v2700_v37 = vunpack.c.0.s8 %v2699_v14 }
 0x12e   : > { %2591 = vmatprep.subr.bf16.mxu1 %v2988_v61  ;;  %v3195_v61 = vcombine.low %v522_v49, %v526_v50  ;;  %v3188_v63 = vcombine.high %v514_v58, %v518_v59  ;;  %v438_v11 = vld [vmem:[%s3334_s24 + $0x678] sm:$0xff] }
 0x12f   : > { %v3108_v17 = vcombine.high %v434_v9, %v438_v11  ;;  %v426_v19 = vld [vmem:[%s3334_s24 + $0x618] sm:$0xff] }
 0x130   : > { %2617 = vmatpush1.bf16.msra.mxu0 %v3051_v3  ;;  %v506_v3 = vld [vmem:[%s3334_s24 + $0x898] sm:$0xff] }
 0x131   : > { %2592 = vmatpush2.bf16.msra.mxu1 %v2987_v4  ;;  %2618 = vmatprep.subr.bf16.mxu0 %v3044_v5  ;;  %v510_v4 = vld [vmem:[%s3334_s24 + $0x8b8] sm:$0xff]  ;;  %v3123_v5 = vcombine.low %v450_v56, %v454_v57 }
 0x132   : > { %2593 = vmatprep.subr.bf16.mxu1 %v2980_v6  ;;  %v3187_v6 = vcombine.low %v514_v58, %v518_v59  ;;  %v3180_v8 = vcombine.high %v506_v3, %v510_v4  ;;  %v430_v20 = vld [vmem:[%s3334_s24 + $0x638] sm:$0xff] }
 0x133   : > { %v3100_v27 = vcombine.high %v426_v19, %v430_v20  ;;  %v3099_v29 = vcombine.low %v426_v19, %v430_v20 }
 0x134   : > { %2619 = vmatpush1.bf16.msra.mxu0 %v3043_v12  ;;  %v498_v12 = vld [vmem:[%s3334_s24 + $0x858] sm:$0xff] }
 0x135   : > { %2594 = vmatpush2.bf16.msra.mxu1 %v2979_v13  ;;  %2620 = vmatprep.subr.bf16.mxu0 %v3036_v15  ;;  %v502_v13 = vld [vmem:[%s3334_s24 + $0x878] sm:$0xff]  ;;  %v3115_v15 = vcombine.low %v442_v1, %v446_v2 }
 0x136   : > { %2595 = vmatprep.subr.bf16.mxu1 %v2972_v16  ;;  %v3179_v16 = vcombine.low %v506_v3, %v510_v4  ;;  %v3172_v18 = vcombine.high %v498_v12, %v502_v13 }
 0x138   : > { %2621 = vmatpush1.bf16.msra.mxu0 %v3035_v21  ;;  %v490_v21 = vld [vmem:[%s3334_s24 + $0x818] sm:$0xff] }
 0x139   : > { %2596 = vmatpush2.bf16.msra.mxu1 %v2971_v22  ;;  %2622 = vmatprep.subr.bf16.mxu0 %v3156_v24  ;;  %v494_v22 = vld [vmem:[%s3334_s24 + $0x838] sm:$0xff]  ;;  %v3107_v24 = vcombine.low %v434_v9, %v438_v11 }
 0x13a   : > { %2647 = vmatprep.subr.bf16.mxu1 %v3220_v25  ;;  %v3171_v25 = vcombine.low %v498_v12, %v502_v13  ;;  %v3164_v28 = vcombine.high %v490_v21, %v494_v22  ;;  %v3163_v31 = vcombine.low %v490_v21, %v494_v22 }
 0x13b   : > { %v2312_v36 = vpop.f32.mrf.mxu0 }
 0x13c   : > { %v3696_v39 = vadd.f32 %v2312_v36, %v3659_v26  ;;  %2598 = vmatmul.mubr.bf16.vlgmr.msra.gmra.mxu1 %v3435_v23  ;;  %2623 = vmatpush2.bf16.msra.mxu0 %v3155_v54  ;;  %v462_v26 = vld [vmem:[%s3334_s24 + $0x738] sm:$0xff] }
 0x13d   : > { %2648 = vmatpush1.bf16.msra.mxu1 %v3219_v0  ;;  %v2314_v41 = vpop.f32.mrf.mxu0  ;;  %2624 = vmatprep.subr.bf16.mxu0 %v3148_v33  ;;  %v3132_v55 = vcombine.high %v458_v48, %v462_v26  ;;  %v3131_v60 = vcombine.low %v458_v48, %v462_v26  ;;  %v3728_v48 = vsub.s32 %v2700_v37, %v3359_v45 }
 0x13e   : > { %v3700_v44 = vadd.f32 %v2314_v41, %v3663_v10  ;;  %2649 = vmatprep.subr.bf16.mxu1 %v3212_v34  ;;  %2679 = vmatprep.mubr.bf16.mxu1 %v3281_v46  ;;  %v3196_v46 = vcombine.high %v522_v49, %v526_v50 }
 0x13f   : > { %v2316_v23 = vpop.f32.mrf.mxu0 }
 0x140   : > { %v2696_v51 = vcombine.low %v3696_v39, %v3700_v44  ;;  %2625 = vmatpush2.bf16.msra.mxu0 %v3147_v40 }
 0x141   : > { %2650 = vmatpush1.bf16.msra.mxu1 %v3211_v42  ;;  %v2317_v10 = vpop.f32.mrf.mxu0  ;;  %2626 = vmatprep.subr.bf16.mxu0 %v3140_v43 }
 0x142   : > { %2651 = vmatprep.subr.bf16.mxu1 %v3204_v47 }
 0x144   : > { %2627 = vmatpush2.bf16.msra.mxu0 %v3139_v52  ;;  %v2704_v52 = vrot.slane %v2696_v51, %v3728_v48 }
 0x145   : > { %2652 = vmatpush1.bf16.msra.mxu1 %v3203_v53  ;;  %2628 = vmatprep.subr.bf16.mxu0 %v3132_v55  ;;  %v228_v53 = vld [vmem:[#allocation2] sm:$0xff] }
 0x146   : > { %2653 = vmatprep.subr.bf16.mxu1 %v3196_v46 }
 0x148   : > { %2629 = vmatpush2.bf16.msra.mxu0 %v3131_v60 }
 0x149   : > { %2654 = vmatpush1.bf16.msra.mxu1 %v3195_v61  ;;  %2630 = vmatprep.subr.bf16.mxu0 %v3124_v62 }
 0x14a   : > { %2655 = vmatprep.subr.bf16.mxu1 %v3188_v63 }
 0x14c   : > { %2631 = vmatpush2.bf16.msra.mxu0 %v3123_v5 }
 0x14d   : > { %2656 = vmatpush1.bf16.msra.mxu1 %v3187_v6  ;;  %2632 = vmatprep.subr.bf16.mxu0 %v3116_v7 }
 0x14e   : > { %2657 = vmatprep.subr.bf16.mxu1 %v3180_v8 }
 0x150   : > { %2633 = vmatpush2.bf16.msra.mxu0 %v3115_v15 }
 0x151   : > { %2658 = vmatpush1.bf16.msra.mxu1 %v3179_v16  ;;  %2634 = vmatprep.subr.bf16.mxu0 %v3108_v17 }
 0x152   : > { %2659 = vmatprep.subr.bf16.mxu1 %v3172_v18 }
 0x154   : > { %2635 = vmatpush2.bf16.msra.mxu0 %v3107_v24 }
 0x155   : > { %2660 = vmatpush1.bf16.msra.mxu1 %v3171_v25  ;;  %2636 = vmatprep.subr.bf16.mxu0 %v3100_v27 }
 0x156   : > { %2661 = vmatprep.subr.bf16.mxu1 %v3164_v28 }
 0x158   : > { %2637 = vmatpush2.bf16.msra.mxu0 %v3099_v29 }
 0x159   : > { %2662 = vmatpush1.bf16.msra.mxu1 %v3163_v31  ;;  %v229_v31 = vld [vmem:[#allocation2 + $0x8] sm:$0xff] }
 0x15b   : > { %2639 = vmatmul.mubr.bf16.vlgmr.msra.gmra.mxu0 %v3443_v32 }
 0x15c   : > { %v2353_v54 = vpop.f32.mrf.mxu1  ;;  %2680 = vmatmul.mubr.bf16.vlgmr.msra.gmra.mxu1 %v3405_v30 }
 0x15e   : > { %v2355_v0 = vpop.f32.mrf.mxu1 }
 0x160   : > { %v2357_v33 = vpop.f32.mrf.mxu1 }
 0x162   : > { %v2358_v34 = vpop.f32.mrf.mxu1 }
 0x17b   : > { %v2394_v36 = vpop.f32.mrf.mxu0 }
 0x17c   : > { %v2395_v38 = vadd.f32 %v2394_v36, %v2353_v54  ;;  %v2435_v40 = vpop.f32.mrf.mxu1 }
 0x17d   : > { %v2396_v41 = vpop.f32.mrf.mxu0 }
 0x17e   : > { %v2397_v42 = vadd.f32 %v2396_v41, %v2355_v0  ;;  %v2437_v43 = vpop.f32.mrf.mxu1  ;;  %v2436_v32 = vadd.f32 %v2435_v40, %v2395_v38 }
 0x17f   : > { %v2398_v47 = vpop.f32.mrf.mxu0 }
 0x180   : > { %v2438_v26 = vadd.f32 %v2437_v43, %v2397_v42  ;;  %v2439_v23 = vpop.f32.mrf.mxu1 }
 0x181   : > { %v2399_v30 = vpop.f32.mrf.mxu0 }
 0x182   : > { %v2697_v49 = vcombine.low %v2436_v32, %v2438_v26  ;;  %v2440_v50 = vpop.f32.mrf.mxu1 }
 0x184   : > { %v2711_v10 = vrot.slane %v2697_v49, %v3728_v48 }
 0x186   : > { %v2712_v55 = vcombine.low %v2704_v52, %v2711_v10 }
 0x188   : > { %v2732_v46 = vadd.f32 %v2712_v55, %v228_v53 }
 0x18a   : > { %2734 = vst [vmem:[#allocation2] sm:$0xff] %v2732_v46 }
 0x1bb   : > { %v2476_v56 = vpop.f32.mrf.mxu0 }
 0x1bc   : > { %v2517_v57 = vpop.f32.mrf.mxu1 }
 0x1bd   : > { %v2518_v58 = vadd.f32 %v2517_v57, %v2476_v56  ;;  %v2478_v59 = vpop.f32.mrf.mxu0 }
 0x1be   : > { %v2519_v60 = vpop.f32.mrf.mxu1 }
 0x1bf   : > { %v2520_v61 = vadd.f32 %v2519_v60, %v2478_v59  ;;  %v2480_v62 = vpop.f32.mrf.mxu0 }
 0x1c0   : > { %v2521_v63 = vpop.f32.mrf.mxu1 }
 0x1c1   : > { %v2481_v1 = vpop.f32.mrf.mxu0 }
 0x1c2   : > { %v2522_v2 = vpop.f32.mrf.mxu1 }
 0x1db   : > { %v2558_v3 = vpop.f32.mrf.mxu0 }
 0x1dc   : > { %v2559_v4 = vadd.f32 %v2558_v3, %v2518_v58 }
 0x1dd   : > { %v2560_v39 = vpop.f32.mrf.mxu0 }
 0x1de   : > { %v2561_v44 = vadd.f32 %v2560_v39, %v2520_v61 }
 0x1df   : > { %v2562_v51 = vpop.f32.mrf.mxu0 }
 0x1e0   : > { %v2713_v5 = vcombine.low %v2559_v4, %v2561_v44 }
 0x1e1   : > { %v2563_v6 = vpop.f32.mrf.mxu0 }
 0x1e2   : > { %v2721_v28 = vrot.slane %v2713_v5, %v3728_v48 }
 0x1fc   : > { %v2599_v7 = vpop.f32.mrf.mxu1 }
 0x1fe   : > { %v2601_v8 = vpop.f32.mrf.mxu1 }
 0x200   : > { %v2603_v9 = vpop.f32.mrf.mxu1 }
 0x202   : > { %v2604_v11 = vpop.f32.mrf.mxu1 }
 0x21b   : > { %v2640_v12 = vpop.f32.mrf.mxu0 }
 0x21c   : > { %v2641_v13 = vadd.f32 %v2640_v12, %v2599_v7  ;;  %v2681_v15 = vpop.f32.mrf.mxu1 }
 0x21d   : > { %v2642_v16 = vpop.f32.mrf.mxu0 }
 0x21e   : > { %v2643_v17 = vadd.f32 %v2642_v16, %v2601_v8  ;;  %v2683_v18 = vpop.f32.mrf.mxu1  ;;  %v2682_v20 = vadd.f32 %v2681_v15, %v2641_v13 }
 0x21f   : > { %v2644_v19 = vpop.f32.mrf.mxu0 }
 0x220   : > { %v2684_v21 = vadd.f32 %v2683_v18, %v2643_v17  ;;  %v2685_v22 = vpop.f32.mrf.mxu1 }
 0x221   : > { %v2645_v24 = vpop.f32.mrf.mxu0 }
 0x222   : > { %v2714_v25 = vcombine.low %v2682_v20, %v2684_v21  ;;  %v2686_v27 = vpop.f32.mrf.mxu1 }
 0x224   : > { %v2728_v29 = vrot.slane %v2714_v25, %v3728_v48 }
 0x226   : > { %v2729_v54 = vcombine.low %v2721_v28, %v2728_v29  ;;  %2739 = sbr.rel (%p3221_p7) target bundleno = 571 (0x23b), region = 40 }
 0x228   : > { %v2733_v0 = vadd.f32 %v2729_v54, %v229_v31 }
 0x22a   : > { %2735 = vst [vmem:[#allocation2 + $0x8] sm:$0xff] %v2733_v0 }
 0x22b   : > { %v2742_v33 = vld [vmem:[%s3770_s2] sm:$0xff]  ;;  %v2746_v34 = vsub.s32 0, %v3359_v45  ;;  %v2750_v35 = vsub.s32 1, %v3359_v45  ;;  %v2754_v14 = vsub.s32 2, %v3359_v45  ;;  %v2758_v36 = vsub.s32 3, %v3359_v45 }
 0x22c   : > { %v2762_v37 = vsub.s32 4, %v3359_v45  ;;  %v2766_v38 = vsub.s32 5, %v3359_v45  ;;  %v2770_v40 = vsub.s32 6, %v3359_v45  ;;  %v2774_v41 = vsub.s32 7, %v3359_v45  ;;  %v2740_v56 = vld [vmem:[#allocation2] sm:$0xff] }
 0x22d   : > { %v2747_v42 = vrot.slane %v2742_v33, %v2746_v34  ;;  %v2751_v43 = vrot.slane %v2742_v33, %v2750_v35  ;;  %v2755_v47 = vrot.slane %v2742_v33, %v2754_v14  ;;  %v2759_v32 = vrot.slane %v2742_v33, %v2758_v36 }
 0x22e   : > { %v2763_v26 = vrot.slane %v2742_v33, %v2762_v37  ;;  %v2767_v23 = vrot.slane %v2742_v33, %v2766_v38  ;;  %v2771_v30 = vrot.slane %v2742_v33, %v2770_v40  ;;  %v2775_v49 = vrot.slane %v2742_v33, %v2774_v41 }
 0x22f   : > { %v2776_v50 = vcombine.low %v2747_v42, %v2751_v43  ;;  %v2777_v52 = vcombine.low %v2755_v47, %v2759_v32 }
 0x230   : > { %v2793_v10 = vcombine.low %v2763_v26, %v2767_v23  ;;  %v2794_v53 = vcombine.low %v2771_v30, %v2775_v49 }
 0x231   : > { %v2784_v55 = vrot.slane %v2776_v50, %v3728_v48  ;;  %v2791_v46 = vrot.slane %v2777_v52, %v3728_v48  ;;  %v2741_v59 = vld [vmem:[#allocation2 + $0x8] sm:$0xff] }
 0x232   : > { %v2801_v57 = vrot.slane %v2793_v10, %v3728_v48  ;;  %v2808_v45 = vrot.slane %v2794_v53, %v3728_v48 }
 0x233   : > { %v2792_v58 = vcombine.low %v2784_v55, %v2791_v46 }
 0x234   : > { %v2809_v60 = vcombine.low %v2801_v57, %v2808_v45 }
 0x235   : > { %v2812_v61 = vadd.f32 %v2792_v58, %v2740_v56 }
 0x236   : > { %v2813_v62 = vadd.f32 %v2809_v60, %v2741_v59 }
 0x237   : > { %v2814_v63 = vmax.f32 %v2812_v61, 0.0 }
 0x238   : > { %v2815_v1 = vmax.f32 %v2813_v62, 0.0 }
 0x239   : > { %2816 = vst [vmem:[%s3771_s3] sm:$0xff] %v2814_v63 }
 0x23a   : > { %2817 = vst [vmem:[%s3771_s3 + $0x8] sm:$0xff] %v2815_v1 }
 0x23b PF: > { %s13_s14 = sadd.s32 1, %s3277_s14   ;;  %s3772_s12 = smov %s3273_s13 }
 0x23c   : > { %p10_p8 = scmp.ge.s32.totalorder %s13_s14, 7   ;;  %s3773_s13 = smov %s3775_s15 }
 0x23e   :  { %12 = sbr.rel (!%p10_p8) target bundleno = 2 (0x2), region = 73 }

</bundles_post_ra>
